<compile_context>
chip_gen: v6e
topology: v6e:2x2x1
jax: 0.10.0
libtpu: 0.0.40
codegen_flags: <defaults>
</compile_context>

<pallas_src>
import jax
import jax.numpy as jnp
from jax.experimental import pallas as pl
from jax.experimental.pallas import tpu as pltpu

# ----------------------------------------------------------------------------
# Hyper-parameters (the original module pulls these from globals).
# ----------------------------------------------------------------------------
CAT_DIM = 4            # len(CAT_FEA_HOT)
VLT_DIM = 4            # len(VLT_FEA)
SF_DIM = 4             # len(SF_FEA)
OTH_DIM = 2            # len(MORE_FEA)
IS_DIM = 2             # len(IS_FEA)

RNN_PRED_LONG = 4      # rnn_pred_long
RNN_HIST_LONG = 8      # rnn_hist_long
NUM_QUANTILES = 3      # num_quantiles
RNN_INPUT_DIM = 5      # rnn_input_dim
RNN_HIDDEN = 16        # rnn_hidden_len
RNN_CXT = 8            # rnn_cxt_len

HIDDEN_DIM = [50, 20, 1, RNN_PRED_LONG, 10]
OUTPUT_DIM = 1

OUT_LANES = 128                                  # lane-dense packed output width
PACK_USED = 1 + 1 + RNN_PRED_LONG * NUM_QUANTILES  # x_out | o_vlt | o_sf_flat

_VMEM_SPEC = pl.BlockSpec(memory_space=pltpu.MemorySpace.VMEM)


# ----------------------------------------------------------------------------
# Single fused Pallas kernel: whole End2End_v7_tc forward pass.
# ----------------------------------------------------------------------------
def _end2end_v7_fused_kernel(
    # data
    enc_x_ref, enc_y_ref, dec_x_ref, x_vlt_ref, x_cat_ref, x_oth_ref, x_is_ref,
    # VLT MLP branch weights
    w_vlt1_ref, b_vlt1_ref, w_vlt2_ref, b_vlt2_ref, w_vlt3_ref, b_vlt3_ref,
    w_aug_ref, b_aug_ref,
    # MQ-RNN weights
    enc_w_ref, enc_b_ref, wih_ref, whh_ref, lstm_b_ref,
    gw_ref, gb_ref, lw_ref, lb_ref,
    # head weights
    fc3_wbd_ref, fc3_wv_ref, fc3_b_ref, w4_ref, b4_ref, w5_ref, b5_ref,
    # output (packed, lane-dense)
    out_ref,
):
    f32 = jnp.float32
    B = out_ref.shape[0]
    H = RNN_HIDDEN
    CXT = RNN_CXT
    P = RNN_PRED_LONG
    T = RNN_HIST_LONG
    Q = NUM_QUANTILES

    def dot(a, b):
        return jnp.dot(a, b, preferred_element_type=f32)

    # ---------------- VLT MLP branch (fc_vlt_1/2/3 + fc_vlt_aug) -----------
    # concat([x_vlt, x_cat]) @ W  ==  x_vlt @ W[:vlt] + x_cat @ W[vlt:]
    w1 = w_vlt1_ref[...]
    x1 = (dot(x_vlt_ref[...], w1[:VLT_DIM])
          + dot(x_cat_ref[...], w1[VLT_DIM:])
          + b_vlt1_ref[...])
    x1 = jnp.maximum(x1, 0.0)
    x1 = jnp.maximum(dot(x1, w_vlt2_ref[...]) + b_vlt2_ref[...], 0.0)
    # fc_vlt_3 (out_dim == 1): VPU multiply + lane reduce, weight stored (1, 20)
    o_vlt = jnp.sum(x1 * w_vlt3_ref[...], axis=-1, keepdims=True) + b_vlt3_ref[...]
    # fc_vlt_aug: concat([o_vlt, x_oth]) @ W  ==  o_vlt * W[0] + x_oth @ W[1:]
    w_aug = w_aug_ref[...]
    vlt_aug = (o_vlt * w_aug[0:1, :]
               + dot(x_oth_ref[...], w_aug[1:])
               + b_aug_ref[...])                                   # (B, P)

    # ---------------- MQ-RNN encoder + LSTM --------------------------------
    enc_w = enc_w_ref[...]                                         # (I, CXT)
    enc_b = enc_b_ref[...]                                         # (1, CXT)
    wih = wih_ref[...]                                             # (CXT+1, 4H)
    whh = whh_ref[...]                                             # (H, 4H)
    lstm_b = lstm_b_ref[...]                                       # (1, 4H), b_ih+b_hh

    # Per-gate weight slabs (sliced ONCE; PyTorch gate order i, f, g, o).
    wih_x = [wih[:CXT, k * H:(k + 1) * H] for k in range(4)]       # (CXT, H)
    wih_y = [wih[CXT:CXT + 1, k * H:(k + 1) * H] for k in range(4)]  # (1, H)
    b_g = [lstm_b[:, k * H:(k + 1) * H] for k in range(4)]         # (1, H)
    whh_g = [whh[:, k * H:(k + 1) * H] for k in range(4)]          # (H, H)

    enc_x = enc_x_ref[...]                                         # (B, T, I)
    enc_y = enc_y_ref[...]                                         # (B, T)

    # Input projection hoisted out of the recurrence (no serial dependence):
    # x_total_hist[t] = [tanh(enc(x_t)), y_t];  gx[t][k] = x_total_hist[t] @ W_ih_k + b_k
    gx = []
    for t in range(T):
        xf_t = jnp.tanh(dot(enc_x[:, t, :], enc_w) + enc_b)        # (B, CXT)
        y_t = enc_y[:, t:t + 1]                                    # (B, 1)
        gx.append([dot(xf_t, wih_x[k]) + y_t * wih_y[k] + b_g[k]
                   for k in range(4)])

    # Recurrence: only h @ W_hh per gate on the serial path.  T=8 -> unrolled.
    h = jnp.zeros((B, H), f32)
    c = jnp.zeros((B, H), f32)
    for t in range(T):
        i_g = jax.nn.sigmoid(gx[t][0] + dot(h, whh_g[0]))
        f_g = jax.nn.sigmoid(gx[t][1] + dot(h, whh_g[1]))
        g_g = jnp.tanh(gx[t][2] + dot(h, whh_g[2]))
        o_g = jax.nn.sigmoid(gx[t][3] + dot(h, whh_g[3]))
        c = f_g * c + i_g * g_g
        h = o_g * jnp.tanh(c)
    ht = h                                                         # (B, H)

    # ---------------- Decoder_MLP ------------------------------------------
    dec_x = dec_x_ref[...]                                         # (B, P, I)
    xfp = [jnp.tanh(dot(dec_x[:, k, :], enc_w) + enc_b) for k in range(P)]

    # global_mlp on concat([ht, xf_0..xf_{P-1}]) via row-sliced weight sums.
    gw = gw_ref[...]                                               # (H + P*CXT, CXT*(P+1))
    ctx = dot(ht, gw[:H]) + gb_ref[...]
    for k in range(P):
        ctx = ctx + dot(xfp[k], gw[H + k * CXT: H + (k + 1) * CXT])
    ctx = jax.nn.sigmoid(ctx)                                      # (B, CXT*(P+1))

    # local_mlp on concat([ck, ca, xk]) via row-sliced weights; the ca
    # contribution is computed once and reused for all horizons.
    lw = lw_ref[...]                                               # (3*CXT, Q)
    lw_ck, lw_ca, lw_x = lw[:CXT], lw[CXT:2 * CXT], lw[2 * CXT:]
    ca = ctx[:, P * CXT:]                                          # (B, CXT)
    ca_part = dot(ca, lw_ca) + lb_ref[...]                         # (B, Q)
    qps = []
    for k in range(P):
        ck = ctx[:, k * CXT:(k + 1) * CXT]
        qps.append(dot(ck, lw_ck) + ca_part + dot(xfp[k], lw_x))   # (B, Q)
    osf_flat = jnp.concatenate(qps, axis=1)                        # (B, P*Q)

    # ---------------- grouped fc_3, fc_4, fc_5 ------------------------------
    # fc_3[i]: sum_q o_sf[:,i,q]*W_i[q] + vlt_aug[:,i]*W_i[Q] + b_i
    # quantile part as one block-diagonal (P*Q, P) matmul; rest elementwise.
    sf_vlt = (dot(osf_flat, fc3_wbd_ref[...])
              + vlt_aug * fc3_wv_ref[...]
              + fc3_b_ref[...])                                    # (B, P)
    x = jnp.maximum(dot(sf_vlt, w4_ref[...]) + b4_ref[...], 0.0)   # (B, 10)
    # fc_5 (out_dim == 1): concat([x, x_is]) handled by a split lane reduce.
    w5 = w5_ref[...]                                               # (1, 10 + IS_DIM)
    x_out = (jnp.sum(x * w5[:, :HIDDEN_DIM[4]], axis=-1, keepdims=True)
             + jnp.sum(x_is_ref[...] * w5[:, HIDDEN_DIM[4]:], axis=-1, keepdims=True)
             + b5_ref[...])                                        # (B, 1)

    # ---------------- packed, lane-dense output ------------------------------
    pad = jnp.zeros((B, OUT_LANES - PACK_USED), f32)
    out_ref[...] = jnp.concatenate([x_out, o_vlt, osf_flat, pad], axis=1)


# ----------------------------------------------------------------------------
# Parameters (deterministic synthetic init; biases zero, weights small normal,
# mirroring init_weights / the checkpoint-loaded MQ_RNN shapes).
# ----------------------------------------------------------------------------
def init_params(key):
    def nrm(k, shape, std):
        return (std * jax.random.normal(k, shape)).astype(jnp.float32)

    def zeros(shape):
        return jnp.zeros(shape, jnp.float32)

    ks = iter(jax.random.split(key, 32))
    p = {}
    # --- End2End MLP branch (torch Linear weights stored transposed (in, out)) ---
    p["fc_vlt_1_w"] = nrm(next(ks), (VLT_DIM + CAT_DIM, HIDDEN_DIM[0]), 0.01)
    p["fc_vlt_1_b"] = zeros((1, HIDDEN_DIM[0]))
    p["fc_vlt_2_w"] = nrm(next(ks), (HIDDEN_DIM[0], HIDDEN_DIM[1]), 0.01)
    p["fc_vlt_2_b"] = zeros((1, HIDDEN_DIM[1]))
    # fc_vlt_3 (out_dim 1): row-vector layout (1, in) -> VPU mul + lane reduce.
    p["fc_vlt_3_w"] = nrm(next(ks), (1, HIDDEN_DIM[1]), 0.01)
    p["fc_vlt_3_b"] = zeros((1, HIDDEN_DIM[2]))
    p["fc_vlt_aug_w"] = nrm(next(ks), (HIDDEN_DIM[2] + OTH_DIM, HIDDEN_DIM[3]), 0.01)
    p["fc_vlt_aug_b"] = zeros((1, HIDDEN_DIM[3]))
    # fc_3[i], i < rnn_pred_long: each Linear(num_quantiles + 1, 1).  Stored as:
    #   * (P*Q, P) block-diagonal matrix for the quantile columns (one MXU dot)
    #   * (1, P) row for the vlt_aug column, (1, P) bias row.
    fc3_each = nrm(next(ks), (HIDDEN_DIM[3], NUM_QUANTILES + 1), 0.01)
    wbd = jnp.zeros((HIDDEN_DIM[3] * NUM_QUANTILES, HIDDEN_DIM[3]), jnp.float32)
    for i in range(HIDDEN_DIM[3]):
        wbd = wbd.at[i * NUM_QUANTILES:(i + 1) * NUM_QUANTILES, i].set(
            fc3_each[i, :NUM_QUANTILES])
    p["fc3_wbd"] = wbd
    p["fc3_wv"] = fc3_each[:, NUM_QUANTILES].reshape(1, HIDDEN_DIM[3])
    p["fc3_b"] = zeros((1, HIDDEN_DIM[3]))
    p["fc_4_w"] = nrm(next(ks), (HIDDEN_DIM[3], HIDDEN_DIM[4]), 0.01)
    p["fc_4_b"] = zeros((1, HIDDEN_DIM[4]))
    # fc_5 (out_dim 1): row-vector layout (1, in).
    p["fc_5_w"] = nrm(next(ks), (1, HIDDEN_DIM[4] + IS_DIM), 0.01)
    p["fc_5_b"] = zeros((1, OUTPUT_DIM))
    # --- MQ_RNN (original loads ../logs/torch/mqrnn_35.pkl; synthetic init here) ---
    p["enc_w"] = nrm(next(ks), (RNN_INPUT_DIM, RNN_CXT), 0.02)
    p["enc_b"] = zeros((1, RNN_CXT))
    p["lstm_wih"] = nrm(next(ks), (RNN_CXT + 1, 4 * RNN_HIDDEN), 0.02)
    p["lstm_whh"] = nrm(next(ks), (RNN_HIDDEN, 4 * RNN_HIDDEN), 0.02)
    p["lstm_b"] = zeros((1, 4 * RNN_HIDDEN))   # b_ih + b_hh folded together
    p["global_w"] = nrm(
        next(ks),
        (RNN_HIDDEN + RNN_CXT * RNN_PRED_LONG, RNN_CXT * (RNN_PRED_LONG + 1)),
        0.02,
    )
    p["global_b"] = zeros((1, RNN_CXT * (RNN_PRED_LONG + 1)))
    p["local_w"] = nrm(next(ks), (3 * RNN_CXT, NUM_QUANTILES), 0.02)
    p["local_b"] = zeros((1, NUM_QUANTILES))
    return p


# ----------------------------------------------------------------------------
# Forward pass: one fused pallas_call; only the output un-packing is JAX glue.
# ----------------------------------------------------------------------------
def end2end_v7_forward(p, enc_X, enc_y, dec_X, x_vlt, x_cat, x_oth, x_is):
    B = enc_X.shape[0]
    args = (
        # data
        enc_X, enc_y, dec_X, x_vlt, x_cat, x_oth, x_is,
        # VLT branch weights
        p["fc_vlt_1_w"], p["fc_vlt_1_b"], p["fc_vlt_2_w"], p["fc_vlt_2_b"],
        p["fc_vlt_3_w"], p["fc_vlt_3_b"], p["fc_vlt_aug_w"], p["fc_vlt_aug_b"],
        # MQ-RNN weights
        p["enc_w"], p["enc_b"], p["lstm_wih"], p["lstm_whh"], p["lstm_b"],
        p["global_w"], p["global_b"], p["local_w"], p["local_b"],
        # head weights
        p["fc3_wbd"], p["fc3_wv"], p["fc3_b"],
        p["fc_4_w"], p["fc_4_b"], p["fc_5_w"], p["fc_5_b"],
    )
    # TODO(synk): for production batch sizes, add a leading batch grid axis with
    # dimension_semantics=("parallel",) so both v7x TensorCores get work.
    packed = pl.pallas_call(
        _end2end_v7_fused_kernel,
        out_shape=jax.ShapeDtypeStruct((B, OUT_LANES), jnp.float32),
        in_specs=[_VMEM_SPEC] * len(args),
        out_specs=_VMEM_SPEC,
    )(*args)

    x_out = packed[:, 0:1]
    o_vlt = packed[:, 1:2]
    o_sf = packed[:, 2:2 + RNN_PRED_LONG * NUM_QUANTILES].reshape(
        B, RNN_PRED_LONG, NUM_QUANTILES)
    return x_out, o_vlt, o_sf


# ----------------------------------------------------------------------------
if __name__ == "__main__":
    key = jax.random.PRNGKey(0)
    kp, k1, k2, k3, k4, k5, k6, k7 = jax.random.split(key, 8)

    params = init_params(kp)

    B = 2
    enc_X = jax.random.normal(k1, (B, RNN_HIST_LONG, RNN_INPUT_DIM), jnp.float32)
    enc_y = jax.random.normal(k2, (B, RNN_HIST_LONG), jnp.float32)
    dec_X = jax.random.normal(k3, (B, RNN_PRED_LONG, RNN_INPUT_DIM), jnp.float32)
    x_vlt = jax.random.normal(k4, (B, VLT_DIM), jnp.float32)
    x_cat = jax.random.normal(k5, (B, CAT_DIM), jnp.float32)
    x_oth = jax.random.normal(k6, (B, OTH_DIM), jnp.float32)
    x_is = jax.random.normal(k7, (B, IS_DIM), jnp.float32)

    fwd = jax.jit(end2end_v7_forward)
    x_out, o_vlt, o_sf = fwd(params, enc_X, enc_y, dec_X, x_vlt, x_cat, x_oth, x_is)
    jax.block_until_ready((x_out, o_vlt, o_sf))

    assert x_out.shape == (B, OUTPUT_DIM)
    assert o_vlt.shape == (B, 1)
    assert o_sf.shape == (B, RNN_PRED_LONG, NUM_QUANTILES)
    assert bool(jnp.all(jnp.isfinite(x_out)))
    assert bool(jnp.all(jnp.isfinite(o_vlt)))
    assert bool(jnp.all(jnp.isfinite(o_sf)))
    print("KERNEL_OK")
</pallas_src>

<mosaic_0001>
module attributes {stable_mosaic.version = 11 : i64} {
  func.func @_end2end_v7_fused_kernel(%arg0: memref<2x8x5xf32, #tpu.memory_space<vmem>>, %arg1: memref<2x8xf32, #tpu.memory_space<vmem>>, %arg2: memref<2x4x5xf32, #tpu.memory_space<vmem>>, %arg3: memref<2x4xf32, #tpu.memory_space<vmem>>, %arg4: memref<2x4xf32, #tpu.memory_space<vmem>>, %arg5: memref<2x2xf32, #tpu.memory_space<vmem>>, %arg6: memref<2x2xf32, #tpu.memory_space<vmem>>, %arg7: memref<8x50xf32, #tpu.memory_space<vmem>>, %arg8: memref<1x50xf32, #tpu.memory_space<vmem>>, %arg9: memref<50x20xf32, #tpu.memory_space<vmem>>, %arg10: memref<1x20xf32, #tpu.memory_space<vmem>>, %arg11: memref<1x20xf32, #tpu.memory_space<vmem>>, %arg12: memref<1x1xf32, #tpu.memory_space<vmem>>, %arg13: memref<3x4xf32, #tpu.memory_space<vmem>>, %arg14: memref<1x4xf32, #tpu.memory_space<vmem>>, %arg15: memref<5x8xf32, #tpu.memory_space<vmem>>, %arg16: memref<1x8xf32, #tpu.memory_space<vmem>>, %arg17: memref<9x64xf32, #tpu.memory_space<vmem>>, %arg18: memref<16x64xf32, #tpu.memory_space<vmem>>, %arg19: memref<1x64xf32, #tpu.memory_space<vmem>>, %arg20: memref<48x40xf32, #tpu.memory_space<vmem>>, %arg21: memref<1x40xf32, #tpu.memory_space<vmem>>, %arg22: memref<24x3xf32, #tpu.memory_space<vmem>>, %arg23: memref<1x3xf32, #tpu.memory_space<vmem>>, %arg24: memref<12x4xf32, #tpu.memory_space<vmem>>, %arg25: memref<1x4xf32, #tpu.memory_space<vmem>>, %arg26: memref<1x4xf32, #tpu.memory_space<vmem>>, %arg27: memref<4x10xf32, #tpu.memory_space<vmem>>, %arg28: memref<1x10xf32, #tpu.memory_space<vmem>>, %arg29: memref<1x12xf32, #tpu.memory_space<vmem>>, %arg30: memref<1x1xf32, #tpu.memory_space<vmem>>, %arg31: memref<2x128xf32, #tpu.memory_space<vmem>>) attributes {dimension_semantics = [], scalar_prefetch = 0 : i64, scratch_operands = 0 : i64, tpu.core_type = #tpu.core_type<tc>} {
    %c0 = arith.constant 0 : index
    %c0_0 = arith.constant 0 : index
    %0 = vector.load %arg7[%c0, %c0_0] : memref<8x50xf32, #tpu.memory_space<vmem>>, vector<8x50xf32>
    %c0_1 = arith.constant 0 : index
    %c0_2 = arith.constant 0 : index
    %1 = vector.load %arg3[%c0_1, %c0_2] : memref<2x4xf32, #tpu.memory_space<vmem>>, vector<2x4xf32>
    %2 = vector.extract_strided_slice %0 {offsets = [0, 0], sizes = [4, 50], strides = [1, 1]} : vector<8x50xf32> to vector<4x50xf32>
    %cst = arith.constant dense<0.000000e+00> : vector<2x50xf32>
    %3 = tpu.matmul %1, %2, %cst {dimension_numbers = #tpu.dot_dimension_numbers<[1], [0], [0], [1], [0, 0, 1, 1], [], []>} : vector<2x4xf32>, vector<4x50xf32>, vector<2x50xf32> -> vector<2x50xf32>
    %c0_3 = arith.constant 0 : index
    %c0_4 = arith.constant 0 : index
    %4 = vector.load %arg4[%c0_3, %c0_4] : memref<2x4xf32, #tpu.memory_space<vmem>>, vector<2x4xf32>
    %5 = vector.extract_strided_slice %0 {offsets = [4, 0], sizes = [4, 50], strides = [1, 1]} : vector<8x50xf32> to vector<4x50xf32>
    %cst_5 = arith.constant dense<0.000000e+00> : vector<2x50xf32>
    %6 = tpu.matmul %4, %5, %cst_5 {dimension_numbers = #tpu.dot_dimension_numbers<[1], [0], [0], [1], [0, 0, 1, 1], [], []>} : vector<2x4xf32>, vector<4x50xf32>, vector<2x50xf32> -> vector<2x50xf32>
    %7 = arith.addf %3, %6 : vector<2x50xf32>
    %c0_6 = arith.constant 0 : index
    %c0_7 = arith.constant 0 : index
    %8 = vector.load %arg8[%c0_6, %c0_7] : memref<1x50xf32, #tpu.memory_space<vmem>>, vector<1x50xf32>
    %9 = vector.broadcast %8 : vector<1x50xf32> to vector<2x50xf32>
    %10 = arith.addf %7, %9 : vector<2x50xf32>
    %cst_8 = arith.constant 0.000000e+00 : f32
    %11 = vector.broadcast %cst_8 : f32 to vector<2x50xf32>
    %12 = arith.maximumf %10, %11 : vector<2x50xf32>
    %c0_9 = arith.constant 0 : index
    %c0_10 = arith.constant 0 : index
    %13 = vector.load %arg9[%c0_9, %c0_10] : memref<50x20xf32, #tpu.memory_space<vmem>>, vector<50x20xf32>
    %cst_11 = arith.constant dense<0.000000e+00> : vector<2x20xf32>
    %14 = tpu.matmul %12, %13, %cst_11 {dimension_numbers = #tpu.dot_dimension_numbers<[1], [0], [0], [1], [0, 0, 1, 1], [], []>} : vector<2x50xf32>, vector<50x20xf32>, vector<2x20xf32> -> vector<2x20xf32>
    %c0_12 = arith.constant 0 : index
    %c0_13 = arith.constant 0 : index
    %15 = vector.load %arg10[%c0_12, %c0_13] : memref<1x20xf32, #tpu.memory_space<vmem>>, vector<1x20xf32>
    %16 = vector.broadcast %15 : vector<1x20xf32> to vector<2x20xf32>
    %17 = arith.addf %14, %16 : vector<2x20xf32>
    %cst_14 = arith.constant 0.000000e+00 : f32
    %18 = vector.broadcast %cst_14 : f32 to vector<2x20xf32>
    %19 = arith.maximumf %17, %18 : vector<2x20xf32>
    %c0_15 = arith.constant 0 : index
    %c0_16 = arith.constant 0 : index
    %20 = vector.load %arg11[%c0_15, %c0_16] : memref<1x20xf32, #tpu.memory_space<vmem>>, vector<1x20xf32>
    %21 = vector.broadcast %20 : vector<1x20xf32> to vector<2x20xf32>
    %22 = arith.mulf %19, %21 : vector<2x20xf32>
    %cst_17 = arith.constant dense<0.000000e+00> : vector<2xf32>
    %23 = vector.multi_reduction <add>, %22, %cst_17 [1] : vector<2x20xf32> to vector<2xf32>
    %24 = vector.shape_cast %23 : vector<2xf32> to vector<2x1xf32>
    %c0_18 = arith.constant 0 : index
    %c0_19 = arith.constant 0 : index
    %25 = vector.load %arg12[%c0_18, %c0_19] : memref<1x1xf32, #tpu.memory_space<vmem>>, vector<1x1xf32>
    %26 = vector.broadcast %25 : vector<1x1xf32> to vector<2x1xf32>
    %27 = arith.addf %24, %26 : vector<2x1xf32>
    %c0_20 = arith.constant 0 : index
    %c0_21 = arith.constant 0 : index
    %28 = vector.load %arg13[%c0_20, %c0_21] : memref<3x4xf32, #tpu.memory_space<vmem>>, vector<3x4xf32>
    %29 = vector.extract_strided_slice %28 {offsets = [0, 0], sizes = [1, 4], strides = [1, 1]} : vector<3x4xf32> to vector<1x4xf32>
    %30 = vector.broadcast %27 : vector<2x1xf32> to vector<2x4xf32>
    %31 = vector.broadcast %29 : vector<1x4xf32> to vector<2x4xf32>
    %32 = arith.mulf %30, %31 : vector<2x4xf32>
    %c0_22 = arith.constant 0 : index
    %c0_23 = arith.constant 0 : index
    %33 = vector.load %arg5[%c0_22, %c0_23] : memref<2x2xf32, #tpu.memory_space<vmem>>, vector<2x2xf32>
    %34 = vector.extract_strided_slice %28 {offsets = [1, 0], sizes = [2, 4], strides = [1, 1]} : vector<3x4xf32> to vector<2x4xf32>
    %cst_24 = arith.constant dense<0.000000e+00> : vector<2x4xf32>
    %35 = tpu.matmul %33, %34, %cst_24 {dimension_numbers = #tpu.dot_dimension_numbers<[1], [0], [0], [1], [0, 0, 1, 1], [], []>} : vector<2x2xf32>, vector<2x4xf32>, vector<2x4xf32> -> vector<2x4xf32>
    %36 = arith.addf %32, %35 : vector<2x4xf32>
    %c0_25 = arith.constant 0 : index
    %c0_26 = arith.constant 0 : index
    %37 = vector.load %arg14[%c0_25, %c0_26] : memref<1x4xf32, #tpu.memory_space<vmem>>, vector<1x4xf32>
    %38 = vector.broadcast %37 : vector<1x4xf32> to vector<2x4xf32>
    %39 = arith.addf %36, %38 : vector<2x4xf32>
    %c0_27 = arith.constant 0 : index
    %c0_28 = arith.constant 0 : index
    %40 = vector.load %arg15[%c0_27, %c0_28] : memref<5x8xf32, #tpu.memory_space<vmem>>, vector<5x8xf32>
    %c0_29 = arith.constant 0 : index
    %c0_30 = arith.constant 0 : index
    %41 = vector.load %arg16[%c0_29, %c0_30] : memref<1x8xf32, #tpu.memory_space<vmem>>, vector<1x8xf32>
    %c0_31 = arith.constant 0 : index
    %c0_32 = arith.constant 0 : index
    %42 = vector.load %arg17[%c0_31, %c0_32] : memref<9x64xf32, #tpu.memory_space<vmem>>, vector<9x64xf32>
    %c0_33 = arith.constant 0 : index
    %c0_34 = arith.constant 0 : index
    %43 = vector.load %arg18[%c0_33, %c0_34] : memref<16x64xf32, #tpu.memory_space<vmem>>, vector<16x64xf32>
    %c0_35 = arith.constant 0 : index
    %c0_36 = arith.constant 0 : index
    %44 = vector.load %arg19[%c0_35, %c0_36] : memref<1x64xf32, #tpu.memory_space<vmem>>, vector<1x64xf32>
    %45 = vector.extract_strided_slice %42 {offsets = [0, 0], sizes = [8, 16], strides = [1, 1]} : vector<9x64xf32> to vector<8x16xf32>
    %46 = vector.extract_strided_slice %42 {offsets = [0, 16], sizes = [8, 16], strides = [1, 1]} : vector<9x64xf32> to vector<8x16xf32>
    %47 = vector.extract_strided_slice %42 {offsets = [0, 32], sizes = [8, 16], strides = [1, 1]} : vector<9x64xf32> to vector<8x16xf32>
    %48 = vector.extract_strided_slice %42 {offsets = [0, 48], sizes = [8, 16], strides = [1, 1]} : vector<9x64xf32> to vector<8x16xf32>
    %49 = vector.extract_strided_slice %42 {offsets = [8, 0], sizes = [1, 16], strides = [1, 1]} : vector<9x64xf32> to vector<1x16xf32>
    %50 = vector.extract_strided_slice %42 {offsets = [8, 16], sizes = [1, 16], strides = [1, 1]} : vector<9x64xf32> to vector<1x16xf32>
    %51 = vector.extract_strided_slice %42 {offsets = [8, 32], sizes = [1, 16], strides = [1, 1]} : vector<9x64xf32> to vector<1x16xf32>
    %52 = vector.extract_strided_slice %42 {offsets = [8, 48], sizes = [1, 16], strides = [1, 1]} : vector<9x64xf32> to vector<1x16xf32>
    %53 = vector.extract_strided_slice %44 {offsets = [0, 0], sizes = [1, 16], strides = [1, 1]} : vector<1x64xf32> to vector<1x16xf32>
    %54 = vector.extract_strided_slice %44 {offsets = [0, 16], sizes = [1, 16], strides = [1, 1]} : vector<1x64xf32> to vector<1x16xf32>
    %55 = vector.extract_strided_slice %44 {offsets = [0, 32], sizes = [1, 16], strides = [1, 1]} : vector<1x64xf32> to vector<1x16xf32>
    %56 = vector.extract_strided_slice %44 {offsets = [0, 48], sizes = [1, 16], strides = [1, 1]} : vector<1x64xf32> to vector<1x16xf32>
    %57 = vector.extract_strided_slice %43 {offsets = [0, 0], sizes = [16, 16], strides = [1, 1]} : vector<16x64xf32> to vector<16x16xf32>
    %58 = vector.extract_strided_slice %43 {offsets = [0, 16], sizes = [16, 16], strides = [1, 1]} : vector<16x64xf32> to vector<16x16xf32>
    %59 = vector.extract_strided_slice %43 {offsets = [0, 32], sizes = [16, 16], strides = [1, 1]} : vector<16x64xf32> to vector<16x16xf32>
    %60 = vector.extract_strided_slice %43 {offsets = [0, 48], sizes = [16, 16], strides = [1, 1]} : vector<16x64xf32> to vector<16x16xf32>
    %c0_37 = arith.constant 0 : index
    %c0_38 = arith.constant 0 : index
    %c0_39 = arith.constant 0 : index
    %61 = vector.load %arg0[%c0_37, %c0_38, %c0_39] : memref<2x8x5xf32, #tpu.memory_space<vmem>>, vector<2x8x5xf32>
    %c0_40 = arith.constant 0 : index
    %c0_41 = arith.constant 0 : index
    %62 = vector.load %arg1[%c0_40, %c0_41] : memref<2x8xf32, #tpu.memory_space<vmem>>, vector<2x8xf32>
    %63 = vector.extract_strided_slice %61 {offsets = [0, 0, 0], sizes = [2, 1, 5], strides = [1, 1, 1]} : vector<2x8x5xf32> to vector<2x1x5xf32>
    %64 = vector.shape_cast %63 : vector<2x1x5xf32> to vector<2x5xf32>
    %cst_42 = arith.constant dense<0.000000e+00> : vector<2x8xf32>
    %65 = tpu.matmul %64, %40, %cst_42 {dimension_numbers = #tpu.dot_dimension_numbers<[1], [0], [0], [1], [0, 0, 1, 1], [], []>} : vector<2x5xf32>, vector<5x8xf32>, vector<2x8xf32> -> vector<2x8xf32>
    %66 = vector.broadcast %41 : vector<1x8xf32> to vector<2x8xf32>
    %67 = arith.addf %65, %66 : vector<2x8xf32>
    %68 = math.tanh %67 : vector<2x8xf32>
    %69 = vector.extract_strided_slice %62 {offsets = [0, 0], sizes = [2, 1], strides = [1, 1]} : vector<2x8xf32> to vector<2x1xf32>
    %cst_43 = arith.constant dense<0.000000e+00> : vector<2x16xf32>
    %70 = tpu.matmul %68, %45, %cst_43 {dimension_numbers = #tpu.dot_dimension_numbers<[1], [0], [0], [1], [0, 0, 1, 1], [], []>} : vector<2x8xf32>, vector<8x16xf32>, vector<2x16xf32> -> vector<2x16xf32>
    %71 = vector.broadcast %69 : vector<2x1xf32> to vector<2x16xf32>
    %72 = vector.broadcast %49 : vector<1x16xf32> to vector<2x16xf32>
    %73 = arith.mulf %71, %72 : vector<2x16xf32>
    %74 = arith.addf %70, %73 : vector<2x16xf32>
    %75 = vector.broadcast %53 : vector<1x16xf32> to vector<2x16xf32>
    %76 = arith.addf %74, %75 : vector<2x16xf32>
    %cst_44 = arith.constant dense<0.000000e+00> : vector<2x16xf32>
    %77 = tpu.matmul %68, %46, %cst_44 {dimension_numbers = #tpu.dot_dimension_numbers<[1], [0], [0], [1], [0, 0, 1, 1], [], []>} : vector<2x8xf32>, vector<8x16xf32>, vector<2x16xf32> -> vector<2x16xf32>
    %78 = vector.broadcast %69 : vector<2x1xf32> to vector<2x16xf32>
    %79 = vector.broadcast %50 : vector<1x16xf32> to vector<2x16xf32>
    %80 = arith.mulf %78, %79 : vector<2x16xf32>
    %81 = arith.addf %77, %80 : vector<2x16xf32>
    %82 = vector.broadcast %54 : vector<1x16xf32> to vector<2x16xf32>
    %83 = arith.addf %81, %82 : vector<2x16xf32>
    %cst_45 = arith.constant dense<0.000000e+00> : vector<2x16xf32>
    %84 = tpu.matmul %68, %47, %cst_45 {dimension_numbers = #tpu.dot_dimension_numbers<[1], [0], [0], [1], [0, 0, 1, 1], [], []>} : vector<2x8xf32>, vector<8x16xf32>, vector<2x16xf32> -> vector<2x16xf32>
    %85 = vector.broadcast %69 : vector<2x1xf32> to vector<2x16xf32>
    %86 = vector.broadcast %51 : vector<1x16xf32> to vector<2x16xf32>
    %87 = arith.mulf %85, %86 : vector<2x16xf32>
    %88 = arith.addf %84, %87 : vector<2x16xf32>
    %89 = vector.broadcast %55 : vector<1x16xf32> to vector<2x16xf32>
    %90 = arith.addf %88, %89 : vector<2x16xf32>
    %cst_46 = arith.constant dense<0.000000e+00> : vector<2x16xf32>
    %91 = tpu.matmul %68, %48, %cst_46 {dimension_numbers = #tpu.dot_dimension_numbers<[1], [0], [0], [1], [0, 0, 1, 1], [], []>} : vector<2x8xf32>, vector<8x16xf32>, vector<2x16xf32> -> vector<2x16xf32>
    %92 = vector.broadcast %69 : vector<2x1xf32> to vector<2x16xf32>
    %93 = vector.broadcast %52 : vector<1x16xf32> to vector<2x16xf32>
    %94 = arith.mulf %92, %93 : vector<2x16xf32>
    %95 = arith.addf %91, %94 : vector<2x16xf32>
    %96 = vector.broadcast %56 : vector<1x16xf32> to vector<2x16xf32>
    %97 = arith.addf %95, %96 : vector<2x16xf32>
    %98 = vector.extract_strided_slice %61 {offsets = [0, 1, 0], sizes = [2, 1, 5], strides = [1, 1, 1]} : vector<2x8x5xf32> to vector<2x1x5xf32>
    %99 = vector.shape_cast %98 : vector<2x1x5xf32> to vector<2x5xf32>
    %cst_47 = arith.constant dense<0.000000e+00> : vector<2x8xf32>
    %100 = tpu.matmul %99, %40, %cst_47 {dimension_numbers = #tpu.dot_dimension_numbers<[1], [0], [0], [1], [0, 0, 1, 1], [], []>} : vector<2x5xf32>, vector<5x8xf32>, vector<2x8xf32> -> vector<2x8xf32>
    %101 = vector.broadcast %41 : vector<1x8xf32> to vector<2x8xf32>
    %102 = arith.addf %100, %101 : vector<2x8xf32>
    %103 = math.tanh %102 : vector<2x8xf32>
    %104 = vector.extract_strided_slice %62 {offsets = [0, 1], sizes = [2, 1], strides = [1, 1]} : vector<2x8xf32> to vector<2x1xf32>
    %cst_48 = arith.constant dense<0.000000e+00> : vector<2x16xf32>
    %105 = tpu.matmul %103, %45, %cst_48 {dimension_numbers = #tpu.dot_dimension_numbers<[1], [0], [0], [1], [0, 0, 1, 1], [], []>} : vector<2x8xf32>, vector<8x16xf32>, vector<2x16xf32> -> vector<2x16xf32>
    %106 = vector.broadcast %104 : vector<2x1xf32> to vector<2x16xf32>
    %107 = vector.broadcast %49 : vector<1x16xf32> to vector<2x16xf32>
    %108 = arith.mulf %106, %107 : vector<2x16xf32>
    %109 = arith.addf %105, %108 : vector<2x16xf32>
    %110 = vector.broadcast %53 : vector<1x16xf32> to vector<2x16xf32>
    %111 = arith.addf %109, %110 : vector<2x16xf32>
    %cst_49 = arith.constant dense<0.000000e+00> : vector<2x16xf32>
    %112 = tpu.matmul %103, %46, %cst_49 {dimension_numbers = #tpu.dot_dimension_numbers<[1], [0], [0], [1], [0, 0, 1, 1], [], []>} : vector<2x8xf32>, vector<8x16xf32>, vector<2x16xf32> -> vector<2x16xf32>
    %113 = vector.broadcast %104 : vector<2x1xf32> to vector<2x16xf32>
    %114 = vector.broadcast %50 : vector<1x16xf32> to vector<2x16xf32>
    %115 = arith.mulf %113, %114 : vector<2x16xf32>
    %116 = arith.addf %112, %115 : vector<2x16xf32>
    %117 = vector.broadcast %54 : vector<1x16xf32> to vector<2x16xf32>
    %118 = arith.addf %116, %117 : vector<2x16xf32>
    %cst_50 = arith.constant dense<0.000000e+00> : vector<2x16xf32>
    %119 = tpu.matmul %103, %47, %cst_50 {dimension_numbers = #tpu.dot_dimension_numbers<[1], [0], [0], [1], [0, 0, 1, 1], [], []>} : vector<2x8xf32>, vector<8x16xf32>, vector<2x16xf32> -> vector<2x16xf32>
    %120 = vector.broadcast %104 : vector<2x1xf32> to vector<2x16xf32>
    %121 = vector.broadcast %51 : vector<1x16xf32> to vector<2x16xf32>
    %122 = arith.mulf %120, %121 : vector<2x16xf32>
    %123 = arith.addf %119, %122 : vector<2x16xf32>
    %124 = vector.broadcast %55 : vector<1x16xf32> to vector<2x16xf32>
    %125 = arith.addf %123, %124 : vector<2x16xf32>
    %cst_51 = arith.constant dense<0.000000e+00> : vector<2x16xf32>
    %126 = tpu.matmul %103, %48, %cst_51 {dimension_numbers = #tpu.dot_dimension_numbers<[1], [0], [0], [1], [0, 0, 1, 1], [], []>} : vector<2x8xf32>, vector<8x16xf32>, vector<2x16xf32> -> vector<2x16xf32>
    %127 = vector.broadcast %104 : vector<2x1xf32> to vector<2x16xf32>
    %128 = vector.broadcast %52 : vector<1x16xf32> to vector<2x16xf32>
    %129 = arith.mulf %127, %128 : vector<2x16xf32>
    %130 = arith.addf %126, %129 : vector<2x16xf32>
    %131 = vector.broadcast %56 : vector<1x16xf32> to vector<2x16xf32>
    %132 = arith.addf %130, %131 : vector<2x16xf32>
    %133 = vector.extract_strided_slice %61 {offsets = [0, 2, 0], sizes = [2, 1, 5], strides = [1, 1, 1]} : vector<2x8x5xf32> to vector<2x1x5xf32>
    %134 = vector.shape_cast %133 : vector<2x1x5xf32> to vector<2x5xf32>
    %cst_52 = arith.constant dense<0.000000e+00> : vector<2x8xf32>
    %135 = tpu.matmul %134, %40, %cst_52 {dimension_numbers = #tpu.dot_dimension_numbers<[1], [0], [0], [1], [0, 0, 1, 1], [], []>} : vector<2x5xf32>, vector<5x8xf32>, vector<2x8xf32> -> vector<2x8xf32>
    %136 = vector.broadcast %41 : vector<1x8xf32> to vector<2x8xf32>
    %137 = arith.addf %135, %136 : vector<2x8xf32>
    %138 = math.tanh %137 : vector<2x8xf32>
    %139 = vector.extract_strided_slice %62 {offsets = [0, 2], sizes = [2, 1], strides = [1, 1]} : vector<2x8xf32> to vector<2x1xf32>
    %cst_53 = arith.constant dense<0.000000e+00> : vector<2x16xf32>
    %140 = tpu.matmul %138, %45, %cst_53 {dimension_numbers = #tpu.dot_dimension_numbers<[1], [0], [0], [1], [0, 0, 1, 1], [], []>} : vector<2x8xf32>, vector<8x16xf32>, vector<2x16xf32> -> vector<2x16xf32>
    %141 = vector.broadcast %139 : vector<2x1xf32> to vector<2x16xf32>
    %142 = vector.broadcast %49 : vector<1x16xf32> to vector<2x16xf32>
    %143 = arith.mulf %141, %142 : vector<2x16xf32>
    %144 = arith.addf %140, %143 : vector<2x16xf32>
    %145 = vector.broadcast %53 : vector<1x16xf32> to vector<2x16xf32>
    %146 = arith.addf %144, %145 : vector<2x16xf32>
    %cst_54 = arith.constant dense<0.000000e+00> : vector<2x16xf32>
    %147 = tpu.matmul %138, %46, %cst_54 {dimension_numbers = #tpu.dot_dimension_numbers<[1], [0], [0], [1], [0, 0, 1, 1], [], []>} : vector<2x8xf32>, vector<8x16xf32>, vector<2x16xf32> -> vector<2x16xf32>
    %148 = vector.broadcast %139 : vector<2x1xf32> to vector<2x16xf32>
    %149 = vector.broadcast %50 : vector<1x16xf32> to vector<2x16xf32>
    %150 = arith.mulf %148, %149 : vector<2x16xf32>
    %151 = arith.addf %147, %150 : vector<2x16xf32>
    %152 = vector.broadcast %54 : vector<1x16xf32> to vector<2x16xf32>
    %153 = arith.addf %151, %152 : vector<2x16xf32>
    %cst_55 = arith.constant dense<0.000000e+00> : vector<2x16xf32>
    %154 = tpu.matmul %138, %47, %cst_55 {dimension_numbers = #tpu.dot_dimension_numbers<[1], [0], [0], [1], [0, 0, 1, 1], [], []>} : vector<2x8xf32>, vector<8x16xf32>, vector<2x16xf32> -> vector<2x16xf32>
    %155 = vector.broadcast %139 : vector<2x1xf32> to vector<2x16xf32>
    %156 = vector.broadcast %51 : vector<1x16xf32> to vector<2x16xf32>
    %157 = arith.mulf %155, %156 : vector<2x16xf32>
    %158 = arith.addf %154, %157 : vector<2x16xf32>
    %159 = vector.broadcast %55 : vector<1x16xf32> to vector<2x16xf32>
    %160 = arith.addf %158, %159 : vector<2x16xf32>
    %cst_56 = arith.constant dense<0.000000e+00> : vector<2x16xf32>
    %161 = tpu.matmul %138, %48, %cst_56 {dimension_numbers = #tpu.dot_dimension_numbers<[1], [0], [0], [1], [0, 0, 1, 1], [], []>} : vector<2x8xf32>, vector<8x16xf32>, vector<2x16xf32> -> vector<2x16xf32>
    %162 = vector.broadcast %139 : vector<2x1xf32> to vector<2x16xf32>
    %163 = vector.broadcast %52 : vector<1x16xf32> to vector<2x16xf32>
    %164 = arith.mulf %162, %163 : vector<2x16xf32>
    %165 = arith.addf %161, %164 : vector<2x16xf32>
    %166 = vector.broadcast %56 : vector<1x16xf32> to vector<2x16xf32>
    %167 = arith.addf %165, %166 : vector<2x16xf32>
    %168 = vector.extract_strided_slice %61 {offsets = [0, 3, 0], sizes = [2, 1, 5], strides = [1, 1, 1]} : vector<2x8x5xf32> to vector<2x1x5xf32>
    %169 = vector.shape_cast %168 : vector<2x1x5xf32> to vector<2x5xf32>
    %cst_57 = arith.constant dense<0.000000e+00> : vector<2x8xf32>
    %170 = tpu.matmul %169, %40, %cst_57 {dimension_numbers = #tpu.dot_dimension_numbers<[1], [0], [0], [1], [0, 0, 1, 1], [], []>} : vector<2x5xf32>, vector<5x8xf32>, vector<2x8xf32> -> vector<2x8xf32>
    %171 = vector.broadcast %41 : vector<1x8xf32> to vector<2x8xf32>
    %172 = arith.addf %170, %171 : vector<2x8xf32>
    %173 = math.tanh %172 : vector<2x8xf32>
    %174 = vector.extract_strided_slice %62 {offsets = [0, 3], sizes = [2, 1], strides = [1, 1]} : vector<2x8xf32> to vector<2x1xf32>
    %cst_58 = arith.constant dense<0.000000e+00> : vector<2x16xf32>
    %175 = tpu.matmul %173, %45, %cst_58 {dimension_numbers = #tpu.dot_dimension_numbers<[1], [0], [0], [1], [0, 0, 1, 1], [], []>} : vector<2x8xf32>, vector<8x16xf32>, vector<2x16xf32> -> vector<2x16xf32>
    %176 = vector.broadcast %174 : vector<2x1xf32> to vector<2x16xf32>
    %177 = vector.broadcast %49 : vector<1x16xf32> to vector<2x16xf32>
    %178 = arith.mulf %176, %177 : vector<2x16xf32>
    %179 = arith.addf %175, %178 : vector<2x16xf32>
    %180 = vector.broadcast %53 : vector<1x16xf32> to vector<2x16xf32>
    %181 = arith.addf %179, %180 : vector<2x16xf32>
    %cst_59 = arith.constant dense<0.000000e+00> : vector<2x16xf32>
    %182 = tpu.matmul %173, %46, %cst_59 {dimension_numbers = #tpu.dot_dimension_numbers<[1], [0], [0], [1], [0, 0, 1, 1], [], []>} : vector<2x8xf32>, vector<8x16xf32>, vector<2x16xf32> -> vector<2x16xf32>
    %183 = vector.broadcast %174 : vector<2x1xf32> to vector<2x16xf32>
    %184 = vector.broadcast %50 : vector<1x16xf32> to vector<2x16xf32>
    %185 = arith.mulf %183, %184 : vector<2x16xf32>
    %186 = arith.addf %182, %185 : vector<2x16xf32>
    %187 = vector.broadcast %54 : vector<1x16xf32> to vector<2x16xf32>
    %188 = arith.addf %186, %187 : vector<2x16xf32>
    %cst_60 = arith.constant dense<0.000000e+00> : vector<2x16xf32>
    %189 = tpu.matmul %173, %47, %cst_60 {dimension_numbers = #tpu.dot_dimension_numbers<[1], [0], [0], [1], [0, 0, 1, 1], [], []>} : vector<2x8xf32>, vector<8x16xf32>, vector<2x16xf32> -> vector<2x16xf32>
    %190 = vector.broadcast %174 : vector<2x1xf32> to vector<2x16xf32>
    %191 = vector.broadcast %51 : vector<1x16xf32> to vector<2x16xf32>
    %192 = arith.mulf %190, %191 : vector<2x16xf32>
    %193 = arith.addf %189, %192 : vector<2x16xf32>
    %194 = vector.broadcast %55 : vector<1x16xf32> to vector<2x16xf32>
    %195 = arith.addf %193, %194 : vector<2x16xf32>
    %cst_61 = arith.constant dense<0.000000e+00> : vector<2x16xf32>
    %196 = tpu.matmul %173, %48, %cst_61 {dimension_numbers = #tpu.dot_dimension_numbers<[1], [0], [0], [1], [0, 0, 1, 1], [], []>} : vector<2x8xf32>, vector<8x16xf32>, vector<2x16xf32> -> vector<2x16xf32>
    %197 = vector.broadcast %174 : vector<2x1xf32> to vector<2x16xf32>
    %198 = vector.broadcast %52 : vector<1x16xf32> to vector<2x16xf32>
    %199 = arith.mulf %197, %198 : vector<2x16xf32>
    %200 = arith.addf %196, %199 : vector<2x16xf32>
    %201 = vector.broadcast %56 : vector<1x16xf32> to vector<2x16xf32>
    %202 = arith.addf %200, %201 : vector<2x16xf32>
    %203 = vector.extract_strided_slice %61 {offsets = [0, 4, 0], sizes = [2, 1, 5], strides = [1, 1, 1]} : vector<2x8x5xf32> to vector<2x1x5xf32>
    %204 = vector.shape_cast %203 : vector<2x1x5xf32> to vector<2x5xf32>
    %cst_62 = arith.constant dense<0.000000e+00> : vector<2x8xf32>
    %205 = tpu.matmul %204, %40, %cst_62 {dimension_numbers = #tpu.dot_dimension_numbers<[1], [0], [0], [1], [0, 0, 1, 1], [], []>} : vector<2x5xf32>, vector<5x8xf32>, vector<2x8xf32> -> vector<2x8xf32>
    %206 = vector.broadcast %41 : vector<1x8xf32> to vector<2x8xf32>
    %207 = arith.addf %205, %206 : vector<2x8xf32>
    %208 = math.tanh %207 : vector<2x8xf32>
    %209 = vector.extract_strided_slice %62 {offsets = [0, 4], sizes = [2, 1], strides = [1, 1]} : vector<2x8xf32> to vector<2x1xf32>
    %cst_63 = arith.constant dense<0.000000e+00> : vector<2x16xf32>
    %210 = tpu.matmul %208, %45, %cst_63 {dimension_numbers = #tpu.dot_dimension_numbers<[1], [0], [0], [1], [0, 0, 1, 1], [], []>} : vector<2x8xf32>, vector<8x16xf32>, vector<2x16xf32> -> vector<2x16xf32>
    %211 = vector.broadcast %209 : vector<2x1xf32> to vector<2x16xf32>
    %212 = vector.broadcast %49 : vector<1x16xf32> to vector<2x16xf32>
    %213 = arith.mulf %211, %212 : vector<2x16xf32>
    %214 = arith.addf %210, %213 : vector<2x16xf32>
    %215 = vector.broadcast %53 : vector<1x16xf32> to vector<2x16xf32>
    %216 = arith.addf %214, %215 : vector<2x16xf32>
    %cst_64 = arith.constant dense<0.000000e+00> : vector<2x16xf32>
    %217 = tpu.matmul %208, %46, %cst_64 {dimension_numbers = #tpu.dot_dimension_numbers<[1], [0], [0], [1], [0, 0, 1, 1], [], []>} : vector<2x8xf32>, vector<8x16xf32>, vector<2x16xf32> -> vector<2x16xf32>
    %218 = vector.broadcast %209 : vector<2x1xf32> to vector<2x16xf32>
    %219 = vector.broadcast %50 : vector<1x16xf32> to vector<2x16xf32>
    %220 = arith.mulf %218, %219 : vector<2x16xf32>
    %221 = arith.addf %217, %220 : vector<2x16xf32>
    %222 = vector.broadcast %54 : vector<1x16xf32> to vector<2x16xf32>
    %223 = arith.addf %221, %222 : vector<2x16xf32>
    %cst_65 = arith.constant dense<0.000000e+00> : vector<2x16xf32>
    %224 = tpu.matmul %208, %47, %cst_65 {dimension_numbers = #tpu.dot_dimension_numbers<[1], [0], [0], [1], [0, 0, 1, 1], [], []>} : vector<2x8xf32>, vector<8x16xf32>, vector<2x16xf32> -> vector<2x16xf32>
    %225 = vector.broadcast %209 : vector<2x1xf32> to vector<2x16xf32>
    %226 = vector.broadcast %51 : vector<1x16xf32> to vector<2x16xf32>
    %227 = arith.mulf %225, %226 : vector<2x16xf32>
    %228 = arith.addf %224, %227 : vector<2x16xf32>
    %229 = vector.broadcast %55 : vector<1x16xf32> to vector<2x16xf32>
    %230 = arith.addf %228, %229 : vector<2x16xf32>
    %cst_66 = arith.constant dense<0.000000e+00> : vector<2x16xf32>
    %231 = tpu.matmul %208, %48, %cst_66 {dimension_numbers = #tpu.dot_dimension_numbers<[1], [0], [0], [1], [0, 0, 1, 1], [], []>} : vector<2x8xf32>, vector<8x16xf32>, vector<2x16xf32> -> vector<2x16xf32>
    %232 = vector.broadcast %209 : vector<2x1xf32> to vector<2x16xf32>
    %233 = vector.broadcast %52 : vector<1x16xf32> to vector<2x16xf32>
    %234 = arith.mulf %232, %233 : vector<2x16xf32>
    %235 = arith.addf %231, %234 : vector<2x16xf32>
    %236 = vector.broadcast %56 : vector<1x16xf32> to vector<2x16xf32>
    %237 = arith.addf %235, %236 : vector<2x16xf32>
    %238 = vector.extract_strided_slice %61 {offsets = [0, 5, 0], sizes = [2, 1, 5], strides = [1, 1, 1]} : vector<2x8x5xf32> to vector<2x1x5xf32>
    %239 = vector.shape_cast %238 : vector<2x1x5xf32> to vector<2x5xf32>
    %cst_67 = arith.constant dense<0.000000e+00> : vector<2x8xf32>
    %240 = tpu.matmul %239, %40, %cst_67 {dimension_numbers = #tpu.dot_dimension_numbers<[1], [0], [0], [1], [0, 0, 1, 1], [], []>} : vector<2x5xf32>, vector<5x8xf32>, vector<2x8xf32> -> vector<2x8xf32>
    %241 = vector.broadcast %41 : vector<1x8xf32> to vector<2x8xf32>
    %242 = arith.addf %240, %241 : vector<2x8xf32>
    %243 = math.tanh %242 : vector<2x8xf32>
    %244 = vector.extract_strided_slice %62 {offsets = [0, 5], sizes = [2, 1], strides = [1, 1]} : vector<2x8xf32> to vector<2x1xf32>
    %cst_68 = arith.constant dense<0.000000e+00> : vector<2x16xf32>
    %245 = tpu.matmul %243, %45, %cst_68 {dimension_numbers = #tpu.dot_dimension_numbers<[1], [0], [0], [1], [0, 0, 1, 1], [], []>} : vector<2x8xf32>, vector<8x16xf32>, vector<2x16xf32> -> vector<2x16xf32>
    %246 = vector.broadcast %244 : vector<2x1xf32> to vector<2x16xf32>
    %247 = vector.broadcast %49 : vector<1x16xf32> to vector<2x16xf32>
    %248 = arith.mulf %246, %247 : vector<2x16xf32>
    %249 = arith.addf %245, %248 : vector<2x16xf32>
    %250 = vector.broadcast %53 : vector<1x16xf32> to vector<2x16xf32>
    %251 = arith.addf %249, %250 : vector<2x16xf32>
    %cst_69 = arith.constant dense<0.000000e+00> : vector<2x16xf32>
    %252 = tpu.matmul %243, %46, %cst_69 {dimension_numbers = #tpu.dot_dimension_numbers<[1], [0], [0], [1], [0, 0, 1, 1], [], []>} : vector<2x8xf32>, vector<8x16xf32>, vector<2x16xf32> -> vector<2x16xf32>
    %253 = vector.broadcast %244 : vector<2x1xf32> to vector<2x16xf32>
    %254 = vector.broadcast %50 : vector<1x16xf32> to vector<2x16xf32>
    %255 = arith.mulf %253, %254 : vector<2x16xf32>
    %256 = arith.addf %252, %255 : vector<2x16xf32>
    %257 = vector.broadcast %54 : vector<1x16xf32> to vector<2x16xf32>
    %258 = arith.addf %256, %257 : vector<2x16xf32>
    %cst_70 = arith.constant dense<0.000000e+00> : vector<2x16xf32>
    %259 = tpu.matmul %243, %47, %cst_70 {dimension_numbers = #tpu.dot_dimension_numbers<[1], [0], [0], [1], [0, 0, 1, 1], [], []>} : vector<2x8xf32>, vector<8x16xf32>, vector<2x16xf32> -> vector<2x16xf32>
    %260 = vector.broadcast %244 : vector<2x1xf32> to vector<2x16xf32>
    %261 = vector.broadcast %51 : vector<1x16xf32> to vector<2x16xf32>
    %262 = arith.mulf %260, %261 : vector<2x16xf32>
    %263 = arith.addf %259, %262 : vector<2x16xf32>
    %264 = vector.broadcast %55 : vector<1x16xf32> to vector<2x16xf32>
    %265 = arith.addf %263, %264 : vector<2x16xf32>
    %cst_71 = arith.constant dense<0.000000e+00> : vector<2x16xf32>
    %266 = tpu.matmul %243, %48, %cst_71 {dimension_numbers = #tpu.dot_dimension_numbers<[1], [0], [0], [1], [0, 0, 1, 1], [], []>} : vector<2x8xf32>, vector<8x16xf32>, vector<2x16xf32> -> vector<2x16xf32>
    %267 = vector.broadcast %244 : vector<2x1xf32> to vector<2x16xf32>
    %268 = vector.broadcast %52 : vector<1x16xf32> to vector<2x16xf32>
    %269 = arith.mulf %267, %268 : vector<2x16xf32>
    %270 = arith.addf %266, %269 : vector<2x16xf32>
    %271 = vector.broadcast %56 : vector<1x16xf32> to vector<2x16xf32>
    %272 = arith.addf %270, %271 : vector<2x16xf32>
    %273 = vector.extract_strided_slice %61 {offsets = [0, 6, 0], sizes = [2, 1, 5], strides = [1, 1, 1]} : vector<2x8x5xf32> to vector<2x1x5xf32>
    %274 = vector.shape_cast %273 : vector<2x1x5xf32> to vector<2x5xf32>
    %cst_72 = arith.constant dense<0.000000e+00> : vector<2x8xf32>
    %275 = tpu.matmul %274, %40, %cst_72 {dimension_numbers = #tpu.dot_dimension_numbers<[1], [0], [0], [1], [0, 0, 1, 1], [], []>} : vector<2x5xf32>, vector<5x8xf32>, vector<2x8xf32> -> vector<2x8xf32>
    %276 = vector.broadcast %41 : vector<1x8xf32> to vector<2x8xf32>
    %277 = arith.addf %275, %276 : vector<2x8xf32>
    %278 = math.tanh %277 : vector<2x8xf32>
    %279 = vector.extract_strided_slice %62 {offsets = [0, 6], sizes = [2, 1], strides = [1, 1]} : vector<2x8xf32> to vector<2x1xf32>
    %cst_73 = arith.constant dense<0.000000e+00> : vector<2x16xf32>
    %280 = tpu.matmul %278, %45, %cst_73 {dimension_numbers = #tpu.dot_dimension_numbers<[1], [0], [0], [1], [0, 0, 1, 1], [], []>} : vector<2x8xf32>, vector<8x16xf32>, vector<2x16xf32> -> vector<2x16xf32>
    %281 = vector.broadcast %279 : vector<2x1xf32> to vector<2x16xf32>
    %282 = vector.broadcast %49 : vector<1x16xf32> to vector<2x16xf32>
    %283 = arith.mulf %281, %282 : vector<2x16xf32>
    %284 = arith.addf %280, %283 : vector<2x16xf32>
    %285 = vector.broadcast %53 : vector<1x16xf32> to vector<2x16xf32>
    %286 = arith.addf %284, %285 : vector<2x16xf32>
    %cst_74 = arith.constant dense<0.000000e+00> : vector<2x16xf32>
    %287 = tpu.matmul %278, %46, %cst_74 {dimension_numbers = #tpu.dot_dimension_numbers<[1], [0], [0], [1], [0, 0, 1, 1], [], []>} : vector<2x8xf32>, vector<8x16xf32>, vector<2x16xf32> -> vector<2x16xf32>
    %288 = vector.broadcast %279 : vector<2x1xf32> to vector<2x16xf32>
    %289 = vector.broadcast %50 : vector<1x16xf32> to vector<2x16xf32>
    %290 = arith.mulf %288, %289 : vector<2x16xf32>
    %291 = arith.addf %287, %290 : vector<2x16xf32>
    %292 = vector.broadcast %54 : vector<1x16xf32> to vector<2x16xf32>
    %293 = arith.addf %291, %292 : vector<2x16xf32>
    %cst_75 = arith.constant dense<0.000000e+00> : vector<2x16xf32>
    %294 = tpu.matmul %278, %47, %cst_75 {dimension_numbers = #tpu.dot_dimension_numbers<[1], [0], [0], [1], [0, 0, 1, 1], [], []>} : vector<2x8xf32>, vector<8x16xf32>, vector<2x16xf32> -> vector<2x16xf32>
    %295 = vector.broadcast %279 : vector<2x1xf32> to vector<2x16xf32>
    %296 = vector.broadcast %51 : vector<1x16xf32> to vector<2x16xf32>
    %297 = arith.mulf %295, %296 : vector<2x16xf32>
    %298 = arith.addf %294, %297 : vector<2x16xf32>
    %299 = vector.broadcast %55 : vector<1x16xf32> to vector<2x16xf32>
    %300 = arith.addf %298, %299 : vector<2x16xf32>
    %cst_76 = arith.constant dense<0.000000e+00> : vector<2x16xf32>
    %301 = tpu.matmul %278, %48, %cst_76 {dimension_numbers = #tpu.dot_dimension_numbers<[1], [0], [0], [1], [0, 0, 1, 1], [], []>} : vector<2x8xf32>, vector<8x16xf32>, vector<2x16xf32> -> vector<2x16xf32>
    %302 = vector.broadcast %279 : vector<2x1xf32> to vector<2x16xf32>
    %303 = vector.broadcast %52 : vector<1x16xf32> to vector<2x16xf32>
    %304 = arith.mulf %302, %303 : vector<2x16xf32>
    %305 = arith.addf %301, %304 : vector<2x16xf32>
    %306 = vector.broadcast %56 : vector<1x16xf32> to vector<2x16xf32>
    %307 = arith.addf %305, %306 : vector<2x16xf32>
    %308 = vector.extract_strided_slice %61 {offsets = [0, 7, 0], sizes = [2, 1, 5], strides = [1, 1, 1]} : vector<2x8x5xf32> to vector<2x1x5xf32>
    %309 = vector.shape_cast %308 : vector<2x1x5xf32> to vector<2x5xf32>
    %cst_77 = arith.constant dense<0.000000e+00> : vector<2x8xf32>
    %310 = tpu.matmul %309, %40, %cst_77 {dimension_numbers = #tpu.dot_dimension_numbers<[1], [0], [0], [1], [0, 0, 1, 1], [], []>} : vector<2x5xf32>, vector<5x8xf32>, vector<2x8xf32> -> vector<2x8xf32>
    %311 = vector.broadcast %41 : vector<1x8xf32> to vector<2x8xf32>
    %312 = arith.addf %310, %311 : vector<2x8xf32>
    %313 = math.tanh %312 : vector<2x8xf32>
    %314 = vector.extract_strided_slice %62 {offsets = [0, 7], sizes = [2, 1], strides = [1, 1]} : vector<2x8xf32> to vector<2x1xf32>
    %cst_78 = arith.constant dense<0.000000e+00> : vector<2x16xf32>
    %315 = tpu.matmul %313, %45, %cst_78 {dimension_numbers = #tpu.dot_dimension_numbers<[1], [0], [0], [1], [0, 0, 1, 1], [], []>} : vector<2x8xf32>, vector<8x16xf32>, vector<2x16xf32> -> vector<2x16xf32>
    %316 = vector.broadcast %314 : vector<2x1xf32> to vector<2x16xf32>
    %317 = vector.broadcast %49 : vector<1x16xf32> to vector<2x16xf32>
    %318 = arith.mulf %316, %317 : vector<2x16xf32>
    %319 = arith.addf %315, %318 : vector<2x16xf32>
    %320 = vector.broadcast %53 : vector<1x16xf32> to vector<2x16xf32>
    %321 = arith.addf %319, %320 : vector<2x16xf32>
    %cst_79 = arith.constant dense<0.000000e+00> : vector<2x16xf32>
    %322 = tpu.matmul %313, %46, %cst_79 {dimension_numbers = #tpu.dot_dimension_numbers<[1], [0], [0], [1], [0, 0, 1, 1], [], []>} : vector<2x8xf32>, vector<8x16xf32>, vector<2x16xf32> -> vector<2x16xf32>
    %323 = vector.broadcast %314 : vector<2x1xf32> to vector<2x16xf32>
    %324 = vector.broadcast %50 : vector<1x16xf32> to vector<2x16xf32>
    %325 = arith.mulf %323, %324 : vector<2x16xf32>
    %326 = arith.addf %322, %325 : vector<2x16xf32>
    %327 = vector.broadcast %54 : vector<1x16xf32> to vector<2x16xf32>
    %328 = arith.addf %326, %327 : vector<2x16xf32>
    %cst_80 = arith.constant dense<0.000000e+00> : vector<2x16xf32>
    %329 = tpu.matmul %313, %47, %cst_80 {dimension_numbers = #tpu.dot_dimension_numbers<[1], [0], [0], [1], [0, 0, 1, 1], [], []>} : vector<2x8xf32>, vector<8x16xf32>, vector<2x16xf32> -> vector<2x16xf32>
    %330 = vector.broadcast %314 : vector<2x1xf32> to vector<2x16xf32>
    %331 = vector.broadcast %51 : vector<1x16xf32> to vector<2x16xf32>
    %332 = arith.mulf %330, %331 : vector<2x16xf32>
    %333 = arith.addf %329, %332 : vector<2x16xf32>
    %334 = vector.broadcast %55 : vector<1x16xf32> to vector<2x16xf32>
    %335 = arith.addf %333, %334 : vector<2x16xf32>
    %cst_81 = arith.constant dense<0.000000e+00> : vector<2x16xf32>
    %336 = tpu.matmul %313, %48, %cst_81 {dimension_numbers = #tpu.dot_dimension_numbers<[1], [0], [0], [1], [0, 0, 1, 1], [], []>} : vector<2x8xf32>, vector<8x16xf32>, vector<2x16xf32> -> vector<2x16xf32>
    %337 = vector.broadcast %314 : vector<2x1xf32> to vector<2x16xf32>
    %338 = vector.broadcast %52 : vector<1x16xf32> to vector<2x16xf32>
    %339 = arith.mulf %337, %338 : vector<2x16xf32>
    %340 = arith.addf %336, %339 : vector<2x16xf32>
    %341 = vector.broadcast %56 : vector<1x16xf32> to vector<2x16xf32>
    %342 = arith.addf %340, %341 : vector<2x16xf32>
    %cst_82 = arith.constant 0.000000e+00 : f32
    %343 = vector.broadcast %cst_82 : f32 to vector<2x16xf32>
    %cst_83 = arith.constant 0.000000e+00 : f32
    %344 = vector.broadcast %cst_83 : f32 to vector<2x16xf32>
    %cst_84 = arith.constant dense<0.000000e+00> : vector<2x16xf32>
    %345 = tpu.matmul %343, %57, %cst_84 {dimension_numbers = #tpu.dot_dimension_numbers<[1], [0], [0], [1], [0, 0, 1, 1], [], []>} : vector<2x16xf32>, vector<16x16xf32>, vector<2x16xf32> -> vector<2x16xf32>
    %346 = arith.addf %76, %345 : vector<2x16xf32>
    %347 = arith.negf %346 : vector<2x16xf32>
    %348 = math.exp %347 : vector<2x16xf32>
    %cst_85 = arith.constant 1.000000e+00 : f32
    %349 = vector.broadcast %cst_85 : f32 to vector<2x16xf32>
    %350 = arith.addf %349, %348 : vector<2x16xf32>
    %351 = arith.divf %349, %350 : vector<2x16xf32>
    %cst_86 = arith.constant dense<0.000000e+00> : vector<2x16xf32>
    %352 = tpu.matmul %343, %58, %cst_86 {dimension_numbers = #tpu.dot_dimension_numbers<[1], [0], [0], [1], [0, 0, 1, 1], [], []>} : vector<2x16xf32>, vector<16x16xf32>, vector<2x16xf32> -> vector<2x16xf32>
    %353 = arith.addf %83, %352 : vector<2x16xf32>
    %354 = arith.negf %353 : vector<2x16xf32>
    %355 = math.exp %354 : vector<2x16xf32>
    %cst_87 = arith.constant 1.000000e+00 : f32
    %356 = vector.broadcast %cst_87 : f32 to vector<2x16xf32>
    %357 = arith.addf %356, %355 : vector<2x16xf32>
    %358 = arith.divf %356, %357 : vector<2x16xf32>
    %cst_88 = arith.constant dense<0.000000e+00> : vector<2x16xf32>
    %359 = tpu.matmul %343, %59, %cst_88 {dimension_numbers = #tpu.dot_dimension_numbers<[1], [0], [0], [1], [0, 0, 1, 1], [], []>} : vector<2x16xf32>, vector<16x16xf32>, vector<2x16xf32> -> vector<2x16xf32>
    %360 = arith.addf %90, %359 : vector<2x16xf32>
    %361 = math.tanh %360 : vector<2x16xf32>
    %cst_89 = arith.constant dense<0.000000e+00> : vector<2x16xf32>
    %362 = tpu.matmul %343, %60, %cst_89 {dimension_numbers = #tpu.dot_dimension_numbers<[1], [0], [0], [1], [0, 0, 1, 1], [], []>} : vector<2x16xf32>, vector<16x16xf32>, vector<2x16xf32> -> vector<2x16xf32>
    %363 = arith.addf %97, %362 : vector<2x16xf32>
    %364 = arith.negf %363 : vector<2x16xf32>
    %365 = math.exp %364 : vector<2x16xf32>
    %cst_90 = arith.constant 1.000000e+00 : f32
    %366 = vector.broadcast %cst_90 : f32 to vector<2x16xf32>
    %367 = arith.addf %366, %365 : vector<2x16xf32>
    %368 = arith.divf %366, %367 : vector<2x16xf32>
    %369 = arith.mulf %358, %344 : vector<2x16xf32>
    %370 = arith.mulf %351, %361 : vector<2x16xf32>
    %371 = arith.addf %369, %370 : vector<2x16xf32>
    %372 = math.tanh %371 : vector<2x16xf32>
    %373 = arith.mulf %368, %372 : vector<2x16xf32>
    %cst_91 = arith.constant dense<0.000000e+00> : vector<2x16xf32>
    %374 = tpu.matmul %373, %57, %cst_91 {dimension_numbers = #tpu.dot_dimension_numbers<[1], [0], [0], [1], [0, 0, 1, 1], [], []>} : vector<2x16xf32>, vector<16x16xf32>, vector<2x16xf32> -> vector<2x16xf32>
    %375 = arith.addf %111, %374 : vector<2x16xf32>
    %376 = arith.negf %375 : vector<2x16xf32>
    %377 = math.exp %376 : vector<2x16xf32>
    %cst_92 = arith.constant 1.000000e+00 : f32
    %378 = vector.broadcast %cst_92 : f32 to vector<2x16xf32>
    %379 = arith.addf %378, %377 : vector<2x16xf32>
    %380 = arith.divf %378, %379 : vector<2x16xf32>
    %cst_93 = arith.constant dense<0.000000e+00> : vector<2x16xf32>
    %381 = tpu.matmul %373, %58, %cst_93 {dimension_numbers = #tpu.dot_dimension_numbers<[1], [0], [0], [1], [0, 0, 1, 1], [], []>} : vector<2x16xf32>, vector<16x16xf32>, vector<2x16xf32> -> vector<2x16xf32>
    %382 = arith.addf %118, %381 : vector<2x16xf32>
    %383 = arith.negf %382 : vector<2x16xf32>
    %384 = math.exp %383 : vector<2x16xf32>
    %cst_94 = arith.constant 1.000000e+00 : f32
    %385 = vector.broadcast %cst_94 : f32 to vector<2x16xf32>
    %386 = arith.addf %385, %384 : vector<2x16xf32>
    %387 = arith.divf %385, %386 : vector<2x16xf32>
    %cst_95 = arith.constant dense<0.000000e+00> : vector<2x16xf32>
    %388 = tpu.matmul %373, %59, %cst_95 {dimension_numbers = #tpu.dot_dimension_numbers<[1], [0], [0], [1], [0, 0, 1, 1], [], []>} : vector<2x16xf32>, vector<16x16xf32>, vector<2x16xf32> -> vector<2x16xf32>
    %389 = arith.addf %125, %388 : vector<2x16xf32>
    %390 = math.tanh %389 : vector<2x16xf32>
    %cst_96 = arith.constant dense<0.000000e+00> : vector<2x16xf32>
    %391 = tpu.matmul %373, %60, %cst_96 {dimension_numbers = #tpu.dot_dimension_numbers<[1], [0], [0], [1], [0, 0, 1, 1], [], []>} : vector<2x16xf32>, vector<16x16xf32>, vector<2x16xf32> -> vector<2x16xf32>
    %392 = arith.addf %132, %391 : vector<2x16xf32>
    %393 = arith.negf %392 : vector<2x16xf32>
    %394 = math.exp %393 : vector<2x16xf32>
    %cst_97 = arith.constant 1.000000e+00 : f32
    %395 = vector.broadcast %cst_97 : f32 to vector<2x16xf32>
    %396 = arith.addf %395, %394 : vector<2x16xf32>
    %397 = arith.divf %395, %396 : vector<2x16xf32>
    %398 = arith.mulf %387, %371 : vector<2x16xf32>
    %399 = arith.mulf %380, %390 : vector<2x16xf32>
    %400 = arith.addf %398, %399 : vector<2x16xf32>
    %401 = math.tanh %400 : vector<2x16xf32>
    %402 = arith.mulf %397, %401 : vector<2x16xf32>
    %cst_98 = arith.constant dense<0.000000e+00> : vector<2x16xf32>
    %403 = tpu.matmul %402, %57, %cst_98 {dimension_numbers = #tpu.dot_dimension_numbers<[1], [0], [0], [1], [0, 0, 1, 1], [], []>} : vector<2x16xf32>, vector<16x16xf32>, vector<2x16xf32> -> vector<2x16xf32>
    %404 = arith.addf %146, %403 : vector<2x16xf32>
    %405 = arith.negf %404 : vector<2x16xf32>
    %406 = math.exp %405 : vector<2x16xf32>
    %cst_99 = arith.constant 1.000000e+00 : f32
    %407 = vector.broadcast %cst_99 : f32 to vector<2x16xf32>
    %408 = arith.addf %407, %406 : vector<2x16xf32>
    %409 = arith.divf %407, %408 : vector<2x16xf32>
    %cst_100 = arith.constant dense<0.000000e+00> : vector<2x16xf32>
    %410 = tpu.matmul %402, %58, %cst_100 {dimension_numbers = #tpu.dot_dimension_numbers<[1], [0], [0], [1], [0, 0, 1, 1], [], []>} : vector<2x16xf32>, vector<16x16xf32>, vector<2x16xf32> -> vector<2x16xf32>
    %411 = arith.addf %153, %410 : vector<2x16xf32>
    %412 = arith.negf %411 : vector<2x16xf32>
    %413 = math.exp %412 : vector<2x16xf32>
    %cst_101 = arith.constant 1.000000e+00 : f32
    %414 = vector.broadcast %cst_101 : f32 to vector<2x16xf32>
    %415 = arith.addf %414, %413 : vector<2x16xf32>
    %416 = arith.divf %414, %415 : vector<2x16xf32>
    %cst_102 = arith.constant dense<0.000000e+00> : vector<2x16xf32>
    %417 = tpu.matmul %402, %59, %cst_102 {dimension_numbers = #tpu.dot_dimension_numbers<[1], [0], [0], [1], [0, 0, 1, 1], [], []>} : vector<2x16xf32>, vector<16x16xf32>, vector<2x16xf32> -> vector<2x16xf32>
    %418 = arith.addf %160, %417 : vector<2x16xf32>
    %419 = math.tanh %418 : vector<2x16xf32>
    %cst_103 = arith.constant dense<0.000000e+00> : vector<2x16xf32>
    %420 = tpu.matmul %402, %60, %cst_103 {dimension_numbers = #tpu.dot_dimension_numbers<[1], [0], [0], [1], [0, 0, 1, 1], [], []>} : vector<2x16xf32>, vector<16x16xf32>, vector<2x16xf32> -> vector<2x16xf32>
    %421 = arith.addf %167, %420 : vector<2x16xf32>
    %422 = arith.negf %421 : vector<2x16xf32>
    %423 = math.exp %422 : vector<2x16xf32>
    %cst_104 = arith.constant 1.000000e+00 : f32
    %424 = vector.broadcast %cst_104 : f32 to vector<2x16xf32>
    %425 = arith.addf %424, %423 : vector<2x16xf32>
    %426 = arith.divf %424, %425 : vector<2x16xf32>
    %427 = arith.mulf %416, %400 : vector<2x16xf32>
    %428 = arith.mulf %409, %419 : vector<2x16xf32>
    %429 = arith.addf %427, %428 : vector<2x16xf32>
    %430 = math.tanh %429 : vector<2x16xf32>
    %431 = arith.mulf %426, %430 : vector<2x16xf32>
    %cst_105 = arith.constant dense<0.000000e+00> : vector<2x16xf32>
    %432 = tpu.matmul %431, %57, %cst_105 {dimension_numbers = #tpu.dot_dimension_numbers<[1], [0], [0], [1], [0, 0, 1, 1], [], []>} : vector<2x16xf32>, vector<16x16xf32>, vector<2x16xf32> -> vector<2x16xf32>
    %433 = arith.addf %181, %432 : vector<2x16xf32>
    %434 = arith.negf %433 : vector<2x16xf32>
    %435 = math.exp %434 : vector<2x16xf32>
    %cst_106 = arith.constant 1.000000e+00 : f32
    %436 = vector.broadcast %cst_106 : f32 to vector<2x16xf32>
    %437 = arith.addf %436, %435 : vector<2x16xf32>
    %438 = arith.divf %436, %437 : vector<2x16xf32>
    %cst_107 = arith.constant dense<0.000000e+00> : vector<2x16xf32>
    %439 = tpu.matmul %431, %58, %cst_107 {dimension_numbers = #tpu.dot_dimension_numbers<[1], [0], [0], [1], [0, 0, 1, 1], [], []>} : vector<2x16xf32>, vector<16x16xf32>, vector<2x16xf32> -> vector<2x16xf32>
    %440 = arith.addf %188, %439 : vector<2x16xf32>
    %441 = arith.negf %440 : vector<2x16xf32>
    %442 = math.exp %441 : vector<2x16xf32>
    %cst_108 = arith.constant 1.000000e+00 : f32
    %443 = vector.broadcast %cst_108 : f32 to vector<2x16xf32>
    %444 = arith.addf %443, %442 : vector<2x16xf32>
    %445 = arith.divf %443, %444 : vector<2x16xf32>
    %cst_109 = arith.constant dense<0.000000e+00> : vector<2x16xf32>
    %446 = tpu.matmul %431, %59, %cst_109 {dimension_numbers = #tpu.dot_dimension_numbers<[1], [0], [0], [1], [0, 0, 1, 1], [], []>} : vector<2x16xf32>, vector<16x16xf32>, vector<2x16xf32> -> vector<2x16xf32>
    %447 = arith.addf %195, %446 : vector<2x16xf32>
    %448 = math.tanh %447 : vector<2x16xf32>
    %cst_110 = arith.constant dense<0.000000e+00> : vector<2x16xf32>
    %449 = tpu.matmul %431, %60, %cst_110 {dimension_numbers = #tpu.dot_dimension_numbers<[1], [0], [0], [1], [0, 0, 1, 1], [], []>} : vector<2x16xf32>, vector<16x16xf32>, vector<2x16xf32> -> vector<2x16xf32>
    %450 = arith.addf %202, %449 : vector<2x16xf32>
    %451 = arith.negf %450 : vector<2x16xf32>
    %452 = math.exp %451 : vector<2x16xf32>
    %cst_111 = arith.constant 1.000000e+00 : f32
    %453 = vector.broadcast %cst_111 : f32 to vector<2x16xf32>
    %454 = arith.addf %453, %452 : vector<2x16xf32>
    %455 = arith.divf %453, %454 : vector<2x16xf32>
    %456 = arith.mulf %445, %429 : vector<2x16xf32>
    %457 = arith.mulf %438, %448 : vector<2x16xf32>
    %458 = arith.addf %456, %457 : vector<2x16xf32>
    %459 = math.tanh %458 : vector<2x16xf32>
    %460 = arith.mulf %455, %459 : vector<2x16xf32>
    %cst_112 = arith.constant dense<0.000000e+00> : vector<2x16xf32>
    %461 = tpu.matmul %460, %57, %cst_112 {dimension_numbers = #tpu.dot_dimension_numbers<[1], [0], [0], [1], [0, 0, 1, 1], [], []>} : vector<2x16xf32>, vector<16x16xf32>, vector<2x16xf32> -> vector<2x16xf32>
    %462 = arith.addf %216, %461 : vector<2x16xf32>
    %463 = arith.negf %462 : vector<2x16xf32>
    %464 = math.exp %463 : vector<2x16xf32>
    %cst_113 = arith.constant 1.000000e+00 : f32
    %465 = vector.broadcast %cst_113 : f32 to vector<2x16xf32>
    %466 = arith.addf %465, %464 : vector<2x16xf32>
    %467 = arith.divf %465, %466 : vector<2x16xf32>
    %cst_114 = arith.constant dense<0.000000e+00> : vector<2x16xf32>
    %468 = tpu.matmul %460, %58, %cst_114 {dimension_numbers = #tpu.dot_dimension_numbers<[1], [0], [0], [1], [0, 0, 1, 1], [], []>} : vector<2x16xf32>, vector<16x16xf32>, vector<2x16xf32> -> vector<2x16xf32>
    %469 = arith.addf %223, %468 : vector<2x16xf32>
    %470 = arith.negf %469 : vector<2x16xf32>
    %471 = math.exp %470 : vector<2x16xf32>
    %cst_115 = arith.constant 1.000000e+00 : f32
    %472 = vector.broadcast %cst_115 : f32 to vector<2x16xf32>
    %473 = arith.addf %472, %471 : vector<2x16xf32>
    %474 = arith.divf %472, %473 : vector<2x16xf32>
    %cst_116 = arith.constant dense<0.000000e+00> : vector<2x16xf32>
    %475 = tpu.matmul %460, %59, %cst_116 {dimension_numbers = #tpu.dot_dimension_numbers<[1], [0], [0], [1], [0, 0, 1, 1], [], []>} : vector<2x16xf32>, vector<16x16xf32>, vector<2x16xf32> -> vector<2x16xf32>
    %476 = arith.addf %230, %475 : vector<2x16xf32>
    %477 = math.tanh %476 : vector<2x16xf32>
    %cst_117 = arith.constant dense<0.000000e+00> : vector<2x16xf32>
    %478 = tpu.matmul %460, %60, %cst_117 {dimension_numbers = #tpu.dot_dimension_numbers<[1], [0], [0], [1], [0, 0, 1, 1], [], []>} : vector<2x16xf32>, vector<16x16xf32>, vector<2x16xf32> -> vector<2x16xf32>
    %479 = arith.addf %237, %478 : vector<2x16xf32>
    %480 = arith.negf %479 : vector<2x16xf32>
    %481 = math.exp %480 : vector<2x16xf32>
    %cst_118 = arith.constant 1.000000e+00 : f32
    %482 = vector.broadcast %cst_118 : f32 to vector<2x16xf32>
    %483 = arith.addf %482, %481 : vector<2x16xf32>
    %484 = arith.divf %482, %483 : vector<2x16xf32>
    %485 = arith.mulf %474, %458 : vector<2x16xf32>
    %486 = arith.mulf %467, %477 : vector<2x16xf32>
    %487 = arith.addf %485, %486 : vector<2x16xf32>
    %488 = math.tanh %487 : vector<2x16xf32>
    %489 = arith.mulf %484, %488 : vector<2x16xf32>
    %cst_119 = arith.constant dense<0.000000e+00> : vector<2x16xf32>
    %490 = tpu.matmul %489, %57, %cst_119 {dimension_numbers = #tpu.dot_dimension_numbers<[1], [0], [0], [1], [0, 0, 1, 1], [], []>} : vector<2x16xf32>, vector<16x16xf32>, vector<2x16xf32> -> vector<2x16xf32>
    %491 = arith.addf %251, %490 : vector<2x16xf32>
    %492 = arith.negf %491 : vector<2x16xf32>
    %493 = math.exp %492 : vector<2x16xf32>
    %cst_120 = arith.constant 1.000000e+00 : f32
    %494 = vector.broadcast %cst_120 : f32 to vector<2x16xf32>
    %495 = arith.addf %494, %493 : vector<2x16xf32>
    %496 = arith.divf %494, %495 : vector<2x16xf32>
    %cst_121 = arith.constant dense<0.000000e+00> : vector<2x16xf32>
    %497 = tpu.matmul %489, %58, %cst_121 {dimension_numbers = #tpu.dot_dimension_numbers<[1], [0], [0], [1], [0, 0, 1, 1], [], []>} : vector<2x16xf32>, vector<16x16xf32>, vector<2x16xf32> -> vector<2x16xf32>
    %498 = arith.addf %258, %497 : vector<2x16xf32>
    %499 = arith.negf %498 : vector<2x16xf32>
    %500 = math.exp %499 : vector<2x16xf32>
    %cst_122 = arith.constant 1.000000e+00 : f32
    %501 = vector.broadcast %cst_122 : f32 to vector<2x16xf32>
    %502 = arith.addf %501, %500 : vector<2x16xf32>
    %503 = arith.divf %501, %502 : vector<2x16xf32>
    %cst_123 = arith.constant dense<0.000000e+00> : vector<2x16xf32>
    %504 = tpu.matmul %489, %59, %cst_123 {dimension_numbers = #tpu.dot_dimension_numbers<[1], [0], [0], [1], [0, 0, 1, 1], [], []>} : vector<2x16xf32>, vector<16x16xf32>, vector<2x16xf32> -> vector<2x16xf32>
    %505 = arith.addf %265, %504 : vector<2x16xf32>
    %506 = math.tanh %505 : vector<2x16xf32>
    %cst_124 = arith.constant dense<0.000000e+00> : vector<2x16xf32>
    %507 = tpu.matmul %489, %60, %cst_124 {dimension_numbers = #tpu.dot_dimension_numbers<[1], [0], [0], [1], [0, 0, 1, 1], [], []>} : vector<2x16xf32>, vector<16x16xf32>, vector<2x16xf32> -> vector<2x16xf32>
    %508 = arith.addf %272, %507 : vector<2x16xf32>
    %509 = arith.negf %508 : vector<2x16xf32>
    %510 = math.exp %509 : vector<2x16xf32>
    %cst_125 = arith.constant 1.000000e+00 : f32
    %511 = vector.broadcast %cst_125 : f32 to vector<2x16xf32>
    %512 = arith.addf %511, %510 : vector<2x16xf32>
    %513 = arith.divf %511, %512 : vector<2x16xf32>
    %514 = arith.mulf %503, %487 : vector<2x16xf32>
    %515 = arith.mulf %496, %506 : vector<2x16xf32>
    %516 = arith.addf %514, %515 : vector<2x16xf32>
    %517 = math.tanh %516 : vector<2x16xf32>
    %518 = arith.mulf %513, %517 : vector<2x16xf32>
    %cst_126 = arith.constant dense<0.000000e+00> : vector<2x16xf32>
    %519 = tpu.matmul %518, %57, %cst_126 {dimension_numbers = #tpu.dot_dimension_numbers<[1], [0], [0], [1], [0, 0, 1, 1], [], []>} : vector<2x16xf32>, vector<16x16xf32>, vector<2x16xf32> -> vector<2x16xf32>
    %520 = arith.addf %286, %519 : vector<2x16xf32>
    %521 = arith.negf %520 : vector<2x16xf32>
    %522 = math.exp %521 : vector<2x16xf32>
    %cst_127 = arith.constant 1.000000e+00 : f32
    %523 = vector.broadcast %cst_127 : f32 to vector<2x16xf32>
    %524 = arith.addf %523, %522 : vector<2x16xf32>
    %525 = arith.divf %523, %524 : vector<2x16xf32>
    %cst_128 = arith.constant dense<0.000000e+00> : vector<2x16xf32>
    %526 = tpu.matmul %518, %58, %cst_128 {dimension_numbers = #tpu.dot_dimension_numbers<[1], [0], [0], [1], [0, 0, 1, 1], [], []>} : vector<2x16xf32>, vector<16x16xf32>, vector<2x16xf32> -> vector<2x16xf32>
    %527 = arith.addf %293, %526 : vector<2x16xf32>
    %528 = arith.negf %527 : vector<2x16xf32>
    %529 = math.exp %528 : vector<2x16xf32>
    %cst_129 = arith.constant 1.000000e+00 : f32
    %530 = vector.broadcast %cst_129 : f32 to vector<2x16xf32>
    %531 = arith.addf %530, %529 : vector<2x16xf32>
    %532 = arith.divf %530, %531 : vector<2x16xf32>
    %cst_130 = arith.constant dense<0.000000e+00> : vector<2x16xf32>
    %533 = tpu.matmul %518, %59, %cst_130 {dimension_numbers = #tpu.dot_dimension_numbers<[1], [0], [0], [1], [0, 0, 1, 1], [], []>} : vector<2x16xf32>, vector<16x16xf32>, vector<2x16xf32> -> vector<2x16xf32>
    %534 = arith.addf %300, %533 : vector<2x16xf32>
    %535 = math.tanh %534 : vector<2x16xf32>
    %cst_131 = arith.constant dense<0.000000e+00> : vector<2x16xf32>
    %536 = tpu.matmul %518, %60, %cst_131 {dimension_numbers = #tpu.dot_dimension_numbers<[1], [0], [0], [1], [0, 0, 1, 1], [], []>} : vector<2x16xf32>, vector<16x16xf32>, vector<2x16xf32> -> vector<2x16xf32>
    %537 = arith.addf %307, %536 : vector<2x16xf32>
    %538 = arith.negf %537 : vector<2x16xf32>
    %539 = math.exp %538 : vector<2x16xf32>
    %cst_132 = arith.constant 1.000000e+00 : f32
    %540 = vector.broadcast %cst_132 : f32 to vector<2x16xf32>
    %541 = arith.addf %540, %539 : vector<2x16xf32>
    %542 = arith.divf %540, %541 : vector<2x16xf32>
    %543 = arith.mulf %532, %516 : vector<2x16xf32>
    %544 = arith.mulf %525, %535 : vector<2x16xf32>
    %545 = arith.addf %543, %544 : vector<2x16xf32>
    %546 = math.tanh %545 : vector<2x16xf32>
    %547 = arith.mulf %542, %546 : vector<2x16xf32>
    %cst_133 = arith.constant dense<0.000000e+00> : vector<2x16xf32>
    %548 = tpu.matmul %547, %57, %cst_133 {dimension_numbers = #tpu.dot_dimension_numbers<[1], [0], [0], [1], [0, 0, 1, 1], [], []>} : vector<2x16xf32>, vector<16x16xf32>, vector<2x16xf32> -> vector<2x16xf32>
    %549 = arith.addf %321, %548 : vector<2x16xf32>
    %550 = arith.negf %549 : vector<2x16xf32>
    %551 = math.exp %550 : vector<2x16xf32>
    %cst_134 = arith.constant 1.000000e+00 : f32
    %552 = vector.broadcast %cst_134 : f32 to vector<2x16xf32>
    %553 = arith.addf %552, %551 : vector<2x16xf32>
    %554 = arith.divf %552, %553 : vector<2x16xf32>
    %cst_135 = arith.constant dense<0.000000e+00> : vector<2x16xf32>
    %555 = tpu.matmul %547, %58, %cst_135 {dimension_numbers = #tpu.dot_dimension_numbers<[1], [0], [0], [1], [0, 0, 1, 1], [], []>} : vector<2x16xf32>, vector<16x16xf32>, vector<2x16xf32> -> vector<2x16xf32>
    %556 = arith.addf %328, %555 : vector<2x16xf32>
    %557 = arith.negf %556 : vector<2x16xf32>
    %558 = math.exp %557 : vector<2x16xf32>
    %cst_136 = arith.constant 1.000000e+00 : f32
    %559 = vector.broadcast %cst_136 : f32 to vector<2x16xf32>
    %560 = arith.addf %559, %558 : vector<2x16xf32>
    %561 = arith.divf %559, %560 : vector<2x16xf32>
    %cst_137 = arith.constant dense<0.000000e+00> : vector<2x16xf32>
    %562 = tpu.matmul %547, %59, %cst_137 {dimension_numbers = #tpu.dot_dimension_numbers<[1], [0], [0], [1], [0, 0, 1, 1], [], []>} : vector<2x16xf32>, vector<16x16xf32>, vector<2x16xf32> -> vector<2x16xf32>
    %563 = arith.addf %335, %562 : vector<2x16xf32>
    %564 = math.tanh %563 : vector<2x16xf32>
    %cst_138 = arith.constant dense<0.000000e+00> : vector<2x16xf32>
    %565 = tpu.matmul %547, %60, %cst_138 {dimension_numbers = #tpu.dot_dimension_numbers<[1], [0], [0], [1], [0, 0, 1, 1], [], []>} : vector<2x16xf32>, vector<16x16xf32>, vector<2x16xf32> -> vector<2x16xf32>
    %566 = arith.addf %342, %565 : vector<2x16xf32>
    %567 = arith.negf %566 : vector<2x16xf32>
    %568 = math.exp %567 : vector<2x16xf32>
    %cst_139 = arith.constant 1.000000e+00 : f32
    %569 = vector.broadcast %cst_139 : f32 to vector<2x16xf32>
    %570 = arith.addf %569, %568 : vector<2x16xf32>
    %571 = arith.divf %569, %570 : vector<2x16xf32>
    %572 = arith.mulf %561, %545 : vector<2x16xf32>
    %573 = arith.mulf %554, %564 : vector<2x16xf32>
    %574 = arith.addf %572, %573 : vector<2x16xf32>
    %575 = math.tanh %574 : vector<2x16xf32>
    %576 = arith.mulf %571, %575 : vector<2x16xf32>
    %c0_140 = arith.constant 0 : index
    %c0_141 = arith.constant 0 : index
    %c0_142 = arith.constant 0 : index
    %577 = vector.load %arg2[%c0_140, %c0_141, %c0_142] : memref<2x4x5xf32, #tpu.memory_space<vmem>>, vector<2x4x5xf32>
    %578 = vector.extract_strided_slice %577 {offsets = [0, 0, 0], sizes = [2, 1, 5], strides = [1, 1, 1]} : vector<2x4x5xf32> to vector<2x1x5xf32>
    %579 = vector.shape_cast %578 : vector<2x1x5xf32> to vector<2x5xf32>
    %cst_143 = arith.constant dense<0.000000e+00> : vector<2x8xf32>
    %580 = tpu.matmul %579, %40, %cst_143 {dimension_numbers = #tpu.dot_dimension_numbers<[1], [0], [0], [1], [0, 0, 1, 1], [], []>} : vector<2x5xf32>, vector<5x8xf32>, vector<2x8xf32> -> vector<2x8xf32>
    %581 = vector.broadcast %41 : vector<1x8xf32> to vector<2x8xf32>
    %582 = arith.addf %580, %581 : vector<2x8xf32>
    %583 = math.tanh %582 : vector<2x8xf32>
    %584 = vector.extract_strided_slice %577 {offsets = [0, 1, 0], sizes = [2, 1, 5], strides = [1, 1, 1]} : vector<2x4x5xf32> to vector<2x1x5xf32>
    %585 = vector.shape_cast %584 : vector<2x1x5xf32> to vector<2x5xf32>
    %cst_144 = arith.constant dense<0.000000e+00> : vector<2x8xf32>
    %586 = tpu.matmul %585, %40, %cst_144 {dimension_numbers = #tpu.dot_dimension_numbers<[1], [0], [0], [1], [0, 0, 1, 1], [], []>} : vector<2x5xf32>, vector<5x8xf32>, vector<2x8xf32> -> vector<2x8xf32>
    %587 = vector.broadcast %41 : vector<1x8xf32> to vector<2x8xf32>
    %588 = arith.addf %586, %587 : vector<2x8xf32>
    %589 = math.tanh %588 : vector<2x8xf32>
    %590 = vector.extract_strided_slice %577 {offsets = [0, 2, 0], sizes = [2, 1, 5], strides = [1, 1, 1]} : vector<2x4x5xf32> to vector<2x1x5xf32>
    %591 = vector.shape_cast %590 : vector<2x1x5xf32> to vector<2x5xf32>
    %cst_145 = arith.constant dense<0.000000e+00> : vector<2x8xf32>
    %592 = tpu.matmul %591, %40, %cst_145 {dimension_numbers = #tpu.dot_dimension_numbers<[1], [0], [0], [1], [0, 0, 1, 1], [], []>} : vector<2x5xf32>, vector<5x8xf32>, vector<2x8xf32> -> vector<2x8xf32>
    %593 = vector.broadcast %41 : vector<1x8xf32> to vector<2x8xf32>
    %594 = arith.addf %592, %593 : vector<2x8xf32>
    %595 = math.tanh %594 : vector<2x8xf32>
    %596 = vector.extract_strided_slice %577 {offsets = [0, 3, 0], sizes = [2, 1, 5], strides = [1, 1, 1]} : vector<2x4x5xf32> to vector<2x1x5xf32>
    %597 = vector.shape_cast %596 : vector<2x1x5xf32> to vector<2x5xf32>
    %cst_146 = arith.constant dense<0.000000e+00> : vector<2x8xf32>
    %598 = tpu.matmul %597, %40, %cst_146 {dimension_numbers = #tpu.dot_dimension_numbers<[1], [0], [0], [1], [0, 0, 1, 1], [], []>} : vector<2x5xf32>, vector<5x8xf32>, vector<2x8xf32> -> vector<2x8xf32>
    %599 = vector.broadcast %41 : vector<1x8xf32> to vector<2x8xf32>
    %600 = arith.addf %598, %599 : vector<2x8xf32>
    %601 = math.tanh %600 : vector<2x8xf32>
    %c0_147 = arith.constant 0 : index
    %c0_148 = arith.constant 0 : index
    %602 = vector.load %arg20[%c0_147, %c0_148] : memref<48x40xf32, #tpu.memory_space<vmem>>, vector<48x40xf32>
    %603 = vector.extract_strided_slice %602 {offsets = [0, 0], sizes = [16, 40], strides = [1, 1]} : vector<48x40xf32> to vector<16x40xf32>
    %cst_149 = arith.constant dense<0.000000e+00> : vector<2x40xf32>
    %604 = tpu.matmul %576, %603, %cst_149 {dimension_numbers = #tpu.dot_dimension_numbers<[1], [0], [0], [1], [0, 0, 1, 1], [], []>} : vector<2x16xf32>, vector<16x40xf32>, vector<2x40xf32> -> vector<2x40xf32>
    %c0_150 = arith.constant 0 : index
    %c0_151 = arith.constant 0 : index
    %605 = vector.load %arg21[%c0_150, %c0_151] : memref<1x40xf32, #tpu.memory_space<vmem>>, vector<1x40xf32>
    %606 = vector.broadcast %605 : vector<1x40xf32> to vector<2x40xf32>
    %607 = arith.addf %604, %606 : vector<2x40xf32>
    %608 = vector.extract_strided_slice %602 {offsets = [16, 0], sizes = [8, 40], strides = [1, 1]} : vector<48x40xf32> to vector<8x40xf32>
    %cst_152 = arith.constant dense<0.000000e+00> : vector<2x40xf32>
    %609 = tpu.matmul %583, %608, %cst_152 {dimension_numbers = #tpu.dot_dimension_numbers<[1], [0], [0], [1], [0, 0, 1, 1], [], []>} : vector<2x8xf32>, vector<8x40xf32>, vector<2x40xf32> -> vector<2x40xf32>
    %610 = arith.addf %607, %609 : vector<2x40xf32>
    %611 = vector.extract_strided_slice %602 {offsets = [24, 0], sizes = [8, 40], strides = [1, 1]} : vector<48x40xf32> to vector<8x40xf32>
    %cst_153 = arith.constant dense<0.000000e+00> : vector<2x40xf32>
    %612 = tpu.matmul %589, %611, %cst_153 {dimension_numbers = #tpu.dot_dimension_numbers<[1], [0], [0], [1], [0, 0, 1, 1], [], []>} : vector<2x8xf32>, vector<8x40xf32>, vector<2x40xf32> -> vector<2x40xf32>
    %613 = arith.addf %610, %612 : vector<2x40xf32>
    %614 = vector.extract_strided_slice %602 {offsets = [32, 0], sizes = [8, 40], strides = [1, 1]} : vector<48x40xf32> to vector<8x40xf32>
    %cst_154 = arith.constant dense<0.000000e+00> : vector<2x40xf32>
    %615 = tpu.matmul %595, %614, %cst_154 {dimension_numbers = #tpu.dot_dimension_numbers<[1], [0], [0], [1], [0, 0, 1, 1], [], []>} : vector<2x8xf32>, vector<8x40xf32>, vector<2x40xf32> -> vector<2x40xf32>
    %616 = arith.addf %613, %615 : vector<2x40xf32>
    %617 = vector.extract_strided_slice %602 {offsets = [40, 0], sizes = [8, 40], strides = [1, 1]} : vector<48x40xf32> to vector<8x40xf32>
    %cst_155 = arith.constant dense<0.000000e+00> : vector<2x40xf32>
    %618 = tpu.matmul %601, %617, %cst_155 {dimension_numbers = #tpu.dot_dimension_numbers<[1], [0], [0], [1], [0, 0, 1, 1], [], []>} : vector<2x8xf32>, vector<8x40xf32>, vector<2x40xf32> -> vector<2x40xf32>
    %619 = arith.addf %616, %618 : vector<2x40xf32>
    %620 = arith.negf %619 : vector<2x40xf32>
    %621 = math.exp %620 : vector<2x40xf32>
    %cst_156 = arith.constant 1.000000e+00 : f32
    %622 = vector.broadcast %cst_156 : f32 to vector<2x40xf32>
    %623 = arith.addf %622, %621 : vector<2x40xf32>
    %624 = arith.divf %622, %623 : vector<2x40xf32>
    %c0_157 = arith.constant 0 : index
    %c0_158 = arith.constant 0 : index
    %625 = vector.load %arg22[%c0_157, %c0_158] : memref<24x3xf32, #tpu.memory_space<vmem>>, vector<24x3xf32>
    %626 = vector.extract_strided_slice %625 {offsets = [0, 0], sizes = [8, 3], strides = [1, 1]} : vector<24x3xf32> to vector<8x3xf32>
    %627 = vector.extract_strided_slice %625 {offsets = [8, 0], sizes = [8, 3], strides = [1, 1]} : vector<24x3xf32> to vector<8x3xf32>
    %628 = vector.extract_strided_slice %625 {offsets = [16, 0], sizes = [8, 3], strides = [1, 1]} : vector<24x3xf32> to vector<8x3xf32>
    %629 = vector.extract_strided_slice %624 {offsets = [0, 32], sizes = [2, 8], strides = [1, 1]} : vector<2x40xf32> to vector<2x8xf32>
    %cst_159 = arith.constant dense<0.000000e+00> : vector<2x3xf32>
    %630 = tpu.matmul %629, %627, %cst_159 {dimension_numbers = #tpu.dot_dimension_numbers<[1], [0], [0], [1], [0, 0, 1, 1], [], []>} : vector<2x8xf32>, vector<8x3xf32>, vector<2x3xf32> -> vector<2x3xf32>
    %c0_160 = arith.constant 0 : index
    %c0_161 = arith.constant 0 : index
    %631 = vector.load %arg23[%c0_160, %c0_161] : memref<1x3xf32, #tpu.memory_space<vmem>>, vector<1x3xf32>
    %632 = vector.broadcast %631 : vector<1x3xf32> to vector<2x3xf32>
    %633 = arith.addf %630, %632 : vector<2x3xf32>
    %634 = vector.extract_strided_slice %624 {offsets = [0, 0], sizes = [2, 8], strides = [1, 1]} : vector<2x40xf32> to vector<2x8xf32>
    %cst_162 = arith.constant dense<0.000000e+00> : vector<2x3xf32>
    %635 = tpu.matmul %634, %626, %cst_162 {dimension_numbers = #tpu.dot_dimension_numbers<[1], [0], [0], [1], [0, 0, 1, 1], [], []>} : vector<2x8xf32>, vector<8x3xf32>, vector<2x3xf32> -> vector<2x3xf32>
    %636 = arith.addf %635, %633 : vector<2x3xf32>
    %cst_163 = arith.constant dense<0.000000e+00> : vector<2x3xf32>
    %637 = tpu.matmul %583, %628, %cst_163 {dimension_numbers = #tpu.dot_dimension_numbers<[1], [0], [0], [1], [0, 0, 1, 1], [], []>} : vector<2x8xf32>, vector<8x3xf32>, vector<2x3xf32> -> vector<2x3xf32>
    %638 = arith.addf %636, %637 : vector<2x3xf32>
    %639 = vector.extract_strided_slice %624 {offsets = [0, 8], sizes = [2, 8], strides = [1, 1]} : vector<2x40xf32> to vector<2x8xf32>
    %cst_164 = arith.constant dense<0.000000e+00> : vector<2x3xf32>
    %640 = tpu.matmul %639, %626, %cst_164 {dimension_numbers = #tpu.dot_dimension_numbers<[1], [0], [0], [1], [0, 0, 1, 1], [], []>} : vector<2x8xf32>, vector<8x3xf32>, vector<2x3xf32> -> vector<2x3xf32>
    %641 = arith.addf %640, %633 : vector<2x3xf32>
    %cst_165 = arith.constant dense<0.000000e+00> : vector<2x3xf32>
    %642 = tpu.matmul %589, %628, %cst_165 {dimension_numbers = #tpu.dot_dimension_numbers<[1], [0], [0], [1], [0, 0, 1, 1], [], []>} : vector<2x8xf32>, vector<8x3xf32>, vector<2x3xf32> -> vector<2x3xf32>
    %643 = arith.addf %641, %642 : vector<2x3xf32>
    %644 = vector.extract_strided_slice %624 {offsets = [0, 16], sizes = [2, 8], strides = [1, 1]} : vector<2x40xf32> to vector<2x8xf32>
    %cst_166 = arith.constant dense<0.000000e+00> : vector<2x3xf32>
    %645 = tpu.matmul %644, %626, %cst_166 {dimension_numbers = #tpu.dot_dimension_numbers<[1], [0], [0], [1], [0, 0, 1, 1], [], []>} : vector<2x8xf32>, vector<8x3xf32>, vector<2x3xf32> -> vector<2x3xf32>
    %646 = arith.addf %645, %633 : vector<2x3xf32>
    %cst_167 = arith.constant dense<0.000000e+00> : vector<2x3xf32>
    %647 = tpu.matmul %595, %628, %cst_167 {dimension_numbers = #tpu.dot_dimension_numbers<[1], [0], [0], [1], [0, 0, 1, 1], [], []>} : vector<2x8xf32>, vector<8x3xf32>, vector<2x3xf32> -> vector<2x3xf32>
    %648 = arith.addf %646, %647 : vector<2x3xf32>
    %649 = vector.extract_strided_slice %624 {offsets = [0, 24], sizes = [2, 8], strides = [1, 1]} : vector<2x40xf32> to vector<2x8xf32>
    %cst_168 = arith.constant dense<0.000000e+00> : vector<2x3xf32>
    %650 = tpu.matmul %649, %626, %cst_168 {dimension_numbers = #tpu.dot_dimension_numbers<[1], [0], [0], [1], [0, 0, 1, 1], [], []>} : vector<2x8xf32>, vector<8x3xf32>, vector<2x3xf32> -> vector<2x3xf32>
    %651 = arith.addf %650, %633 : vector<2x3xf32>
    %cst_169 = arith.constant dense<0.000000e+00> : vector<2x3xf32>
    %652 = tpu.matmul %601, %628, %cst_169 {dimension_numbers = #tpu.dot_dimension_numbers<[1], [0], [0], [1], [0, 0, 1, 1], [], []>} : vector<2x8xf32>, vector<8x3xf32>, vector<2x3xf32> -> vector<2x3xf32>
    %653 = arith.addf %651, %652 : vector<2x3xf32>
    %654 = tpu.concatenate %638, %643, %648, %653 in 1 : vector<2x3xf32>, vector<2x3xf32>, vector<2x3xf32>, vector<2x3xf32> -> vector<2x12xf32>
    %c0_170 = arith.constant 0 : index
    %c0_171 = arith.constant 0 : index
    %655 = vector.load %arg24[%c0_170, %c0_171] : memref<12x4xf32, #tpu.memory_space<vmem>>, vector<12x4xf32>
    %cst_172 = arith.constant dense<0.000000e+00> : vector<2x4xf32>
    %656 = tpu.matmul %654, %655, %cst_172 {dimension_numbers = #tpu.dot_dimension_numbers<[1], [0], [0], [1], [0, 0, 1, 1], [], []>} : vector<2x12xf32>, vector<12x4xf32>, vector<2x4xf32> -> vector<2x4xf32>
    %c0_173 = arith.constant 0 : index
    %c0_174 = arith.constant 0 : index
    %657 = vector.load %arg25[%c0_173, %c0_174] : memref<1x4xf32, #tpu.memory_space<vmem>>, vector<1x4xf32>
    %658 = vector.broadcast %657 : vector<1x4xf32> to vector<2x4xf32>
    %659 = arith.mulf %39, %658 : vector<2x4xf32>
    %660 = arith.addf %656, %659 : vector<2x4xf32>
    %c0_175 = arith.constant 0 : index
    %c0_176 = arith.constant 0 : index
    %661 = vector.load %arg26[%c0_175, %c0_176] : memref<1x4xf32, #tpu.memory_space<vmem>>, vector<1x4xf32>
    %662 = vector.broadcast %661 : vector<1x4xf32> to vector<2x4xf32>
    %663 = arith.addf %660, %662 : vector<2x4xf32>
    %c0_177 = arith.constant 0 : index
    %c0_178 = arith.constant 0 : index
    %664 = vector.load %arg27[%c0_177, %c0_178] : memref<4x10xf32, #tpu.memory_space<vmem>>, vector<4x10xf32>
    %cst_179 = arith.constant dense<0.000000e+00> : vector<2x10xf32>
    %665 = tpu.matmul %663, %664, %cst_179 {dimension_numbers = #tpu.dot_dimension_numbers<[1], [0], [0], [1], [0, 0, 1, 1], [], []>} : vector<2x4xf32>, vector<4x10xf32>, vector<2x10xf32> -> vector<2x10xf32>
    %c0_180 = arith.constant 0 : index
    %c0_181 = arith.constant 0 : index
    %666 = vector.load %arg28[%c0_180, %c0_181] : memref<1x10xf32, #tpu.memory_space<vmem>>, vector<1x10xf32>
    %667 = vector.broadcast %666 : vector<1x10xf32> to vector<2x10xf32>
    %668 = arith.addf %665, %667 : vector<2x10xf32>
    %cst_182 = arith.constant 0.000000e+00 : f32
    %669 = vector.broadcast %cst_182 : f32 to vector<2x10xf32>
    %670 = arith.maximumf %668, %669 : vector<2x10xf32>
    %c0_183 = arith.constant 0 : index
    %c0_184 = arith.constant 0 : index
    %671 = vector.load %arg29[%c0_183, %c0_184] : memref<1x12xf32, #tpu.memory_space<vmem>>, vector<1x12xf32>
    %672 = vector.extract_strided_slice %671 {offsets = [0, 0], sizes = [1, 10], strides = [1, 1]} : vector<1x12xf32> to vector<1x10xf32>
    %673 = vector.broadcast %672 : vector<1x10xf32> to vector<2x10xf32>
    %674 = arith.mulf %670, %673 : vector<2x10xf32>
    %cst_185 = arith.constant dense<0.000000e+00> : vector<2xf32>
    %675 = vector.multi_reduction <add>, %674, %cst_185 [1] : vector<2x10xf32> to vector<2xf32>
    %676 = vector.shape_cast %675 : vector<2xf32> to vector<2x1xf32>
    %c0_186 = arith.constant 0 : index
    %c0_187 = arith.constant 0 : index
    %677 = vector.load %arg6[%c0_186, %c0_187] : memref<2x2xf32, #tpu.memory_space<vmem>>, vector<2x2xf32>
    %678 = vector.extract_strided_slice %671 {offsets = [0, 10], sizes = [1, 2], strides = [1, 1]} : vector<1x12xf32> to vector<1x2xf32>
    %679 = vector.broadcast %678 : vector<1x2xf32> to vector<2x2xf32>
    %680 = arith.mulf %677, %679 : vector<2x2xf32>
    %cst_188 = arith.constant dense<0.000000e+00> : vector<2xf32>
    %681 = vector.multi_reduction <add>, %680, %cst_188 [1] : vector<2x2xf32> to vector<2xf32>
    %682 = vector.shape_cast %681 : vector<2xf32> to vector<2x1xf32>
    %683 = arith.addf %676, %682 : vector<2x1xf32>
    %c0_189 = arith.constant 0 : index
    %c0_190 = arith.constant 0 : index
    %684 = vector.load %arg30[%c0_189, %c0_190] : memref<1x1xf32, #tpu.memory_space<vmem>>, vector<1x1xf32>
    %685 = vector.broadcast %684 : vector<1x1xf32> to vector<2x1xf32>
    %686 = arith.addf %683, %685 : vector<2x1xf32>
    %cst_191 = arith.constant 0.000000e+00 : f32
    %687 = vector.broadcast %cst_191 : f32 to vector<2x114xf32>
    %688 = tpu.concatenate %686, %27, %654, %687 in 1 : vector<2x1xf32>, vector<2x1xf32>, vector<2x12xf32>, vector<2x114xf32> -> vector<2x128xf32>
    %c0_192 = arith.constant 0 : index
    %c0_193 = arith.constant 0 : index
    %689 = vector.load %arg31[%c0_192, %c0_193] : memref<2x128xf32, #tpu.memory_space<vmem>>, vector<2x128xf32>
    tpu.vector_store %arg31[%c0_192, %c0_193], %688 {strides = array<i32>} : memref<2x128xf32, #tpu.memory_space<vmem>>, vector<2x128xf32>,
    return
  }
}

</mosaic_0001>

<bundles_post_ra>
// kernel: end2end_v7_forward.1
= control target key start
LH: loop header
LB: loop body
LE: loop exit
PB: predicated region body
PF: predicated region fallthrough
CT: control target
= control target key end

     0   :  { %v10054_v0 = vmov 0.0   ;;  %s8892_s3 = smov 7   ;;  %vm8893_vm0 = vmmov 0   ;;  %s8894_s7 = smov 3   ;;  %v10053_v1 = vmov 0   ;;  %vm143_vm1 = vcmask 1043456   ;;  %s10052_s0 = inlined_call_operand.smem [shape: u32[32], index: -1, kind: input, shape index: {}] }
   0x1   :  { %8117 = vmatprep.subr.mxu1 %v10054_v0  ;;  %s7705_s6 = sld [smem:[%s10052_s0 + %s8892_s3]]   ;;  %8119 = vmatprep.mubr.msk.f32.mxu1 %vm8893_vm0, %v10054_v0  ;;  %s8895_s11 = smov 13   ;;  %vm139_vm2 = vcmask 31744   ;;  %vm318_vm3 = vcmask 1041408   ;;  %vm427_vm4 = vcmask 15360   ;;  %vm536_vm5 = vcmask 1044480  }
   0x2   :  { %8112 = vmatprep.subr.mxu0 %v10054_v0  ;;  %s7701_s10 = sld [smem:[%s10052_s0 + %s8894_s7]]   ;;  %8114 = vmatprep.mubr.msk.f32.mxu0 %vm8893_vm0, %v10054_v0  ;;  %s8897_s15 = smov 4   ;;  %vm531_vm6 = vcmask 1041409   ;;  %vm533_vm7 = vcmask 39936   ;;  %v8908_v25 = vmov 1   ;;  %vm314_vm8 = vcmask 408576  }
   0x3   :  { %s8959_s14 = sld [smem:[%s10052_s0 + %s8895_s11]]   ;;  %8719 = vset.pattern.permute.xlu1 %v10053_v1  ;;  %s8898_s19 = smov 5   ;;  %8720 = vset.pattern.permute.xlu0 %v8908_v25  ;;  %vm621_vm9 = vcmask 64512   ;;  %v8911_v61 = vmov 2   ;;  %vm3589_vm10 = vcmask 130048   ;;  %vm401_vm11 = vcmask 156672  }
   0x4   :  { %s7702_s18 = sld [smem:[%s10052_s0 + %s8897_s15]]   ;;  %s8899_s23 = smov 15   ;;  %vm7467_vm12 = vcmask 23552   ;;  %vm7469_vm13 = vcmask 48128   ;;  %vm7471_vm14 = vcmask 72704   ;;  %vm7483_vm15 = vcmask 97280  }
   0x5   :  { %s7703_s22 = sld [smem:[%s10052_s0 + %s8898_s19]]   ;;  %s8900_s30 = smov 17  }
   0x6   :  { %s8971_s26 = sld [smem:[%s10052_s0 + %s8899_s23]]   ;;  %s8901_s4 = smov 18  }
   0x7   :  { %v134_v2 = vld [vmem:[%s7705_s6] sm:$0xff]  ;;  %s1_s29 = sld [smem:[%s10052_s0]]   ;;  %s8902_s9 = smov 9  }
   0x8   :  { %v138_v3 = vrot.slane %v134_v2, 4  ;;  %8118 = vmatpush3.msk.msra.mxu1 %vm143_vm1, %v134_v2  ;;  %v135_v4 = vld [vmem:[%s7701_s10] sm:$0x3]  ;;  %s8980_s3 = sld [smem:[%s10052_s0 + %s8900_s30]]   ;;  %s8903_s13 = smov 96  }
   0x9   :  { %8120 = vmatmul.mubr.msk.f32.vlgmr.msra.gmra.mxu1 %vm139_vm2, %v135_v4  ;;  %8139 = vmatprep.subr.mxu1 %v10054_v0  ;;  %v413_v5 = vld [vmem:[%s8959_s14] sm:$0x7]  ;;  %s8991_s8 = sld [smem:[%s10052_s0 + %s8901_s4]]   ;;  %s8904_s15 = smov 80  }
   0xa   :  { %8113 = vmatpush3.msk.msra.mxu0 %vm143_vm1, %v138_v3  ;;  %v426_v6 = vrot.slane %v413_v5, 1  ;;  %v136_v7 = vld [vmem:[%s7702_s18] sm:$0x3]  ;;  %8141 = vmatprep.mubr.msk.f32.mxu1 %vm8893_vm0, %v10054_v0  ;;  %s9003_s12 = sld [smem:[%s10052_s0 + %s8902_s9]]   ;;  %s8905_s16 = smov 112  }
   0xb   :  { %8115 = vmatmul.mubr.msk.f32.vlgmr.msra.gmra.mxu0 %vm139_vm2, %v136_v7  ;;  %v424_v8 = vld [vmem:[%s7703_s22] sm:$0x3]  ;;  %8122 = vmatprep.subr.mxu0 %v10054_v0  ;;  %s8906_s17 = smov 1   ;;  %s8907_s21 = smov 19  }
   0xc   :  { %8140 = vmatpush3.msk.msra.mxu1 %vm318_vm3, %v426_v6  ;;  %v8997_v9 = vld [vmem:[%s8971_s26] sm:$0x1f]  ;;  %8136 = vmatprep.mubr.msk.f32.mxu0 %vm8893_vm0, %v10054_v0  ;;  %s7699_s20 = sld [smem:[%s10052_s0 + %s8906_s17]]   ;;  %s8909_s25 = smov 8  }
   0xd   :  { %8142 = vmatmul.mubr.msk.f32.vlgmr.msra.gmra.mxu1 %vm427_vm4, %v424_v8  ;;  %8144 = vmatprep.subr.mxu1 %v10054_v0  ;;  %v9009_v10 = vld [vmem:[%s1_s29] sm:$0xff]  ;;  %v9011_v11 = vld [vmem:[%s1_s29 + $0x8] sm:$0xff]  ;;  %s9078_s24 = sld [smem:[%s10052_s0 + %s8907_s21]]   ;;  %s8910_s30 = smov 16  }
   0xe   :  { %8145 = vmatpush3.msk.msra.mxu1 %vm536_vm5, %v8997_v9  ;;  %8146 = vmatprep.mubr.msk.f32.mxu1 %vm8893_vm0, %v10054_v0  ;;  %v530_v12 = vrot.slane %v9011_v11, 7  ;;  %v9019_v13 = vld [vmem:[%s8980_s3] sm:$0xff]  ;;  %v9094_v31 = vld [vmem:[%s8980_s3 + $0x8] ss:$0 sm:$0xff]  ;;  %s7706_s29 = sld [smem:[%s10052_s0 + %s8909_s25]]   ;;  %v944_v49 = vrot.slane %v9009_v10, 1  ;;  %s8917_s4 = smov 2  }
   0xf   :  { %784 = vrot.lane.b32.xlu0 %v9019_v13, %s8903_s13  ;;  %864 = vrot.lane.b32.xlu1 %v9019_v13, %s8904_s15  ;;  %v9028_v15 = vld [vmem:[%s8991_s8 + $0x8] sm:$0xff]  ;;  %v9051_v18 = vld [vmem:[%s8991_s8] sm:$0xff]  ;;  %s9116_s3 = sld [smem:[%s10052_s0 + %s8910_s30]]   ;;  %s8920_s21 = smov 21  }
  0x10   :  { %v532_v14 = vsel %vm531_vm6, %v530_v12, %v9009_v10  ;;  %8149 = vmatprep.subr.mxu1 %v10054_v0  ;;  %v306_v16 = vld [vmem:[%s9003_s12 + $0x30] sm:$0x3]  ;;  %v305_v17 = vld [vmem:[%s9003_s12 + $0x28] sm:$0xff]  ;;  %v304_v20 = vld [vmem:[%s9003_s12 + $0x20] sm:$0xff]  ;;  %v945_v52 = vsel %vm531_vm6, %v9011_v11, %v944_v49  ;;  %s8921_s25 = smov 120   ;;  %s8922_s27 = smov 104  }
  0x11   :  { %8147 = vmatmul.mubr.msk.f32.vlgmr.msra.gmra.mxu1 %vm533_vm7, %v532_v14  ;;  %8123 = vmatpush3.msk.msra.mxu0 %vm318_vm3, %v306_v16  ;;  %v303_v21 = vld [vmem:[%s9003_s12 + $0x18] sm:$0xff]  ;;  %v302_v22 = vld [vmem:[%s9003_s12 + $0x10] sm:$0xff]  ;;  %v301_v23 = vld [vmem:[%s9003_s12 + $0x8] sm:$0xff]  ;;  %s8924_s30 = smov 24   ;;  %s8925_s5 = smov 12   ;;  %vm7692_vm3 = vcmask 113664  }
  0x12   :  { %8150 = vmatpush3.msra.mxu1 %v9019_v13  ;;  %8151 = vmatprep.mubr.msk.f32.mxu1 %vm8893_vm0, %v10054_v0  ;;  %v9058_v19 = vld [vmem:[%s7699_s20] sm:$0x3]  ;;  %s8926_s10 = smov 6   ;;  %s8927_s11 = smov 10  }
  0x13   :  { %703 = vrot.lane.b32.xlu0 %v9019_v13, %s8905_s16  ;;  %3674 = vrot.lane.b32.xlu1 %v9028_v15, %s8905_s16  ;;  %v300_v24 = vld [vmem:[%s9003_s12] sm:$0xff]  ;;  %s7708_s18 = sld [smem:[%s10052_s0 + %s8927_s11]]   ;;  %s8932_s2 = smov 14  }
  0x14   :  { %8154 = vmatprep.subr.mxu1 %v10054_v0  ;;  %8124 = vmatprep.subr.mxu0 %v10054_v0  ;;  %v9081_v26 = vld [vmem:[%s9078_s24] ss:$0 sm:$0xff]  ;;  %s7704_s1 = sld [smem:[%s10052_s0 + %s8926_s10]]  }
  0x15   :  { %8125 = vmatpush3.msra.mxu0 %v305_v17  ;;  %v7734_v36 = vld [vmem:[%s7706_s29] ss:$0 sm:$0xff]  ;;  %s7712_s6 = sld [smem:[%s10052_s0 + %s8932_s2]]  }
  0x16   :  { %8126 = vmatprep.subr.mxu0 %v10054_v0  ;;  %v9121_v43 = vld [vmem:[%s9116_s3] ss:$0 sm:$0xff] }
  0x17   :  { %3757 = vrot.lane.b32.xlu1 %v9028_v15, %s8903_s13  ;;  %3672 = vrot.lane.b32.xlu0 %v9051_v18, %s8905_s16 }
  0x18   :  { %8127 = vmatpush3.msra.mxu0 %v304_v20 }
  0x19   :  { %8128 = vmatprep.subr.mxu0 %v10054_v0 }
  0x1a   :  { %8129 = vmatpush3.msra.mxu0 %v303_v21  ;;  %v1321_v21 = vrot.slane %v9009_v10, 2 }
  0x1b   :  { %3755 = vrot.lane.b32.xlu1 %v9051_v18, %s8903_s13  ;;  %3835 = vrot.lane.b32.xlu0 %v9028_v15, %s8904_s15 }
  0x1c   :  { %8130 = vmatprep.subr.mxu0 %v10054_v0 }
  0x1d   :  { %8131 = vmatpush3.msra.mxu0 %v302_v22  ;;  %v1322_v22 = vrot.slane %v9011_v11, 1 }
  0x1e   :  { %8132 = vmatprep.subr.mxu0 %v10054_v0 }
  0x1f   :  { %613 = vperm.xlu1 %8719, %v9058_v19   ;;  %3833 = vrot.lane.b32.xlu0 %v9051_v18, %s8904_s15 }
  0x20   :  { %8133 = vmatpush3.msra.mxu0 %v301_v23  ;;  %v1323_v23 = vsel %vm531_vm6, %v1322_v22, %v1321_v21 }
  0x21   :  { %8134 = vmatprep.subr.mxu0 %v10054_v0 }
  0x22   :  { %8135 = vmatpush3.msra.mxu0 %v300_v24 }
  0x23   :  { %8159 = vmatprep.subr.mxu0 %v10054_v0  ;;  %780 = vrot.lane.b32.xlu1 %v9081_v26, %s8905_s16 }
  0x24   :  { %8721 = vset.pattern.permute.xlu1 %v8911_v61 }
  0x81   :  { %v9085_v27 = vpop.permute.xlu1 %864  ;;  %v9123_v45 = vpop.permute.xlu0 %784 }
  0x85   :  { %v9087_v28 = vpop.permute.xlu1 %3674  ;;  %v9131_v50 = vpop.permute.xlu0 %703 }
  0x89   :  { %v9089_v29 = vpop.permute.xlu1 %3757  ;;  %v9161_v53 = vpop.permute.xlu0 %3672 }
  0x8d   :  { %v9091_v30 = vpop.permute.xlu1 %3755  ;;  %v9163_v54 = vpop.permute.xlu0 %3835 }
  0x91   :  { %v9165_v55 = vpop.permute.xlu0 %3833 }
  0x9a   :  { %v614_v32 = vpop.permute.xlu1 %613 }
  0x9b   :  { %v9097_v33 = vmul.f32 %v9094_v31, %v614_v32 }
  0x9d   :  { %707 = vrot.lane.b32.xlu0 %v9097_v33, %s8905_s16  ;;  %867 = vrot.lane.b32.xlu1 %v9097_v33, %s8904_s15 }
  0x9e   :  { %v9223_v24 = vpop.permute.xlu1 %780 }
  0xa1   :  { %787 = vrot.lane.b32.xlu0 %v9097_v33, %s8903_s13  ;;  %940 = vrot.lane.b32.xlu1 %v9081_v26, %s8904_s15 }
  0xa5   :  { %860 = vrot.lane.b32.xlu0 %v9081_v26, %s8903_s13 }
  0xa9   :  { %1020 = vperm.xlu0 %8720, %v9058_v19  }
  0xc9   :  { %v287_v34 = vpop.f32.mrf.mxu1 }
  0xcb   :  { %v212_v35 = vpop.f32.mrf.mxu0  ;;  %v8121_v37 = vpop.f32.mrf.mxu1 }
  0xcc   :  { %v288_v38 = vadd.f32 %v287_v34, %v212_v35 }
  0xcd   :  { %v9118_v39 = vpop.f32.mrf.mxu1  ;;  %v8116_v40 = vpop.f32.mrf.mxu0 }
  0xce   :  { %10058 = vst [vmem:[#allocation4_spill] sm:$0xff] %v9118_v39  ;;  %v298_v41 = vadd.f32 %v7734_v36, %v288_v38  ;;  %v8912_v38 = vmov 3  }
  0xcf   :  { %v8143_v42 = vpop.f32.mrf.mxu1 }
  0xd0   :  { %v299_v44 = vmax.f32 %v298_v41, 0.0 }
  0xd1   :  { %v606_v46 = vpop.f32.mrf.mxu1 }
  0xd2   :  { %v607_v47 = vadd.f32 %v9121_v43, %v606_v46  ;;  %8137 = vmatmul.mubr.msk.f32.vlgmr.msra.gmra.mxu0 %vm314_vm8, %v299_v44 }
  0xd3   :  { %v8148_v48 = vpop.f32.mrf.mxu1  ;;  %8160 = vmatpush3.msra.mxu0 %v9123_v45  ;;  %8161 = vmatprep.mubr.msk.f32.mxu0 %vm8893_vm0, %v10054_v0 }
  0xd4   :  { %8729 = vtanh.f32 %v607_v47  ;;  %8169 = vmatprep.subr.mxu0 %v10054_v0 }
  0xe1   :  { %v8730_v51 = vpop.eup %8729 }
  0xe2   :  { %8152 = vmatmul.mubr.msk.f32.vlgmr.msra.gmra.mxu1 %vm621_vm9, %v8730_v51  ;;  %8162 = vmatmul.mubr.msk.f32.vlgmr.msra.gmra.mxu0 %vm621_vm9, %v8730_v51 }
  0xe3   :  { %8170 = vmatpush3.msk.msra.mxu0 %vm536_vm5, %v8997_v9  ;;  %8155 = vmatpush3.msra.mxu1 %v9131_v50 }
  0xe4   :  { %8156 = vmatprep.mubr.msk.f32.mxu1 %vm8893_vm0, %v10054_v0  ;;  %8171 = vmatprep.mubr.msk.f32.mxu0 %vm8893_vm0, %v10054_v0 }
  0xe5   :  { %8164 = vmatprep.subr.mxu1 %v10054_v0  ;;  %8179 = vmatprep.subr.mxu0 %v10054_v0 }
  0xe6   :  { %8157 = vmatmul.mubr.msk.f32.vlgmr.msra.gmra.mxu1 %vm621_vm9, %v8730_v51  ;;  %8172 = vmatmul.mubr.msk.f32.vlgmr.msra.gmra.mxu0 %vm533_vm7, %v945_v52 }
  0xe7   :  { %8165 = vmatpush3.msra.mxu1 %v9085_v27  ;;  %8166 = vmatprep.mubr.msk.f32.mxu1 %vm8893_vm0, %v10054_v0 }
  0xe8   :  { %8180 = vmatpush3.msra.mxu0 %v9131_v50  ;;  %8174 = vmatprep.subr.mxu1 %v10054_v0 }
  0xe9   :  { %8181 = vmatprep.mubr.msk.f32.mxu0 %vm8893_vm0, %v10054_v0  ;;  %8189 = vmatprep.subr.mxu0 %v10054_v0 }
  0xea   :  { %8167 = vmatmul.mubr.msk.f32.vlgmr.msra.gmra.mxu1 %vm621_vm9, %v8730_v51 }
  0xeb   :  { %8175 = vmatpush3.msra.mxu1 %v9019_v13  ;;  %8176 = vmatprep.mubr.msk.f32.mxu1 %vm8893_vm0, %v10054_v0 }
  0xec   :  { %8184 = vmatprep.subr.mxu1 %v10054_v0 }
 0x10f   :  { %v9167_v56 = vpop.permute.xlu0 %707  ;;  %v9225_v25 = vpop.permute.xlu1 %867 }
 0x113   :  { %v9169_v57 = vpop.permute.xlu0 %787  ;;  %v9227_v32 = vpop.permute.xlu1 %940 }
 0x117   :  { %v9171_v58 = vpop.permute.xlu0 %860 }
 0x124   :  { %v1021_v59 = vpop.permute.xlu0 %1020 }
 0x125   :  { %v9174_v60 = vmul.f32 %v9094_v31, %v1021_v59 }
 0x127   :  { %1099 = vrot.lane.b32.xlu1 %v9174_v60, %s8905_s16  ;;  %1247 = vrot.lane.b32.xlu0 %v9174_v60, %s8904_s15 }
 0x12b   :  { %1173 = vrot.lane.b32.xlu1 %v9174_v60, %s8903_s13 }
 0x12f   :  { %1398 = vperm.xlu1 %8721, %v9058_v19  }
 0x133   :  { %8722 = vset.pattern.permute.xlu1 %v8912_v38 }
 0x192   :  { %v9183_v62 = vpop.f32.mrf.mxu0 }
 0x193   :  { %10059 = vst [vmem:[#allocation5_spill] sm:$0xff] %v9183_v62 }
 0x194   :  { %v8138_v63 = vpop.f32.mrf.mxu0 }
 0x195   :  { %v1699_v63 = vrot.slane %v9009_v10, 3 }
 0x199   :  { %v9229_v34 = vpop.permute.xlu1 %1099 }
 0x19d   :  { %v9231_v35 = vpop.permute.xlu1 %1173 }
 0x1a2   :  { %v9185_v2 = vpop.f32.mrf.mxu1  ;;  %v9187_v3 = vpop.f32.mrf.mxu0 }
 0x1a4   :  { %v8153_v4 = vpop.f32.mrf.mxu1  ;;  %v8163_v5 = vpop.f32.mrf.mxu0 }
 0x1a5   :  { %v1700_v4 = vrot.slane %v9011_v11, 2 }
 0x1a6   :  { %v9189_v6 = vpop.f32.mrf.mxu1  ;;  %v1014_v7 = vpop.f32.mrf.mxu0 }
 0x1a7   :  { %v1015_v8 = vadd.f32 %v9121_v43, %v1014_v7  ;;  %v1701_v5 = vsel %vm531_vm6, %v1700_v4, %v1699_v63 }
 0x1a8   :  { %v8158_v12 = vpop.f32.mrf.mxu1  ;;  %v8173_v14 = vpop.f32.mrf.mxu0 }
 0x1a9   :  { %8731 = vtanh.f32 %v1015_v8  ;;  %v8913_v14 = vmov 4  }
 0x1aa   :  { %v9192_v16 = vpop.f32.mrf.mxu1  ;;  %v1399_v36 = vpop.permute.xlu1 %1398 }
 0x1ab   :  { %v9234_v37 = vmul.f32 %v9094_v31, %v1399_v36 }
 0x1ac   :  { %v8168_v17 = vpop.f32.mrf.mxu1 }
 0x1ad   :  { %1477 = vrot.lane.b32.xlu0 %v9234_v37, %s8905_s16  ;;  %1551 = vrot.lane.b32.xlu1 %v9234_v37, %s8903_s13 }
 0x1b1   :  { %1625 = vrot.lane.b32.xlu0 %v9234_v37, %s8904_s15  ;;  %1776 = vperm.xlu1 %8722, %v9058_v19  }
 0x1b5   :  { %8723 = vset.pattern.permute.xlu1 %v8913_v14 }
 0x1b6   :  { %v8732_v20 = vpop.eup %8731 }
 0x1b7   :  { %8177 = vmatmul.mubr.msk.f32.vlgmr.msra.gmra.mxu1 %vm621_vm9, %v8732_v20  ;;  %8182 = vmatmul.mubr.msk.f32.vlgmr.msra.gmra.mxu0 %vm621_vm9, %v8732_v20 }
 0x1b8   :  { %8185 = vmatpush3.msra.mxu1 %v9123_v45  ;;  %8190 = vmatpush3.msra.mxu0 %v9085_v27 }
 0x1b9   :  { %8186 = vmatprep.mubr.msk.f32.mxu1 %vm8893_vm0, %v10054_v0  ;;  %8191 = vmatprep.mubr.msk.f32.mxu0 %vm8893_vm0, %v10054_v0 }
 0x1ba   :  { %8194 = vmatprep.subr.mxu1 %v10054_v0  ;;  %8199 = vmatprep.subr.mxu0 %v10054_v0 }
 0x1bb   :  { %8187 = vmatmul.mubr.msk.f32.vlgmr.msra.gmra.mxu1 %vm621_vm9, %v8732_v20  ;;  %8192 = vmatmul.mubr.msk.f32.vlgmr.msra.gmra.mxu0 %vm621_vm9, %v8732_v20 }
 0x1bc   :  { %8195 = vmatpush3.msk.msra.mxu1 %vm536_vm5, %v8997_v9  ;;  %8196 = vmatprep.mubr.msk.f32.mxu1 %vm8893_vm0, %v10054_v0 }
 0x1bd   :  { %8204 = vmatprep.subr.mxu1 %v10054_v0  ;;  %8200 = vmatpush3.msra.mxu0 %v9019_v13 }
 0x1be   :  { %8201 = vmatprep.mubr.msk.f32.mxu0 %vm8893_vm0, %v10054_v0  ;;  %8209 = vmatprep.subr.mxu0 %v10054_v0 }
 0x1bf   :  { %8197 = vmatmul.mubr.msk.f32.vlgmr.msra.gmra.mxu1 %vm533_vm7, %v1323_v23 }
 0x1c0   :  { %8205 = vmatpush3.msra.mxu1 %v9131_v50  ;;  %8206 = vmatprep.mubr.msk.f32.mxu1 %vm8893_vm0, %v10054_v0 }
 0x1c1   :  { %8214 = vmatprep.subr.mxu1 %v10054_v0 }
 0x21f   :  { %v9281_v7 = vpop.permute.xlu1 %1551 }
 0x22c   :  { %v1777_v8 = vpop.permute.xlu1 %1776 }
 0x22d   :  { %v9284_v12 = vmul.f32 %v9094_v31, %v1777_v8  ;;  %v8914_v8 = vmov 5  }
 0x22f   :  { %1855 = vrot.lane.b32.xlu0 %v9284_v12, %s8905_s16  ;;  %1929 = vrot.lane.b32.xlu1 %v9284_v12, %s8903_s13 }
 0x233   :  { %2003 = vrot.lane.b32.xlu0 %v9284_v12, %s8904_s15  ;;  %2154 = vperm.xlu1 %8723, %v9058_v19  }
 0x237   :  { %8724 = vset.pattern.permute.xlu1 %v8914_v8  ;;  %v2456_v8 = vrot.slane %v9011_v11, 4 }
 0x277   :  { %v9243_v40 = vpop.f32.mrf.mxu1  ;;  %v9245_v41 = vpop.f32.mrf.mxu0 }
 0x279   :  { %v8178_v42 = vpop.f32.mrf.mxu1  ;;  %v8183_v44 = vpop.f32.mrf.mxu0 }
 0x27b   :  { %v9247_v46 = vpop.f32.mrf.mxu1  ;;  %v9249_v47 = vpop.f32.mrf.mxu0 }
 0x27d   :  { %v8188_v48 = vpop.f32.mrf.mxu1  ;;  %v8193_v49 = vpop.f32.mrf.mxu0 }
 0x27f   :  { %v1392_v51 = vpop.f32.mrf.mxu1 }
 0x280   :  { %v1393_v52 = vadd.f32 %v9121_v43, %v1392_v51 }
 0x281   :  { %v8198_v59 = vpop.f32.mrf.mxu1 }
 0x282   :  { %8733 = vtanh.f32 %v1393_v52  ;;  %v2077_v52 = vrot.slane %v9009_v10, 4  ;;  %v2078_v59 = vrot.slane %v9011_v11, 3 }
 0x28f   :  { %v8734_v61 = vpop.eup %8733 }
 0x290   :  { %8202 = vmatmul.mubr.msk.f32.vlgmr.msra.gmra.mxu0 %vm621_vm9, %v8734_v61  ;;  %8207 = vmatmul.mubr.msk.f32.vlgmr.msra.gmra.mxu1 %vm621_vm9, %v8734_v61 }
 0x291   :  { %8210 = vmatpush3.msra.mxu0 %v9123_v45  ;;  %8215 = vmatpush3.msra.mxu1 %v9085_v27 }
 0x292   :  { %8211 = vmatprep.mubr.msk.f32.mxu0 %vm8893_vm0, %v10054_v0  ;;  %8216 = vmatprep.mubr.msk.f32.mxu1 %vm8893_vm0, %v10054_v0 }
 0x293   :  { %8219 = vmatprep.subr.mxu0 %v10054_v0  ;;  %8224 = vmatprep.subr.mxu1 %v10054_v0 }
 0x294   :  { %8212 = vmatmul.mubr.msk.f32.vlgmr.msra.gmra.mxu0 %vm621_vm9, %v8734_v61  ;;  %8217 = vmatmul.mubr.msk.f32.vlgmr.msra.gmra.mxu1 %vm621_vm9, %v8734_v61  ;;  %v2079_v61 = vsel %vm531_vm6, %v2078_v59, %v2077_v52 }
 0x295   :  { %8220 = vmatpush3.msk.msra.mxu0 %vm536_vm5, %v8997_v9  ;;  %8221 = vmatprep.mubr.msk.f32.mxu0 %vm8893_vm0, %v10054_v0 }
 0x296   :  { %8229 = vmatprep.subr.mxu0 %v10054_v0  ;;  %8225 = vmatpush3.msra.mxu1 %v9019_v13 }
 0x297   :  { %8226 = vmatprep.mubr.msk.f32.mxu1 %vm8893_vm0, %v10054_v0  ;;  %8234 = vmatprep.subr.mxu1 %v10054_v0 }
 0x298   :  { %8222 = vmatmul.mubr.msk.f32.vlgmr.msra.gmra.mxu0 %vm533_vm7, %v1701_v5 }
 0x299   :  { %8230 = vmatpush3.msra.mxu0 %v9131_v50  ;;  %8231 = vmatprep.mubr.msk.f32.mxu0 %vm8893_vm0, %v10054_v0 }
 0x29a   :  { %8239 = vmatprep.subr.mxu0 %v10054_v0 }
 0x2a1   :  { %v9331_v63 = vpop.permute.xlu1 %1929 }
 0x2ae   :  { %v2155_v4 = vpop.permute.xlu1 %2154 }
 0x2af   :  { %v9334_v5 = vmul.f32 %v9094_v31, %v2155_v4  ;;  %v2455_v4 = vrot.slane %v9009_v10, 5 }
 0x2b1   :  { %2233 = vrot.lane.b32.xlu0 %v9334_v5, %s8905_s16  ;;  %2307 = vrot.lane.b32.xlu1 %v9334_v5, %s8903_s13 }
 0x2b5   :  { %2381 = vrot.lane.b32.xlu0 %v9334_v5, %s8904_s15  ;;  %2532 = vperm.xlu1 %8724, %v9058_v19  }
 0x350   :  { %v9293_v17 = vpop.f32.mrf.mxu0  ;;  %v9295_v20 = vpop.f32.mrf.mxu1 }
 0x352   :  { %v8203_v21 = vpop.f32.mrf.mxu0  ;;  %v8208_v22 = vpop.f32.mrf.mxu1 }
 0x354   :  { %v9297_v23 = vpop.f32.mrf.mxu0  ;;  %v9299_v36 = vpop.f32.mrf.mxu1 }
 0x356   :  { %v8213_v38 = vpop.f32.mrf.mxu0  ;;  %v8218_v42 = vpop.f32.mrf.mxu1 }
 0x358   :  { %v1770_v44 = vpop.f32.mrf.mxu0 }
 0x359   :  { %v1771_v48 = vadd.f32 %v9121_v43, %v1770_v44 }
 0x35a   :  { %v8223_v49 = vpop.f32.mrf.mxu0 }
 0x35b   :  { %8735 = vtanh.f32 %v1771_v48 }
 0x368   :  { %v8736_v51 = vpop.eup %8735 }
 0x369   :  { %8227 = vmatmul.mubr.msk.f32.vlgmr.msra.gmra.mxu1 %vm621_vm9, %v8736_v51  ;;  %8232 = vmatmul.mubr.msk.f32.vlgmr.msra.gmra.mxu0 %vm621_vm9, %v8736_v51 }
 0x36a   :  { %8235 = vmatpush3.msra.mxu1 %v9123_v45  ;;  %8240 = vmatpush3.msra.mxu0 %v9085_v27 }
 0x36b   :  { %8236 = vmatprep.mubr.msk.f32.mxu1 %vm8893_vm0, %v10054_v0  ;;  %8241 = vmatprep.mubr.msk.f32.mxu0 %vm8893_vm0, %v10054_v0 }
 0x36c   :  { %8244 = vmatprep.subr.mxu1 %v10054_v0  ;;  %8249 = vmatprep.subr.mxu0 %v10054_v0 }
 0x36d   :  { %8237 = vmatmul.mubr.msk.f32.vlgmr.msra.gmra.mxu1 %vm621_vm9, %v8736_v51  ;;  %8242 = vmatmul.mubr.msk.f32.vlgmr.msra.gmra.mxu0 %vm621_vm9, %v8736_v51 }
 0x36e   :  { %8245 = vmatpush3.msk.msra.mxu1 %vm536_vm5, %v8997_v9  ;;  %8246 = vmatprep.mubr.msk.f32.mxu1 %vm8893_vm0, %v10054_v0 }
 0x36f   :  { %8254 = vmatprep.subr.mxu1 %v10054_v0  ;;  %8250 = vmatpush3.msra.mxu0 %v9019_v13 }
 0x370   :  { %8251 = vmatprep.mubr.msk.f32.mxu0 %vm8893_vm0, %v10054_v0  ;;  %8259 = vmatprep.subr.mxu0 %v10054_v0 }
 0x371   :  { %8247 = vmatmul.mubr.msk.f32.vlgmr.msra.gmra.mxu1 %vm533_vm7, %v2079_v61 }
 0x372   :  { %8255 = vmatpush3.msra.mxu1 %v9131_v50  ;;  %8256 = vmatprep.mubr.msk.f32.mxu1 %vm8893_vm0, %v10054_v0 }
 0x373   :  { %8264 = vmatprep.subr.mxu1 %v10054_v0 }
 0x429   :  { %v9343_v14 = vpop.f32.mrf.mxu1  ;;  %v9345_v21 = vpop.f32.mrf.mxu0 }
 0x42b   :  { %v8228_v22 = vpop.f32.mrf.mxu1  ;;  %v8233_v38 = vpop.f32.mrf.mxu0 }
 0x42c   :  { %v2457_v22 = vsel %vm531_vm6, %v2456_v8, %v2455_v4  ;;  %v9381_v38 = vpop.permute.xlu1 %2307 }
 0x42d   :  { %v9347_v42 = vpop.f32.mrf.mxu1  ;;  %v9349_v44 = vpop.f32.mrf.mxu0  ;;  %10060 = vst [vmem:[#allocation6_spill] sm:$0xff] %v9381_v38 }
 0x42f   :  { %v8238_v48 = vpop.f32.mrf.mxu1  ;;  %v8243_v49 = vpop.f32.mrf.mxu0 }
 0x430   :  { %v2533_v48 = vpop.permute.xlu1 %2532 }
 0x431   :  { %v2148_v51 = vpop.f32.mrf.mxu1  ;;  %v9384_v49 = vmul.f32 %v9094_v31, %v2533_v48 }
 0x432   :  { %v2149_v52 = vadd.f32 %v9121_v43, %v2148_v51  ;;  %v8915_v51 = vmov 6  }
 0x433   :  { %v8248_v59 = vpop.f32.mrf.mxu1  ;;  %10061 = vst [vmem:[#allocation7_spill] sm:$0xff] %v9384_v49  ;;  %8725 = vset.pattern.permute.xlu1 %v8915_v51  ;;  %2611 = vrot.lane.b32.xlu0 %v9384_v49, %s8905_s16 }
 0x434   :  { %8737 = vtanh.f32 %v2149_v52  ;;  %2685 = vrot.lane.b32.xlu1 %v9384_v49, %s8903_s13 }
 0x437   :  { %2759 = vrot.lane.b32.xlu0 %v9384_v49, %s8904_s15 }
 0x438   :  { %2910 = vperm.xlu1 %8725, %v9058_v19  }
 0x441   :  { %v8738_v61 = vpop.eup %8737 }
 0x442   :  { %8252 = vmatmul.mubr.msk.f32.vlgmr.msra.gmra.mxu0 %vm621_vm9, %v8738_v61  ;;  %8257 = vmatmul.mubr.msk.f32.vlgmr.msra.gmra.mxu1 %vm621_vm9, %v8738_v61 }
 0x443   :  { %8260 = vmatpush3.msra.mxu0 %v9123_v45  ;;  %8265 = vmatpush3.msra.mxu1 %v9085_v27 }
 0x444   :  { %8261 = vmatprep.mubr.msk.f32.mxu0 %vm8893_vm0, %v10054_v0  ;;  %8266 = vmatprep.mubr.msk.f32.mxu1 %vm8893_vm0, %v10054_v0 }
 0x445   :  { %8269 = vmatprep.subr.mxu0 %v10054_v0  ;;  %8274 = vmatprep.subr.mxu1 %v10054_v0 }
 0x446   :  { %8262 = vmatmul.mubr.msk.f32.vlgmr.msra.gmra.mxu0 %vm621_vm9, %v8738_v61  ;;  %8267 = vmatmul.mubr.msk.f32.vlgmr.msra.gmra.mxu1 %vm621_vm9, %v8738_v61 }
 0x447   :  { %8270 = vmatpush3.msk.msra.mxu0 %vm536_vm5, %v8997_v9  ;;  %8271 = vmatprep.mubr.msk.f32.mxu0 %vm8893_vm0, %v10054_v0 }
 0x448   :  { %8279 = vmatprep.subr.mxu0 %v10054_v0  ;;  %8275 = vmatpush3.msra.mxu1 %v9019_v13 }
 0x449   :  { %8276 = vmatprep.mubr.msk.f32.mxu1 %vm8893_vm0, %v10054_v0  ;;  %8284 = vmatprep.subr.mxu1 %v10054_v0 }
 0x44a   :  { %8272 = vmatmul.mubr.msk.f32.vlgmr.msra.gmra.mxu0 %vm533_vm7, %v2457_v22 }
 0x44b   :  { %8280 = vmatpush3.msra.mxu0 %v9131_v50  ;;  %8281 = vmatprep.mubr.msk.f32.mxu0 %vm8893_vm0, %v10054_v0 }
 0x44c   :  { %8289 = vmatprep.subr.mxu0 %v10054_v0 }
 0x502   :  { %v9393_v52 = vpop.f32.mrf.mxu0  ;;  %v9395_v59 = vpop.f32.mrf.mxu1 }
 0x503   :  { %10062 = vst [vmem:[#allocation8_spill] sm:$0xff] %v9395_v59 }
 0x504   :  { %v8253_v61 = vpop.f32.mrf.mxu0  ;;  %v8258_v4 = vpop.f32.mrf.mxu1 }
 0x505   :  { %v2833_v61 = vrot.slane %v9009_v10, 6  ;;  %v2834_v4 = vrot.slane %v9011_v11, 5 }
 0x506   :  { %v9397_v8 = vpop.f32.mrf.mxu0  ;;  %v9399_v22 = vpop.f32.mrf.mxu1 }
 0x507   :  { %10063 = vst [vmem:[#allocation9_spill] sm:$0xff] %v9397_v8  ;;  %10064 = vst [vmem:[#allocation10_spill] sm:$0xff] %v9399_v22 }
 0x508   :  { %v8263_v48 = vpop.f32.mrf.mxu0  ;;  %v8268_v51 = vpop.f32.mrf.mxu1 }
 0x509   :  { %v10065_v48 = vmov 0.0   ;;  %v8916_v51 = vmov 7  }
 0x50a   :  { %v2526_v1 = vpop.f32.mrf.mxu0  ;;  %8726 = vset.pattern.permute.xlu1 %v8916_v51  ;;  %8728 = vset.pattern.permute.xlu0 %v8916_v51 }
 0x50b   :  { %v2527_v0 = vadd.f32 %v9121_v43, %v2526_v1  ;;  %v9431_v1 = vpop.permute.xlu1 %2685 }
 0x50c   :  { %v8273_v39 = vpop.f32.mrf.mxu0  ;;  %10066 = vst [vmem:[#allocation11_spill] sm:$0xff] %v9431_v1 }
 0x50d   :  { %8739 = vtanh.f32 %v2527_v0  ;;  %v2835_v0 = vsel %vm531_vm6, %v2834_v4, %v2833_v61  ;;  %v10068_v61 = vmov 0  }
 0x50f   :  { %v2911_v39 = vpop.permute.xlu1 %2910 }
 0x51a   :  { %v8740_v62 = vpop.eup %8739 }
 0x51b   :  { %8277 = vmatmul.mubr.msk.f32.vlgmr.msra.gmra.mxu1 %vm621_vm9, %v8740_v62  ;;  %8282 = vmatmul.mubr.msk.f32.vlgmr.msra.gmra.mxu0 %vm621_vm9, %v8740_v62 }
 0x51c   :  { %8285 = vmatpush3.msra.mxu1 %v9123_v45  ;;  %8290 = vmatpush3.msra.mxu0 %v9085_v27 }
 0x51d   :  { %8286 = vmatprep.mubr.msk.f32.mxu1 %vm8893_vm0, %v10065_v48  ;;  %8291 = vmatprep.mubr.msk.f32.mxu0 %vm8893_vm0, %v10065_v48 }
 0x51e   :  { %8294 = vmatprep.subr.mxu1 %v10065_v48  ;;  %8299 = vmatprep.subr.mxu0 %v10065_v48 }
 0x51f   :  { %8287 = vmatmul.mubr.msk.f32.vlgmr.msra.gmra.mxu1 %vm621_vm9, %v8740_v62  ;;  %8292 = vmatmul.mubr.msk.f32.vlgmr.msra.gmra.mxu0 %vm621_vm9, %v8740_v62  ;;  %v9434_v62 = vmul.f32 %v9094_v31, %v2911_v39 }
 0x520   :  { %8295 = vmatpush3.msk.msra.mxu1 %vm536_vm5, %v8997_v9  ;;  %8296 = vmatprep.mubr.msk.f32.mxu1 %vm8893_vm0, %v10065_v48 }
 0x521   :  { %8304 = vmatprep.subr.mxu1 %v10065_v48  ;;  %8300 = vmatpush3.msra.mxu0 %v9019_v13  ;;  %10067 = vst [vmem:[#allocation12_spill] sm:$0xff] %v9434_v62 }
 0x522   :  { %8301 = vmatprep.mubr.msk.f32.mxu0 %vm8893_vm0, %v10065_v48  ;;  %8309 = vmatprep.subr.mxu0 %v10065_v48 }
 0x523   :  { %8297 = vmatmul.mubr.msk.f32.vlgmr.msra.gmra.mxu1 %vm533_vm7, %v2835_v0  ;;  %2989 = vrot.lane.b32.xlu0 %v9434_v62, %s8905_s16 }
 0x524   :  { %8305 = vmatpush3.msra.mxu1 %v9131_v50  ;;  %8306 = vmatprep.mubr.msk.f32.mxu1 %vm8893_vm0, %v10065_v48 }
 0x525   :  { %8314 = vmatprep.subr.mxu1 %v10065_v48  ;;  %3063 = vrot.lane.b32.xlu1 %v9434_v62, %s8903_s13 }
 0x527   :  { %3137 = vrot.lane.b32.xlu0 %v9434_v62, %s8904_s15 }
 0x529   :  { %3288 = vperm.xlu1 %8726, %v9058_v19  }
 0x52d   :  { %8727 = vset.pattern.permute.xlu1 %v10068_v61  ;;  %v3212_v61 = vrot.slane %v9011_v11, 6 }
 0x5db   :  { %v9444_v4 = vpop.f32.mrf.mxu1  ;;  %v9446_v0 = vpop.f32.mrf.mxu0 }
 0x5dd   :  { %v8278_v39 = vpop.f32.mrf.mxu1  ;;  %v8283_v1 = vpop.f32.mrf.mxu0 }
 0x5de   :  { %v3211_v1 = vrot.slane %v9009_v10, 7 }
 0x5df   :  { %v9448_v51 = vpop.f32.mrf.mxu1  ;;  %v9450_v49 = vpop.f32.mrf.mxu0 }
 0x5e0   :  { %v3213_v10 = vsel %vm531_vm6, %v3212_v61, %v3211_v1 }
 0x5e1   :  { %v8288_v8 = vpop.f32.mrf.mxu1  ;;  %v8293_v38 = vpop.f32.mrf.mxu0 }
 0x5e3   :  { %v2904_v22 = vpop.f32.mrf.mxu1 }
 0x5e4   :  { %v2905_v59 = vadd.f32 %v9121_v43, %v2904_v22 }
 0x5e5   :  { %v8298_v62 = vpop.f32.mrf.mxu1 }
 0x5e6   :  { %8741 = vtanh.f32 %v2905_v59 }
 0x5f3   :  { %v8742_v19 = vpop.eup %8741 }
 0x5f4   :  { %8302 = vmatmul.mubr.msk.f32.vlgmr.msra.gmra.mxu0 %vm621_vm9, %v8742_v19  ;;  %8307 = vmatmul.mubr.msk.f32.vlgmr.msra.gmra.mxu1 %vm621_vm9, %v8742_v19 }
 0x5f5   :  { %8310 = vmatpush3.msra.mxu0 %v9123_v45  ;;  %8315 = vmatpush3.msra.mxu1 %v9085_v27 }
 0x5f6   :  { %8311 = vmatprep.mubr.msk.f32.mxu0 %vm8893_vm0, %v10065_v48  ;;  %8316 = vmatprep.mubr.msk.f32.mxu1 %vm8893_vm0, %v10065_v48 }
 0x5f7   :  { %8319 = vmatprep.subr.mxu0 %v10065_v48  ;;  %8324 = vmatprep.subr.mxu1 %v10065_v48 }
 0x5f8   :  { %8312 = vmatmul.mubr.msk.f32.vlgmr.msra.gmra.mxu0 %vm621_vm9, %v8742_v19  ;;  %8317 = vmatmul.mubr.msk.f32.vlgmr.msra.gmra.mxu1 %vm621_vm9, %v8742_v19 }
 0x5f9   :  { %8320 = vmatpush3.msk.msra.mxu0 %vm536_vm5, %v8997_v9  ;;  %8321 = vmatprep.mubr.msk.f32.mxu0 %vm8893_vm0, %v10065_v48  ;;  %v9482_v9 = vpop.permute.xlu1 %3063 }
 0x5fa   :  { %8329 = vmatprep.subr.mxu0 %v10065_v48  ;;  %8325 = vmatpush3.msra.mxu1 %v9019_v13 }
 0x5fb   :  { %8326 = vmatprep.mubr.msk.f32.mxu1 %vm8893_vm0, %v10065_v48  ;;  %8334 = vmatprep.subr.mxu1 %v10065_v48 }
 0x5fc   :  { %8322 = vmatmul.mubr.msk.f32.vlgmr.msra.gmra.mxu0 %vm533_vm7, %v3213_v10 }
 0x5fd   :  { %8330 = vmatpush3.msra.mxu0 %v9131_v50  ;;  %8331 = vmatprep.mubr.msk.f32.mxu0 %vm8893_vm0, %v10065_v48  ;;  %v3289_v11 = vpop.permute.xlu1 %3288 }
 0x5fe   :  { %8339 = vmatprep.subr.mxu0 %v10065_v48  ;;  %v9485_v38 = vmul.f32 %v9094_v31, %v3289_v11  ;;  %v692_v11 = vadd.f32 %v9185_v2, %v9097_v33 }
 0x600   :  { %3367 = vrot.lane.b32.xlu0 %v9485_v38, %s8905_s16  ;;  %3441 = vrot.lane.b32.xlu1 %v9485_v38, %s8903_s13 }
 0x604   :  { %3515 = vrot.lane.b32.xlu0 %v9485_v38, %s8904_s15  ;;  %s8919_s15 = smov 22  }
 0x605   :  { %s9946_s20 = sld [smem:[%s10052_s0 + %s8919_s15]]  }
 0x6b4   :  { %v9493_v13 = vpop.f32.mrf.mxu0  ;;  %v9495_v50 = vpop.f32.mrf.mxu1 }
 0x6b6   :  { %v8303_v59 = vpop.f32.mrf.mxu0  ;;  %v8308_v8 = vpop.f32.mrf.mxu1 }
 0x6b7   :  { %v777_v8 = vadd.f32 %v9189_v6, %v9167_v56 }
 0x6b8   :  { %v9497_v22 = vpop.f32.mrf.mxu0  ;;  %v9499_v62 = vpop.f32.mrf.mxu1 }
 0x6ba   :  { %v8313_v31 = vpop.f32.mrf.mxu0  ;;  %v8318_v39 = vpop.f32.mrf.mxu1 }
 0x6bc   :  { %v3282_v19 = vpop.f32.mrf.mxu0 }
 0x6bd   :  { %v3283_v1 = vadd.f32 %v9121_v43, %v3282_v19  ;;  %v701_v19 = vadd.f32 %v9081_v26, %v692_v11 }
 0x6be   :  { %v8323_v61 = vpop.f32.mrf.mxu0 }
 0x6bf   :  { %8743 = vtanh.f32 %v3283_v1  ;;  %v783_v61 = vadd.f32 %v9223_v24, %v777_v8  ;;  %v857_v8 = vadd.f32 %v9187_v3, %v9169_v57 }
 0x6cc   :  { %v8744_v10 = vpop.eup %8743 }
 0x6cd   :  { %8327 = vmatmul.mubr.msk.f32.vlgmr.msra.gmra.mxu1 %vm621_vm9, %v8744_v10  ;;  %8332 = vmatmul.mubr.msk.f32.vlgmr.msra.gmra.mxu0 %vm621_vm9, %v8744_v10 }
 0x6ce   :  { %8335 = vmatpush3.msra.mxu1 %v9123_v45  ;;  %8340 = vmatpush3.msra.mxu0 %v9085_v27 }
 0x6cf   :  { %8336 = vmatprep.mubr.msk.f32.mxu1 %vm8893_vm0, %v10065_v48  ;;  %8341 = vmatprep.mubr.msk.f32.mxu0 %vm8893_vm0, %v10065_v48 }
 0x6d0   :  { %8351 = vmatprep.subr.mxu0 %v10065_v48  ;;  %8344 = vmatprep.subr.mxu1 %v10065_v48 }
 0x6d1   :  { %8337 = vmatmul.mubr.msk.f32.vlgmr.msra.gmra.mxu1 %vm621_vm9, %v8744_v10  ;;  %8342 = vmatmul.mubr.msk.f32.vlgmr.msra.gmra.mxu0 %vm621_vm9, %v8744_v10 }
 0x6d2   :  { %8352 = vmatpush3.msra.mxu0 %v9087_v28  ;;  %8345 = vmatpush3.msra.mxu1 %v9028_v15 }
 0x6d3   :  { %8353 = vmatprep.subr.mxu0 %v10065_v48  ;;  %8346 = vmatprep.subr.mxu1 %v10065_v48 }
 0x6d4   :  { %8354 = vmatpush3.msra.mxu0 %v9161_v53  ;;  %8347 = vmatpush3.msra.mxu1 %v9051_v18 }
 0x6d5   :  { %8348 = vmatprep.mubr.msk.f32.mxu1 %vm8893_vm0, %v10065_v48  ;;  %8355 = vmatprep.mubr.msk.f32.mxu0 %vm8893_vm0, %v10065_v48 }
 0x6d6   :  { %8365 = vmatprep.subr.mxu0 %v10065_v48  ;;  %8349 = vmatmul.mubr.f32.vlgmr.msra.gmra.mxu1 %v10065_v48 }
 0x6d7   :  { %8356 = vmatmul.mubr.f32.vlgmr.msra.gmra.mxu0 %v10065_v48  ;;  %8358 = vmatprep.subr.mxu1 %v10065_v48 }
 0x6d8   :  { %8366 = vmatpush3.msra.mxu0 %v9163_v54  ;;  %8359 = vmatpush3.msra.mxu1 %v9089_v29 }
 0x6d9   :  { %8367 = vmatprep.subr.mxu0 %v10065_v48  ;;  %8360 = vmatprep.subr.mxu1 %v10065_v48 }
 0x6da   :  { %8368 = vmatpush3.msra.mxu0 %v9165_v55  ;;  %8361 = vmatpush3.msra.mxu1 %v9091_v30 }
 0x6db   :  { %8362 = vmatprep.mubr.msk.f32.mxu1 %vm8893_vm0, %v10065_v48  ;;  %8369 = vmatprep.mubr.msk.f32.mxu0 %vm8893_vm0, %v10065_v48 }
 0x6dc   :  { %8379 = vmatprep.subr.mxu0 %v10065_v48  ;;  %8363 = vmatmul.mubr.f32.vlgmr.msra.gmra.mxu1 %v10065_v48 }
 0x6dd   :  { %8370 = vmatmul.mubr.f32.vlgmr.msra.gmra.mxu0 %v10065_v48  ;;  %8372 = vmatprep.subr.mxu1 %v10065_v48 }
 0x6de   :  { %8380 = vmatpush3.msra.mxu0 %v9087_v28  ;;  %8373 = vmatpush3.msra.mxu1 %v9028_v15 }
 0x6df   :  { %8381 = vmatprep.subr.mxu0 %v10065_v48  ;;  %8374 = vmatprep.subr.mxu1 %v10065_v48 }
 0x6e0   :  { %8382 = vmatpush3.msra.mxu0 %v9161_v53  ;;  %8375 = vmatpush3.msra.mxu1 %v9051_v18 }
 0x6e1   :  { %8376 = vmatprep.mubr.msk.f32.mxu1 %vm8893_vm0, %v10065_v48  ;;  %8383 = vmatprep.mubr.msk.f32.mxu0 %vm8893_vm0, %v10065_v48 }
 0x6e2   :  { %8386 = vmatprep.subr.mxu1 %v10065_v48  ;;  %8393 = vmatprep.subr.mxu0 %v10065_v48 }
 0x78d   :  { %v9554_v27 = vpop.f32.mrf.mxu1  ;;  %v9556_v15 = vpop.f32.mrf.mxu0 }
 0x78e   :  { %10069 = vst [vmem:[#allocation13_spill] sm:$0xff] %v9554_v27  ;;  %10070 = vst [vmem:[#allocation14_spill] sm:$0xff] %v9556_v15 }
 0x78f   :  { %v8328_v43 = vpop.f32.mrf.mxu1  ;;  %v8333_v45 = vpop.f32.mrf.mxu0 }
 0x791   :  { %v9560_v18 = vpop.f32.mrf.mxu1  ;;  %v9562_v59 = vpop.f32.mrf.mxu0 }
 0x792   :  { %10071 = vst [vmem:[#allocation15_spill] sm:$0xff] %v9560_v18  ;;  %v937_v18 = vadd.f32 %v9192_v16, %v9225_v25 }
 0x793   :  { %v8338_v31 = vpop.f32.mrf.mxu1  ;;  %v8343_v39 = vpop.f32.mrf.mxu0 }
 0x794   :  { %v943_v11 = vadd.f32 %v9227_v32, %v937_v18 }
 0x796   :  { %v3659_v1 = vpop.f32.mrf.mxu1 }
 0x797   :  { %v3663_v10 = vadd.f32 %v3659_v1, %v701_v19  ;;  %v3744_v43 = vpop.f32.mrf.mxu0 }
 0x798   :  { %v3748_v45 = vadd.f32 %v3744_v43, %v783_v61  ;;  %v8350_v15 = vpop.f32.mrf.mxu1 }
 0x799   :  { %v7794_v27 = vmul.f32 -1.442695, %v3663_v10  ;;  %v8357_v33 = vpop.f32.mrf.mxu0  ;;  %v863_v15 = vadd.f32 %v9171_v58, %v857_v8  ;;  %v9602_v8 = vld [vmem:[%s8991_s8] sm:$0xff] }
 0x79a   :  { %v7795_v2 = vmul.f32 -1.442695, %v3748_v45 }
 0x79b   :  { %8745 = vpow2.f32 %v7794_v27 }
 0x79c   :  { %8747 = vpow2.f32 %v7795_v2  ;;  %v3827_v56 = vpop.f32.mrf.mxu1 }
 0x79d   :  { %v3905_v6 = vpop.f32.mrf.mxu0  ;;  %v3831_v61 = vadd.f32 %v3827_v56, %v863_v15  ;;  %v1169_v15 = vadd.f32 %v9245_v41, %v9229_v34 }
 0x79e   :  { %v8364_v31 = vpop.f32.mrf.mxu1  ;;  %v3909_v19 = vadd.f32 %v3905_v6, %v943_v11 }
 0x79f   :  { %v8371_v39 = vpop.f32.mrf.mxu0 }
 0x7a0   :  { %v7796_v1 = vmul.f32 -1.442695, %v3909_v19  ;;  %v9595_v39 = vld [vmem:[%s8991_s8 + $0x8] sm:$0xff]  ;;  %v1094_v19 = vadd.f32 %v9243_v40, %v9174_v60  ;;  %s7700_s8 = sld [smem:[%s10052_s0 + %s8917_s4]]  }
 0x7a2   :  { %8749 = vpow2.f32 %v7796_v1  ;;  %v1097_v1 = vadd.f32 %v9081_v26, %v1094_v19 }
 0x7a3   :  { %8751 = vtanh.f32 %v3831_v61  ;;  %v1172_v61 = vadd.f32 %v1169_v15, %v9223_v24 }
 0x7a8   :  { %v8746_v10 = vpop.eup %8745 }
 0x7a9   :  { %v8748_v43 = vpop.eup %8747  ;;  %v3667_v45 = vadd.f32 1.0, %v8746_v10 }
 0x7aa   :  { %v3752_v16 = vadd.f32 1.0, %v8748_v43 }
 0x7ab   :  { %8753 = vrcp.f32 %v3667_v45  ;;  %v1248_v45 = vpop.permute.xlu0 %1247 }
 0x7ac   :  { %8755 = vrcp.f32 %v3752_v16 }
 0x7af   :  { %v8750_v25 = vpop.eup %8749 }
 0x7b0   :  { %v8752_v27 = vpop.eup %8751  ;;  %v3913_v31 = vadd.f32 1.0, %v8750_v25 }
 0x7b2   :  { %8757 = vrcp.f32 %v3913_v31  ;;  %v1317_v31 = vadd.f32 %v9249_v47, %v1248_v45 }
 0x7b4   :  { %v1320_v26 = vadd.f32 %v1317_v31, %v9227_v32  ;;  %v1472_v31 = vadd.f32 %v9293_v17, %v9234_v37 }
 0x7b8   :  { %v8754_v18 = vpop.eup %8753 }
 0x7b9   :  { %v8756_v33 = vpop.eup %8755  ;;  %v3917_v2 = vmul.f32 %v8754_v18, %v8752_v27 }
 0x7ba   :  { %v3916_v57 = vmul.f32 0.0, %v8756_v33 }
 0x7bc   :  { %v9574_v3 = vadd.f32 %v3917_v2, %v3916_v57  ;;  %v1243_v57 = vadd.f32 %v9247_v46, %v9231_v35 }
 0x7be   :  { %8759 = vtanh.f32 %v9574_v3 }
 0x7bf   :  { %v8758_v56 = vpop.eup %8757 }
 0x7cb   :  { %v8760_v6 = vpop.eup %8759 }
 0x7cc   :  { %v3920_v11 = vmul.f32 %v8760_v6, %v8758_v56  ;;  %v1246_v6 = vadd.f32 %v1243_v57, %v9171_v58 }
 0x7ce   :  { %8377 = vmatmul.mubr.msk.f32.vlgmr.msra.gmra.mxu1 %vm3589_vm10, %v3920_v11  ;;  %8384 = vmatmul.mubr.msk.f32.vlgmr.msra.gmra.mxu0 %vm3589_vm10, %v3920_v11 }
 0x7cf   :  { %8387 = vmatpush3.msra.mxu1 %v9089_v29  ;;  %8394 = vmatpush3.msra.mxu0 %v9163_v54 }
 0x7d0   :  { %8388 = vmatprep.subr.mxu1 %v10065_v48  ;;  %8395 = vmatprep.subr.mxu0 %v10065_v48 }
 0x7d1   :  { %8389 = vmatpush3.msra.mxu1 %v9091_v30  ;;  %8396 = vmatpush3.msra.mxu0 %v9165_v55 }
 0x7d2   :  { %8390 = vmatprep.mubr.msk.f32.mxu1 %vm8893_vm0, %v10065_v48  ;;  %8397 = vmatprep.mubr.msk.f32.mxu0 %vm8893_vm0, %v10065_v48 }
 0x7d3   :  { %8407 = vmatprep.subr.mxu0 %v10065_v48  ;;  %8391 = vmatmul.mubr.msk.f32.vlgmr.msra.gmra.mxu1 %vm3589_vm10, %v3920_v11 }
 0x7d4   :  { %8398 = vmatmul.mubr.msk.f32.vlgmr.msra.gmra.mxu0 %vm3589_vm10, %v3920_v11  ;;  %8400 = vmatprep.subr.mxu1 %v10065_v48 }
 0x7d5   :  { %8408 = vmatpush3.msra.mxu0 %v9087_v28  ;;  %8401 = vmatpush3.msra.mxu1 %v9595_v39 }
 0x7d6   :  { %8409 = vmatprep.subr.mxu0 %v10065_v48  ;;  %8402 = vmatprep.subr.mxu1 %v10065_v48 }
 0x7d7   :  { %8410 = vmatpush3.msra.mxu0 %v9161_v53  ;;  %8403 = vmatpush3.msra.mxu1 %v9602_v8 }
 0x7d8   :  { %8404 = vmatprep.mubr.msk.f32.mxu1 %vm8893_vm0, %v10065_v48  ;;  %8411 = vmatprep.mubr.msk.f32.mxu0 %vm8893_vm0, %v10065_v48 }
 0x7d9   :  { %8414 = vmatprep.subr.mxu1 %v10065_v48  ;;  %8421 = vmatprep.subr.mxu0 %v10065_v48 }
 0x88e   :  { %v3990_v10 = vpop.f32.mrf.mxu1  ;;  %v4067_v43 = vpop.f32.mrf.mxu0 }
 0x88f   :  { %v3994_v16 = vadd.f32 %v3990_v10, %v1097_v1  ;;  %v4071_v25 = vadd.f32 %v4067_v43, %v1172_v61 }
 0x890   :  { %v8378_v27 = vpop.f32.mrf.mxu1  ;;  %v8385_v18 = vpop.f32.mrf.mxu0 }
 0x891   :  { %v7798_v33 = vmul.f32 -1.442695, %v3994_v16  ;;  %v7800_v2 = vmul.f32 -1.442695, %v4071_v25 }
 0x893   :  { %8761 = vpow2.f32 %v7798_v33  ;;  %v4144_v60 = vpop.f32.mrf.mxu1 }
 0x894   :  { %8763 = vpow2.f32 %v7800_v2  ;;  %v4216_v40 = vpop.f32.mrf.mxu0  ;;  %v4148_v19 = vadd.f32 %v4144_v60, %v1246_v6 }
 0x895   :  { %v8392_v34 = vpop.f32.mrf.mxu1  ;;  %v4220_v56 = vadd.f32 %v4216_v40, %v1320_v26  ;;  %v9658_v40 = vld [vmem:[%s9078_s24] ss:$0 sm:$0xff]  ;;  %s7719_s24 = sld [smem:[%s10052_s0 + %s8920_s21]]  }
 0x896   :  { %v8399_v41 = vpop.f32.mrf.mxu0  ;;  %v1475_v34 = vadd.f32 %v9658_v40, %v1472_v31 }
 0x897   :  { %v7803_v11 = vmul.f32 -1.442695, %v4220_v56 }
 0x899   :  { %8765 = vpow2.f32 %v7803_v11 }
 0x89a   :  { %8767 = vtanh.f32 %v4148_v19 }
 0x8a0   :  { %v8762_v15 = vpop.eup %8761 }
 0x8a1   :  { %v8764_v1 = vpop.eup %8763  ;;  %v3998_v61 = vadd.f32 1.0, %v8762_v15 }
 0x8a2   :  { %v4075_v47 = vadd.f32 1.0, %v8764_v1 }
 0x8a3   :  { %8769 = vrcp.f32 %v3998_v61 }
 0x8a4   :  { %8771 = vrcp.f32 %v4075_v47 }
 0x8a6   :  { %v8766_v10 = vpop.eup %8765 }
 0x8a7   :  { %v8768_v43 = vpop.eup %8767  ;;  %v4224_v27 = vadd.f32 1.0, %v8766_v10 }
 0x8a9   :  { %8773 = vrcp.f32 %v4224_v27 }
 0x8b0   :  { %v8770_v45 = vpop.eup %8769 }
 0x8b1   :  { %v8772_v16 = vpop.eup %8771  ;;  %v4228_v25 = vmul.f32 %v8770_v45, %v8768_v43  ;;  %v1621_v45 = vadd.f32 %v9297_v23, %v9281_v7 }
 0x8b2   :  { %v4227_v35 = vmul.f32 %v8772_v16, %v9574_v3  ;;  %v1478_v3 = vpop.permute.xlu0 %1477 }
 0x8b3   :  { %v1547_v60 = vadd.f32 %v9295_v20, %v1478_v3 }
 0x8b4   :  { %v9623_v46 = vadd.f32 %v4228_v25, %v4227_v35  ;;  %v1624_v25 = vadd.f32 %v1621_v45, %v9171_v58 }
 0x8b5   :  { %v1550_v41 = vadd.f32 %v1547_v60, %v9223_v24 }
 0x8b6   :  { %8775 = vtanh.f32 %v9623_v46  ;;  %v8774_v18 = vpop.eup %8773  ;;  %v1626_v56 = vpop.permute.xlu0 %1625 }
 0x8b7   :  { %v1695_v47 = vadd.f32 %v9299_v36, %v1626_v56 }
 0x8b9   :  { %v1698_v43 = vadd.f32 %v1695_v47, %v9227_v32 }
 0x8c3   :  { %v8776_v33 = vpop.eup %8775 }
 0x8c4   :  { %v4231_v2 = vmul.f32 %v8776_v33, %v8774_v18 }
 0x8c6   :  { %8405 = vmatmul.mubr.msk.f32.vlgmr.msra.gmra.mxu1 %vm3589_vm10, %v4231_v2  ;;  %8412 = vmatmul.mubr.msk.f32.vlgmr.msra.gmra.mxu0 %vm3589_vm10, %v4231_v2 }
 0x8c7   :  { %8415 = vmatpush3.msra.mxu1 %v9089_v29  ;;  %8422 = vmatpush3.msra.mxu0 %v9163_v54 }
 0x8c8   :  { %8416 = vmatprep.subr.mxu1 %v10065_v48  ;;  %8423 = vmatprep.subr.mxu0 %v10065_v48 }
 0x8c9   :  { %8417 = vmatpush3.msra.mxu1 %v9091_v30  ;;  %8424 = vmatpush3.msra.mxu0 %v9165_v55 }
 0x8ca   :  { %8418 = vmatprep.mubr.msk.f32.mxu1 %vm8893_vm0, %v10065_v48  ;;  %8425 = vmatprep.mubr.msk.f32.mxu0 %vm8893_vm0, %v10065_v48 }
 0x8cb   :  { %8435 = vmatprep.subr.mxu0 %v10065_v48  ;;  %8419 = vmatmul.mubr.msk.f32.vlgmr.msra.gmra.mxu1 %vm3589_vm10, %v4231_v2 }
 0x8cc   :  { %8426 = vmatmul.mubr.msk.f32.vlgmr.msra.gmra.mxu0 %vm3589_vm10, %v4231_v2  ;;  %8428 = vmatprep.subr.mxu1 %v10065_v48 }
 0x8cd   :  { %8436 = vmatpush3.msra.mxu0 %v9087_v28  ;;  %8429 = vmatpush3.msra.mxu1 %v9595_v39 }
 0x8ce   :  { %8437 = vmatprep.subr.mxu0 %v10065_v48  ;;  %8430 = vmatprep.subr.mxu1 %v10065_v48 }
 0x8cf   :  { %8438 = vmatpush3.msra.mxu0 %v9161_v53  ;;  %8431 = vmatpush3.msra.mxu1 %v9602_v8 }
 0x8d0   :  { %8432 = vmatprep.mubr.msk.f32.mxu1 %vm8893_vm0, %v10065_v48  ;;  %8439 = vmatprep.mubr.msk.f32.mxu0 %vm8893_vm0, %v10065_v48 }
 0x8d1   :  { %8442 = vmatprep.subr.mxu1 %v10065_v48  ;;  %8449 = vmatprep.subr.mxu0 %v10065_v48 }
 0x986   :  { %v4301_v26 = vpop.f32.mrf.mxu1  ;;  %v4378_v57 = vpop.f32.mrf.mxu0 }
 0x987   :  { %v4305_v6 = vadd.f32 %v4301_v26, %v1475_v34  ;;  %v4382_v11 = vadd.f32 %v4378_v57, %v1550_v41 }
 0x988   :  { %v8406_v19 = vpop.f32.mrf.mxu1  ;;  %v8413_v15 = vpop.f32.mrf.mxu0 }
 0x989   :  { %v7805_v1 = vmul.f32 -1.442695, %v4305_v6  ;;  %v7807_v61 = vmul.f32 -1.442695, %v4382_v11  ;;  %v1850_v11 = vadd.f32 %v9343_v14, %v9284_v12 }
 0x98b   :  { %8777 = vpow2.f32 %v7805_v1  ;;  %v4455_v37 = vpop.f32.mrf.mxu1  ;;  %v1853_v15 = vadd.f32 %v9658_v40, %v1850_v11 }
 0x98c   :  { %8779 = vpow2.f32 %v7807_v61  ;;  %v4527_v17 = vpop.f32.mrf.mxu0  ;;  %v4459_v35 = vadd.f32 %v4455_v37, %v1624_v25 }
 0x98d   :  { %v8420_v20 = vpop.f32.mrf.mxu1  ;;  %v4531_v16 = vadd.f32 %v4527_v17, %v1698_v43 }
 0x98e   :  { %v8427_v10 = vpop.f32.mrf.mxu0 }
 0x98f   :  { %v7810_v27 = vmul.f32 -1.442695, %v4531_v16 }
 0x991   :  { %8781 = vpow2.f32 %v7810_v27 }
 0x992   :  { %8783 = vtanh.f32 %v4459_v35 }
 0x998   :  { %v8778_v18 = vpop.eup %8777 }
 0x999   :  { %v8780_v33 = vpop.eup %8779  ;;  %v4309_v2 = vadd.f32 1.0, %v8778_v18  ;;  %v1999_v18 = vadd.f32 %v9347_v42, %v9331_v63 }
 0x99a   :  { %v4386_v36 = vadd.f32 1.0, %v8780_v33 }
 0x99b   :  { %8785 = vrcp.f32 %v4309_v2  ;;  %v2002_v2 = vadd.f32 %v1999_v18, %v9171_v58 }
 0x99c   :  { %8787 = vrcp.f32 %v4386_v36 }
 0x99e   :  { %v8782_v3 = vpop.eup %8781 }
 0x99f   :  { %v8784_v31 = vpop.eup %8783  ;;  %v4535_v26 = vadd.f32 1.0, %v8782_v3 }
 0x9a1   :  { %8789 = vrcp.f32 %v4535_v26 }
 0x9a8   :  { %v8786_v60 = vpop.eup %8785 }
 0x9a9   :  { %v8788_v34 = vpop.eup %8787  ;;  %v4539_v41 = vmul.f32 %v8786_v60, %v8784_v31 }
 0x9aa   :  { %v4538_v7 = vmul.f32 %v8788_v34, %v9623_v46  ;;  %v1856_v46 = vpop.permute.xlu0 %1855 }
 0x9ab   :  { %v1925_v19 = vadd.f32 %v9345_v21, %v1856_v46 }
 0x9ac   :  { %v9668_v23 = vadd.f32 %v4539_v41, %v4538_v7 }
 0x9ad   :  { %v1928_v1 = vadd.f32 %v1925_v19, %v9223_v24 }
 0x9ae   :  { %8791 = vtanh.f32 %v9668_v23  ;;  %v8790_v57 = vpop.eup %8789  ;;  %v2004_v37 = vpop.permute.xlu0 %2003 }
 0x9af   :  { %v2073_v25 = vadd.f32 %v9349_v44, %v2004_v37 }
 0x9b1   :  { %v2076_v35 = vadd.f32 %v2073_v25, %v9227_v32 }
 0x9bb   :  { %v8792_v56 = vpop.eup %8791 }
 0x9bc   :  { %v4542_v6 = vmul.f32 %v8792_v56, %v8790_v57 }
 0x9be   :  { %8433 = vmatmul.mubr.msk.f32.vlgmr.msra.gmra.mxu1 %vm3589_vm10, %v4542_v6  ;;  %8440 = vmatmul.mubr.msk.f32.vlgmr.msra.gmra.mxu0 %vm3589_vm10, %v4542_v6 }
 0x9bf   :  { %8443 = vmatpush3.msra.mxu1 %v9089_v29  ;;  %8450 = vmatpush3.msra.mxu0 %v9163_v54 }
 0x9c0   :  { %8444 = vmatprep.subr.mxu1 %v10065_v48  ;;  %8451 = vmatprep.subr.mxu0 %v10065_v48 }
 0x9c1   :  { %8445 = vmatpush3.msra.mxu1 %v9091_v30  ;;  %8452 = vmatpush3.msra.mxu0 %v9165_v55 }
 0x9c2   :  { %8446 = vmatprep.mubr.msk.f32.mxu1 %vm8893_vm0, %v10065_v48  ;;  %8453 = vmatprep.mubr.msk.f32.mxu0 %vm8893_vm0, %v10065_v48 }
 0x9c3   :  { %8463 = vmatprep.subr.mxu0 %v10065_v48  ;;  %8447 = vmatmul.mubr.msk.f32.vlgmr.msra.gmra.mxu1 %vm3589_vm10, %v4542_v6 }
 0x9c4   :  { %8454 = vmatmul.mubr.msk.f32.vlgmr.msra.gmra.mxu0 %vm3589_vm10, %v4542_v6  ;;  %8456 = vmatprep.subr.mxu1 %v10065_v48 }
 0x9c5   :  { %8464 = vmatpush3.msra.mxu0 %v9087_v28  ;;  %8457 = vmatpush3.msra.mxu1 %v9595_v39 }
 0x9c6   :  { %8465 = vmatprep.subr.mxu0 %v10065_v48  ;;  %8458 = vmatprep.subr.mxu1 %v10065_v48 }
 0x9c7   :  { %8466 = vmatpush3.msra.mxu0 %v9161_v53  ;;  %8459 = vmatpush3.msra.mxu1 %v9602_v8 }
 0x9c8   :  { %8460 = vmatprep.mubr.msk.f32.mxu1 %vm8893_vm0, %v10065_v48  ;;  %8467 = vmatprep.mubr.msk.f32.mxu0 %vm8893_vm0, %v10065_v48 }
 0x9c9   :  { %8470 = vmatprep.subr.mxu1 %v10065_v48  ;;  %8477 = vmatprep.subr.mxu0 %v10065_v48 }
 0xa7e   :  { %v4612_v61 = vpop.f32.mrf.mxu1  ;;  %v4689_v47 = vpop.f32.mrf.mxu0 }
 0xa7f   :  { %v4616_v17 = vadd.f32 %v4612_v61, %v1853_v15  ;;  %v4693_v20 = vadd.f32 %v4689_v47, %v1928_v1  ;;  %v2228_v15 = vadd.f32 %v9393_v52, %v9334_v5  ;;  %v10072_v1 = vld [vmem:[#allocation8_spill] sm:$0xff] }
 0xa80   :  { %v8434_v10 = vpop.f32.mrf.mxu1  ;;  %v8441_v43 = vpop.f32.mrf.mxu0 }
 0xa81   :  { %v7812_v45 = vmul.f32 -1.442695, %v4616_v17  ;;  %v7814_v16 = vmul.f32 -1.442695, %v4693_v20  ;;  %v2231_v47 = vadd.f32 %v9658_v40, %v2228_v15 }
 0xa83   :  { %8793 = vpow2.f32 %v7812_v45  ;;  %v4766_v27 = vpop.f32.mrf.mxu1 }
 0xa84   :  { %8795 = vpow2.f32 %v7814_v16  ;;  %v4838_v12 = vpop.f32.mrf.mxu0  ;;  %v4770_v3 = vadd.f32 %v4766_v27, %v2002_v2  ;;  %v10074_v2 = vld [vmem:[#allocation6_spill] sm:$0xff] }
 0xa85   :  { %v8448_v14 = vpop.f32.mrf.mxu1  ;;  %v4842_v33 = vadd.f32 %v4838_v12, %v2076_v35 }
 0xa86   :  { %v8455_v21 = vpop.f32.mrf.mxu0  ;;  %v10073_v14 = vld [vmem:[#allocation10_spill] sm:$0xff] }
 0xa87   :  { %v7817_v36 = vmul.f32 -1.442695, %v4842_v33 }
 0xa89   :  { %8797 = vpow2.f32 %v7817_v36  ;;  %v10075_v36 = vld [vmem:[#allocation9_spill] sm:$0xff] }
 0xa8a   :  { %8799 = vtanh.f32 %v4770_v3  ;;  %v2377_v3 = vadd.f32 %v10075_v36, %v10074_v2  ;;  %v10077_v36 = vld [vmem:[#allocation11_spill] sm:$0xff] }
 0xa90   :  { %v8794_v31 = vpop.eup %8793 }
 0xa91   :  { %v8796_v60 = vpop.eup %8795  ;;  %v4620_v34 = vadd.f32 1.0, %v8794_v31 }
 0xa92   :  { %v4697_v44 = vadd.f32 1.0, %v8796_v60  ;;  %v2380_v60 = vadd.f32 %v2377_v3, %v9171_v58  ;;  %v2755_v3 = vadd.f32 %v9448_v51, %v10077_v36 }
 0xa93   :  { %8801 = vrcp.f32 %v4620_v34 }
 0xa94   :  { %8803 = vrcp.f32 %v4697_v44 }
 0xa96   :  { %v8798_v41 = vpop.eup %8797 }
 0xa97   :  { %v8800_v26 = vpop.eup %8799  ;;  %v4846_v6 = vadd.f32 1.0, %v8798_v41 }
 0xa99   :  { %8805 = vrcp.f32 %v4846_v6 }
 0xaa0   :  { %v8802_v7 = vpop.eup %8801 }
 0xaa1   :  { %v8804_v57 = vpop.eup %8803  ;;  %v4850_v56 = vmul.f32 %v8802_v7, %v8800_v26 }
 0xaa2   :  { %v4849_v63 = vmul.f32 %v8804_v57, %v9668_v23  ;;  %v2234_v23 = vpop.permute.xlu0 %2233 }
 0xaa3   :  { %v2303_v61 = vadd.f32 %v10072_v1, %v2234_v23 }
 0xaa4   :  { %v9710_v42 = vadd.f32 %v4850_v56, %v4849_v63 }
 0xaa5   :  { %v2306_v37 = vadd.f32 %v2303_v61, %v9223_v24 }
 0xaa6   :  { %8807 = vtanh.f32 %v9710_v42  ;;  %v8806_v46 = vpop.eup %8805  ;;  %v2382_v10 = vpop.permute.xlu0 %2381 }
 0xaa7   :  { %v2451_v21 = vadd.f32 %v10073_v14, %v2382_v10 }
 0xaa9   :  { %v2454_v33 = vadd.f32 %v2451_v21, %v9227_v32 }
 0xab3   :  { %v8808_v11 = vpop.eup %8807 }
 0xab4   :  { %v4853_v19 = vmul.f32 %v8808_v11, %v8806_v46 }
 0xab6   :  { %8461 = vmatmul.mubr.msk.f32.vlgmr.msra.gmra.mxu1 %vm3589_vm10, %v4853_v19  ;;  %8468 = vmatmul.mubr.msk.f32.vlgmr.msra.gmra.mxu0 %vm3589_vm10, %v4853_v19 }
 0xab7   :  { %8471 = vmatpush3.msra.mxu1 %v9089_v29  ;;  %8478 = vmatpush3.msra.mxu0 %v9163_v54 }
 0xab8   :  { %8472 = vmatprep.subr.mxu1 %v10065_v48  ;;  %8479 = vmatprep.subr.mxu0 %v10065_v48 }
 0xab9   :  { %8473 = vmatpush3.msra.mxu1 %v9091_v30  ;;  %8480 = vmatpush3.msra.mxu0 %v9165_v55 }
 0xaba   :  { %8474 = vmatprep.mubr.msk.f32.mxu1 %vm8893_vm0, %v10065_v48  ;;  %8481 = vmatprep.mubr.msk.f32.mxu0 %vm8893_vm0, %v10065_v48 }
 0xabb   :  { %8491 = vmatprep.subr.mxu0 %v10065_v48  ;;  %8475 = vmatmul.mubr.msk.f32.vlgmr.msra.gmra.mxu1 %vm3589_vm10, %v4853_v19 }
 0xabc   :  { %8482 = vmatmul.mubr.msk.f32.vlgmr.msra.gmra.mxu0 %vm3589_vm10, %v4853_v19  ;;  %8484 = vmatprep.subr.mxu1 %v10065_v48 }
 0xabd   :  { %8492 = vmatpush3.msra.mxu0 %v9087_v28  ;;  %8485 = vmatpush3.msra.mxu1 %v9595_v39 }
 0xabe   :  { %8493 = vmatprep.subr.mxu0 %v10065_v48  ;;  %8486 = vmatprep.subr.mxu1 %v10065_v48 }
 0xabf   :  { %8494 = vmatpush3.msra.mxu0 %v9161_v53  ;;  %8487 = vmatpush3.msra.mxu1 %v9602_v8 }
 0xac0   :  { %8488 = vmatprep.mubr.msk.f32.mxu1 %vm8893_vm0, %v10065_v48  ;;  %8495 = vmatprep.mubr.msk.f32.mxu0 %vm8893_vm0, %v10065_v48 }
 0xac1   :  { %8498 = vmatprep.subr.mxu1 %v10065_v48  ;;  %8505 = vmatprep.subr.mxu0 %v10065_v48 }
 0xb76   :  { %v4923_v17 = vpop.f32.mrf.mxu1  ;;  %v5000_v20 = vpop.f32.mrf.mxu0 }
 0xb77   :  { %v4927_v43 = vadd.f32 %v4923_v17, %v2231_v47  ;;  %v5004_v45 = vadd.f32 %v5000_v20, %v2306_v37  ;;  %v10076_v37 = vld [vmem:[#allocation7_spill] sm:$0xff] }
 0xb78   :  { %v8462_v16 = vpop.f32.mrf.mxu1  ;;  %v8469_v25 = vpop.f32.mrf.mxu0  ;;  %v2606_v17 = vadd.f32 %v9444_v4, %v10076_v37 }
 0xb79   :  { %v7819_v27 = vmul.f32 -1.442695, %v4927_v43  ;;  %v7821_v12 = vmul.f32 -1.442695, %v5004_v45 }
 0xb7a   :  { %v2609_v10 = vadd.f32 %v9658_v40, %v2606_v17 }
 0xb7b   :  { %8809 = vpow2.f32 %v7819_v27  ;;  %v5077_v35 = vpop.f32.mrf.mxu1 }
 0xb7c   :  { %8811 = vpow2.f32 %v7821_v12  ;;  %v5149_v5 = vpop.f32.mrf.mxu0  ;;  %v5081_v44 = vadd.f32 %v5077_v35, %v2380_v60  ;;  %v2758_v60 = vadd.f32 %v2755_v3, %v9171_v58 }
 0xb7d   :  { %v8476_v52 = vpop.f32.mrf.mxu1  ;;  %v5153_v31 = vadd.f32 %v5149_v5, %v2454_v33 }
 0xb7e   :  { %v8483_v18 = vpop.f32.mrf.mxu0 }
 0xb7f   :  { %v7824_v34 = vmul.f32 -1.442695, %v5153_v31 }
 0xb81   :  { %8813 = vpow2.f32 %v7824_v34 }
 0xb82   :  { %8815 = vtanh.f32 %v5081_v44 }
 0xb88   :  { %v8810_v41 = vpop.eup %8809 }
 0xb89   :  { %v8812_v26 = vpop.eup %8811  ;;  %v4931_v7 = vadd.f32 1.0, %v8810_v41 }
 0xb8a   :  { %v5008_v57 = vadd.f32 1.0, %v8812_v26 }
 0xb8b   :  { %8817 = vrcp.f32 %v4931_v7 }
 0xb8c   :  { %8819 = vrcp.f32 %v5008_v57 }
 0xb8e   :  { %v8814_v56 = vpop.eup %8813 }
 0xb8f   :  { %v8816_v6 = vpop.eup %8815  ;;  %v5157_v19 = vadd.f32 1.0, %v8814_v56 }
 0xb91   :  { %8821 = vrcp.f32 %v5157_v19 }
 0xb98   :  { %v8818_v63 = vpop.eup %8817 }
 0xb99   :  { %v8820_v46 = vpop.eup %8819  ;;  %v5161_v11 = vmul.f32 %v8818_v63, %v8816_v6 }
 0xb9a   :  { %v5160_v23 = vmul.f32 %v8820_v46, %v9710_v42  ;;  %v2612_v42 = vpop.permute.xlu0 %2611 }
 0xb9b   :  { %v2681_v20 = vadd.f32 %v9446_v0, %v2612_v42 }
 0xb9c   :  { %v9752_v15 = vadd.f32 %v5161_v11, %v5160_v23 }
 0xb9d   :  { %v2684_v43 = vadd.f32 %v2681_v20, %v9223_v24 }
 0xb9e   :  { %8823 = vtanh.f32 %v9752_v15  ;;  %v8822_v1 = vpop.eup %8821  ;;  %v2760_v25 = vpop.permute.xlu0 %2759 }
 0xb9f   :  { %v2829_v52 = vadd.f32 %v9450_v49, %v2760_v25 }
 0xba1   :  { %v2832_v2 = vadd.f32 %v2829_v52, %v9227_v32 }
 0xbab   :  { %v8824_v61 = vpop.eup %8823 }
 0xbac   :  { %v5164_v47 = vmul.f32 %v8824_v61, %v8822_v1 }
 0xbae   :  { %8489 = vmatmul.mubr.msk.f32.vlgmr.msra.gmra.mxu1 %vm3589_vm10, %v5164_v47  ;;  %8496 = vmatmul.mubr.msk.f32.vlgmr.msra.gmra.mxu0 %vm3589_vm10, %v5164_v47 }
 0xbaf   :  { %8499 = vmatpush3.msra.mxu1 %v9089_v29  ;;  %8506 = vmatpush3.msra.mxu0 %v9163_v54 }
 0xbb0   :  { %8500 = vmatprep.subr.mxu1 %v10065_v48  ;;  %8507 = vmatprep.subr.mxu0 %v10065_v48 }
 0xbb1   :  { %8501 = vmatpush3.msra.mxu1 %v9091_v30  ;;  %8508 = vmatpush3.msra.mxu0 %v9165_v55 }
 0xbb2   :  { %8502 = vmatprep.mubr.msk.f32.mxu1 %vm8893_vm0, %v10065_v48  ;;  %8509 = vmatprep.mubr.msk.f32.mxu0 %vm8893_vm0, %v10065_v48 }
 0xbb3   :  { %8519 = vmatprep.subr.mxu0 %v10065_v48  ;;  %8503 = vmatmul.mubr.msk.f32.vlgmr.msra.gmra.mxu1 %vm3589_vm10, %v5164_v47 }
 0xbb4   :  { %8510 = vmatmul.mubr.msk.f32.vlgmr.msra.gmra.mxu0 %vm3589_vm10, %v5164_v47  ;;  %8512 = vmatprep.subr.mxu1 %v10065_v48 }
 0xbb5   :  { %8520 = vmatpush3.msra.mxu0 %v9087_v28  ;;  %8513 = vmatpush3.msra.mxu1 %v9595_v39 }
 0xbb6   :  { %8521 = vmatprep.subr.mxu0 %v10065_v48  ;;  %8514 = vmatprep.subr.mxu1 %v10065_v48 }
 0xbb7   :  { %8522 = vmatpush3.msra.mxu0 %v9161_v53  ;;  %8515 = vmatpush3.msra.mxu1 %v9602_v8 }
 0xbb8   :  { %8516 = vmatprep.mubr.msk.f32.mxu1 %vm8893_vm0, %v10065_v48  ;;  %8523 = vmatprep.mubr.msk.f32.mxu0 %vm8893_vm0, %v10065_v48 }
 0xbb9   :  { %8526 = vmatprep.subr.mxu1 %v10065_v48  ;;  %8533 = vmatprep.subr.mxu0 %v10065_v48 }
 0xc6e   :  { %v5234_v45 = vpop.f32.mrf.mxu1  ;;  %v5311_v16 = vpop.f32.mrf.mxu0 }
 0xc6f   :  { %v5238_v27 = vadd.f32 %v5234_v45, %v2609_v10  ;;  %v5315_v12 = vadd.f32 %v5311_v16, %v2684_v43 }
 0xc70   :  { %v8490_v14 = vpop.f32.mrf.mxu1  ;;  %v8497_v21 = vpop.f32.mrf.mxu0 }
 0xc71   :  { %v7826_v35 = vmul.f32 -1.442695, %v5238_v27  ;;  %v7828_v5 = vmul.f32 -1.442695, %v5315_v12 }
 0xc73   :  { %8825 = vpow2.f32 %v7826_v35  ;;  %v5388_v18 = vpop.f32.mrf.mxu1  ;;  %v3133_v35 = vadd.f32 %v9497_v22, %v9482_v9 }
 0xc74   :  { %8827 = vpow2.f32 %v7828_v5  ;;  %v5460_v4 = vpop.f32.mrf.mxu0  ;;  %v5392_v44 = vadd.f32 %v5388_v18, %v2758_v60 }
 0xc75   :  { %v8504_v0 = vpop.f32.mrf.mxu1  ;;  %v5464_v31 = vadd.f32 %v5460_v4, %v2832_v2  ;;  %v3136_v52 = vadd.f32 %v3133_v35, %v9171_v58  ;;  %v10081_v35 = vld [vmem:[#allocation15_spill] sm:$0xff] }
 0xc76   :  { %v8511_v33 = vpop.f32.mrf.mxu0 }
 0xc77   :  { %v7831_v34 = vmul.f32 -1.442695, %v5464_v31 }
 0xc79   :  { %8829 = vpow2.f32 %v7831_v34 }
 0xc7a   :  { %8831 = vtanh.f32 %v5392_v44 }
 0xc80   :  { %v8826_v41 = vpop.eup %8825 }
 0xc81   :  { %v8828_v26 = vpop.eup %8827  ;;  %v5242_v7 = vadd.f32 1.0, %v8826_v41 }
 0xc82   :  { %v5319_v49 = vadd.f32 1.0, %v8828_v26 }
 0xc83   :  { %8833 = vrcp.f32 %v5242_v7 }
 0xc84   :  { %8835 = vrcp.f32 %v5319_v49  ;;  %v6099_v49 = vld [vmem:[%s7700_s8 + $0x4] sm:$0xf] }
 0xc86   :  { %v8830_v57 = vpop.eup %8829 }
 0xc87   :  { %v8832_v56 = vpop.eup %8831  ;;  %v5468_v11 = vadd.f32 1.0, %v8830_v57  ;;  %v6098_v57 = vld [vmem:[%s7700_s8] sm:$0xf]  ;;  %s8933_s8 = smov 25  }
 0xc89   :  { %8837 = vrcp.f32 %v5468_v11  ;;  %v6329_v11 = vrot.slane %v6099_v49, 2 }
 0xc90   :  { %v8834_v6 = vpop.eup %8833 }
 0xc91   :  { %v8836_v63 = vpop.eup %8835  ;;  %v5472_v46 = vmul.f32 %v8834_v6, %v8832_v56  ;;  %v6102_v56 = vrot.slane %v6099_v49, 7  ;;  %v6177_v6 = vrot.slane %v6098_v57, 1 }
 0xc92   :  { %v5471_v51 = vmul.f32 %v8836_v63, %v9752_v15 }
 0xc93   :  { %v6178_v63 = vsel %vm531_vm6, %v6099_v49, %v6177_v6 }
 0xc94   :  { %v9794_v19 = vadd.f32 %v5472_v46, %v5471_v51  ;;  %v6328_v46 = vrot.slane %v6098_v57, 3 }
 0xc96   :  { %8839 = vtanh.f32 %v9794_v19  ;;  %v8838_v23 = vpop.eup %8837 }
 0xca3   :  { %v8840_v1 = vpop.eup %8839 }
 0xca4   :  { %v5475_v61 = vmul.f32 %v8840_v1, %v8838_v23 }
 0xca6   :  { %8517 = vmatmul.mubr.msk.f32.vlgmr.msra.gmra.mxu1 %vm3589_vm10, %v5475_v61  ;;  %8524 = vmatmul.mubr.msk.f32.vlgmr.msra.gmra.mxu0 %vm3589_vm10, %v5475_v61 }
 0xca7   :  { %8527 = vmatpush3.msra.mxu1 %v9089_v29  ;;  %8534 = vmatpush3.msra.mxu0 %v9163_v54 }
 0xca8   :  { %8528 = vmatprep.subr.mxu1 %v10065_v48  ;;  %8535 = vmatprep.subr.mxu0 %v10065_v48 }
 0xca9   :  { %8529 = vmatpush3.msra.mxu1 %v9091_v30  ;;  %8536 = vmatpush3.msra.mxu0 %v9165_v55 }
 0xcaa   :  { %8530 = vmatprep.mubr.msk.f32.mxu1 %vm8893_vm0, %v10065_v48  ;;  %8537 = vmatprep.mubr.msk.f32.mxu0 %vm8893_vm0, %v10065_v48 }
 0xcab   :  { %8547 = vmatprep.subr.mxu0 %v10065_v48  ;;  %8531 = vmatmul.mubr.msk.f32.vlgmr.msra.gmra.mxu1 %vm3589_vm10, %v5475_v61 }
 0xcac   :  { %8538 = vmatmul.mubr.msk.f32.vlgmr.msra.gmra.mxu0 %vm3589_vm10, %v5475_v61  ;;  %8540 = vmatprep.subr.mxu1 %v10065_v48 }
 0xcad   :  { %8548 = vmatpush3.msra.mxu0 %v9087_v28  ;;  %8541 = vmatpush3.msra.mxu1 %v9595_v39  ;;  %v2990_v28 = vpop.permute.xlu0 %2989  ;;  %v10078_v39 = vld [vmem:[#allocation12_spill] sm:$0xff] }
 0xcae   :  { %8549 = vmatprep.subr.mxu0 %v10065_v48  ;;  %8542 = vmatprep.subr.mxu1 %v10065_v48  ;;  %v2984_v15 = vadd.f32 %v9493_v13, %v10078_v39  ;;  %v3059_v47 = vadd.f32 %v9495_v50, %v2990_v28  ;;  %v10079_v39 = vld [vmem:[#allocation13_spill] sm:$0xff] }
 0xcaf   :  { %8550 = vmatpush3.msra.mxu0 %v9161_v53  ;;  %8543 = vmatpush3.msra.mxu1 %v9602_v8 }
 0xcb0   :  { %8544 = vmatprep.mubr.msk.f32.mxu1 %vm8893_vm0, %v10065_v48  ;;  %8551 = vmatprep.mubr.msk.f32.mxu0 %vm8893_vm0, %v10065_v48  ;;  %v2987_v53 = vadd.f32 %v9658_v40, %v2984_v15  ;;  %v3062_v8 = vadd.f32 %v3059_v47, %v9223_v24  ;;  %v3362_v15 = vadd.f32 %v10079_v39, %v9485_v38  ;;  %v10080_v47 = vld [vmem:[#allocation14_spill] sm:$0xff]  ;;  %v6792_v39 = vld [vmem:[%s9946_s20] sm:$0xff] }
 0xcb1   :  { %8554 = vmatprep.subr.mxu1 %v10065_v48  ;;  %8561 = vmatprep.subr.mxu0 %v10065_v48  ;;  %v3138_v17 = vpop.permute.xlu0 %3137 }
 0xcb2   :  { %v3207_v27 = vadd.f32 %v9499_v62, %v3138_v17 }
 0xcb4   :  { %v3210_v21 = vadd.f32 %v3207_v27, %v9227_v32 }
 0xcb5   :  { %v3368_v28 = vpop.permute.xlu0 %3367 }
 0xd66   :  { %v5545_v42 = vpop.f32.mrf.mxu1  ;;  %v5622_v37 = vpop.f32.mrf.mxu0 }
 0xd67   :  { %v5549_v20 = vadd.f32 %v5545_v42, %v2987_v53  ;;  %v5626_v10 = vadd.f32 %v5622_v37, %v3062_v8  ;;  %v3437_v53 = vadd.f32 %v10080_v47, %v3368_v28  ;;  %v3365_v8 = vadd.f32 %v9658_v40, %v3362_v15  ;;  %v6793_v15 = vld [vmem:[%s9946_s20 + $0x8] sm:$0xff] }
 0xd68   :  { %v8518_v43 = vpop.f32.mrf.mxu1  ;;  %v8525_v45 = vpop.f32.mrf.mxu0 }
 0xd69   :  { %v7833_v16 = vmul.f32 -1.442695, %v5549_v20  ;;  %v7835_v25 = vmul.f32 -1.442695, %v5626_v10  ;;  %v3440_v42 = vadd.f32 %v3437_v53, %v9223_v24  ;;  %v3516_v20 = vpop.permute.xlu0 %3515 }
 0xd6b   :  { %8841 = vpow2.f32 %v7833_v16  ;;  %v5699_v12 = vpop.f32.mrf.mxu1 }
 0xd6c   :  { %8843 = vpow2.f32 %v7835_v25  ;;  %v5771_v13 = vpop.f32.mrf.mxu0  ;;  %v5703_v4 = vadd.f32 %v5699_v12, %v3136_v52  ;;  %v3585_v12 = vadd.f32 %v9562_v59, %v3516_v20  ;;  %v8889_v52 = vld [vmem:[%s9116_s3] ss:$0 sm:$0xff]  ;;  %s7722_s3 = sld [smem:[%s10052_s0 + %s8924_s30]]  }
 0xd6d   :  { %v8532_v50 = vpop.f32.mrf.mxu1  ;;  %v5775_v5 = vadd.f32 %v5771_v13, %v3210_v21 }
 0xd6e   :  { %v8539_v14 = vpop.f32.mrf.mxu0  ;;  %v3442_v50 = vpop.permute.xlu1 %3441  ;;  %v3588_v24 = vadd.f32 %v3585_v12, %v9227_v32 }
 0xd6f   :  { %v7838_v18 = vmul.f32 -1.442695, %v5775_v5  ;;  %v3511_v5 = vadd.f32 %v10081_v35, %v3442_v50 }
 0xd71   :  { %8845 = vpow2.f32 %v7838_v18 }
 0xd72   :  { %8847 = vtanh.f32 %v5703_v4 }
 0xd78   :  { %v8842_v0 = vpop.eup %8841 }
 0xd79   :  { %v8844_v33 = vpop.eup %8843  ;;  %v5553_v2 = vadd.f32 1.0, %v8842_v0 }
 0xd7a   :  { %v5630_v62 = vadd.f32 1.0, %v8844_v33 }
 0xd7b   :  { %8849 = vrcp.f32 %v5553_v2 }
 0xd7c   :  { %8851 = vrcp.f32 %v5630_v62  ;;  %v3514_v62 = vadd.f32 %v3511_v5, %v9171_v58 }
 0xd7e   :  { %v8846_v36 = vpop.eup %8845 }
 0xd7f   :  { %v8848_v3 = vpop.eup %8847  ;;  %v5779_v44 = vadd.f32 1.0, %v8846_v36 }
 0xd81   :  { %8853 = vrcp.f32 %v5779_v44 }
 0xd88   :  { %v8850_v31 = vpop.eup %8849 }
 0xd89   :  { %v8852_v60 = vpop.eup %8851  ;;  %v5783_v34 = vmul.f32 %v8850_v31, %v8848_v3 }
 0xd8a   :  { %v5782_v9 = vmul.f32 %v8852_v60, %v9794_v19  ;;  %v6330_v19 = vsel %vm531_vm6, %v6329_v11, %v6328_v46 }
 0xd8c   :  { %v9836_v22 = vadd.f32 %v5783_v34, %v5782_v9 }
 0xd8e   :  { %8855 = vtanh.f32 %v9836_v22  ;;  %v8854_v41 = vpop.eup %8853 }
 0xd9b   :  { %v8856_v26 = vpop.eup %8855 }
 0xd9c   :  { %v5786_v7 = vmul.f32 %v8856_v26, %v8854_v41 }
 0xd9e   :  { %8545 = vmatmul.mubr.msk.f32.vlgmr.msra.gmra.mxu1 %vm3589_vm10, %v5786_v7  ;;  %8552 = vmatmul.mubr.msk.f32.vlgmr.msra.gmra.mxu0 %vm3589_vm10, %v5786_v7 }
 0xd9f   :  { %8555 = vmatpush3.msra.mxu1 %v9089_v29  ;;  %8562 = vmatpush3.msra.mxu0 %v9163_v54  ;;  %v6103_v29 = vsel %vm531_vm6, %v6102_v56, %v6098_v57  ;;  %v6253_v54 = vrot.slane %v6099_v49, 1 }
 0xda0   :  { %8556 = vmatprep.subr.mxu1 %v10065_v48  ;;  %8563 = vmatprep.subr.mxu0 %v10065_v48 }
 0xda1   :  { %8557 = vmatpush3.msra.mxu1 %v9091_v30  ;;  %8564 = vmatpush3.msra.mxu0 %v9165_v55  ;;  %v6252_v30 = vrot.slane %v6098_v57, 2  ;;  %v8888_v55 = vld [vmem:[%s8971_s26] sm:$0x1f]  ;;  %s8918_s26 = smov 20  }
 0xda2   :  { %8558 = vmatprep.mubr.msk.f32.mxu1 %vm8893_vm0, %v10065_v48  ;;  %8565 = vmatprep.mubr.msk.f32.mxu0 %vm8893_vm0, %v10065_v48  ;;  %s9891_s12 = sld [smem:[%s10052_s0 + %s8918_s26]]  }
 0xda3   :  { %8559 = vmatmul.mubr.msk.f32.vlgmr.msra.gmra.mxu1 %vm3589_vm10, %v5786_v7  ;;  %8566 = vmatmul.mubr.msk.f32.vlgmr.msra.gmra.mxu0 %vm3589_vm10, %v5786_v7  ;;  %v6254_v51 = vsel %vm531_vm6, %v6253_v54, %v6252_v30  ;;  %s7710_s26 = sld [smem:[%s10052_s0 + %s8925_s5]]  }
 0xda4   :  { %8568 = vmatprep.subr.mxu1 %v10065_v48  ;;  %8570 = vmatprep.mubr.msk.f32.mxu1 %vm8893_vm0, %v10065_v48 }
 0xda5   :  { %8569 = vmatpush3.msk.msra.mxu1 %vm536_vm5, %v8888_v55  ;;  %8573 = vmatprep.subr.mxu0 %v10065_v48 }
 0xda6   :  { %8574 = vmatpush3.msk.msra.mxu0 %vm536_vm5, %v8888_v55  ;;  %8575 = vmatprep.mubr.msk.f32.mxu0 %vm8893_vm0, %v10065_v48 }
 0xda7   :  { %8571 = vmatmul.mubr.msk.f32.vlgmr.msra.gmra.mxu1 %vm533_vm7, %v6103_v29  ;;  %8578 = vmatprep.subr.mxu1 %v10065_v48 }
 0xda8   :  { %8576 = vmatmul.mubr.msk.f32.vlgmr.msra.gmra.mxu0 %vm533_vm7, %v6178_v63  ;;  %8579 = vmatpush3.msk.msra.mxu1 %vm536_vm5, %v8888_v55  ;;  %v6405_v23 = vld [vmem:[%s9891_s12 + $0x8] sm:$0xff]  ;;  %v6404_v1 = vld [vmem:[%s9891_s12] sm:$0xff]  ;;  %v6406_v61 = vld [vmem:[%s9891_s12 + $0x10] sm:$0xff] }
 0xda9   :  { %8580 = vmatprep.mubr.msk.f32.mxu1 %vm8893_vm0, %v10065_v48  ;;  %8583 = vmatprep.subr.mxu0 %v10065_v48  ;;  %v6408_v7 = vld [vmem:[%s9891_s12 + $0x20] sm:$0xff] }
 0xdaa   :  { %8584 = vmatpush3.msk.msra.mxu0 %vm536_vm5, %v8888_v55  ;;  %8585 = vmatprep.mubr.msk.f32.mxu0 %vm8893_vm0, %v10065_v48 }
 0xdab   :  { %8581 = vmatmul.mubr.msk.f32.vlgmr.msra.gmra.mxu1 %vm533_vm7, %v6254_v51  ;;  %8588 = vmatprep.subr.mxu1 %v10065_v48 }
 0xdac   :  { %8586 = vmatmul.mubr.msk.f32.vlgmr.msra.gmra.mxu0 %vm533_vm7, %v6330_v19  ;;  %8595 = vmatprep.subr.mxu0 %v10065_v48 }
 0xdad   :  { %8592 = vmatprep.mubr.msk.f32.mxu1 %vm8893_vm0, %v10065_v48  ;;  %8597 = vmatprep.mubr.msk.f32.mxu0 %vm8893_vm0, %v10065_v48 }
 0xdae   :  { %8589 = vmatpush3.msra.mxu1 %v6405_v23  ;;  %8596 = vmatpush3.msra.mxu0 %v6406_v61 }
 0xdaf   :  { %8590 = vmatprep.subr.mxu1 %v10065_v48  ;;  %8605 = vmatprep.subr.mxu0 %v10065_v48 }
 0xdb0   :  { %8591 = vmatpush3.msra.mxu1 %v6404_v1  ;;  %v6407_v1 = vld [vmem:[%s9891_s12 + $0x18] sm:$0xff] }
 0xdb1   :  { %8600 = vmatprep.subr.mxu1 %v10065_v48 }
 0xe5e   :  { %v5856_v37 = vpop.f32.mrf.mxu1  ;;  %v5933_v17 = vpop.f32.mrf.mxu0 }
 0xe5f   :  { %v5860_v10 = vadd.f32 %v5856_v37, %v3365_v8  ;;  %v5937_v43 = vadd.f32 %v5933_v17, %v3440_v42  ;;  %v7854_v37 = vld [vmem:[%s7719_s24] ss:$0 sm:$0xff] }
 0xe60   :  { %v8546_v45 = vpop.f32.mrf.mxu1  ;;  %v8553_v16 = vpop.f32.mrf.mxu0 }
 0xe61   :  { %v7840_v25 = vmul.f32 -1.442695, %v5860_v10  ;;  %v7842_v27 = vmul.f32 -1.442695, %v5937_v43 }
 0xe63   :  { %8857 = vpow2.f32 %v7840_v25  ;;  %v6010_v38 = vpop.f32.mrf.mxu1  ;;  %v6082_v13 = vpop.f32.mrf.mxu0 }
 0xe64   :  { %8859 = vpow2.f32 %v7842_v27  ;;  %v6086_v0 = vadd.f32 %v6082_v13, %v3588_v24  ;;  %v6014_v34 = vadd.f32 %v6010_v38, %v3514_v62 }
 0xe65   :  { %v8560_v40 = vpop.f32.mrf.mxu1  ;;  %v8567_v14 = vpop.f32.mrf.mxu0 }
 0xe66   :  { %v7845_v31 = vmul.f32 -1.442695, %v6086_v0 }
 0xe67   :  { %v6172_v21 = vpop.f32.mrf.mxu1 }
 0xe68   :  { %v6173_v18 = vadd.f32 %v8889_v52, %v6172_v21  ;;  %v6247_v4 = vpop.f32.mrf.mxu0  ;;  %v6794_v21 = vld [vmem:[%s9946_s20 + $0x10] sm:$0xff] }
 0xe69   :  { %v8572_v33 = vpop.f32.mrf.mxu1  ;;  %v6248_v46 = vadd.f32 %v8889_v52, %v6247_v4 }
 0xe6a   :  { %8861 = vtanh.f32 %v6173_v18  ;;  %v8577_v2 = vpop.f32.mrf.mxu0 }
 0xe6b   :  { %v6323_v59 = vpop.f32.mrf.mxu1 }
 0xe6c   :  { %v6324_v36 = vadd.f32 %v8889_v52, %v6323_v59  ;;  %v6399_v3 = vpop.f32.mrf.mxu0 }
 0xe6d   :  { %v8582_v60 = vpop.f32.mrf.mxu1  ;;  %v6400_v11 = vadd.f32 %v8889_v52, %v6399_v3 }
 0xe6e   :  { %8863 = vtanh.f32 %v6324_v36  ;;  %v8587_v32 = vpop.f32.mrf.mxu0 }
 0xe6f   :  { %8865 = vpow2.f32 %v7845_v31  ;;  %v7474_v32 = vld [vmem:[%s7722_s3 + $0x8] sm:$0xf] }
 0xe70   :  { %v8858_v44 = vpop.eup %8857  ;;  %8867 = vtanh.f32 %v6014_v34 }
 0xe71   :  { %v8860_v9 = vpop.eup %8859  ;;  %v5864_v41 = vadd.f32 1.0, %v8858_v44 }
 0xe72   :  { %v5941_v26 = vadd.f32 1.0, %v8860_v9 }
 0xe73   :  { %8869 = vrcp.f32 %v5864_v41 }
 0xe74   :  { %8871 = vrcp.f32 %v5941_v26  ;;  %v7473_v26 = vld [vmem:[%s7722_s3] sm:$0xff] }
 0xe77   :  { %v9910_v49 = vpop.eup %8861 }
 0xe78   :  { %8598 = vmatmul.mubr.msk.f32.vlgmr.msra.gmra.mxu0 %vm621_vm9, %v9910_v49 }
 0xe79   :  { %8606 = vmatpush3.msra.mxu0 %v6408_v7  ;;  %8607 = vmatprep.mubr.msk.f32.mxu0 %vm8893_vm0, %v10065_v48 }
 0xe7a   :  { %8615 = vmatprep.subr.mxu0 %v10065_v48 }
 0xe7b   :  { %v9917_v58 = vpop.eup %8863 }
 0xe7c   :  { %8608 = vmatmul.mubr.msk.f32.vlgmr.msra.gmra.mxu0 %vm621_vm9, %v9917_v58  ;;  %v8866_v57 = vpop.eup %8865 }
 0xe7d   :  { %8617 = vmatprep.mubr.msk.f32.mxu0 %vm8893_vm0, %v10065_v48  ;;  %v8868_v56 = vpop.eup %8867  ;;  %v6090_v54 = vadd.f32 1.0, %v8866_v57  ;;  %8616 = vmatpush3.msra.mxu0 %v6793_v15 }
 0xe7e   :  { %8625 = vmatprep.subr.mxu0 %v10065_v48 }
 0xe7f   :  { %8873 = vrcp.f32 %v6090_v54 }
 0xe80   :  { %v8870_v6 = vpop.eup %8869 }
 0xe81   :  { %v8872_v29 = vpop.eup %8871  ;;  %v6094_v30 = vmul.f32 %v8870_v6, %v8868_v56 }
 0xe82   :  { %v6093_v55 = vmul.f32 %v8872_v29, %v9836_v22  ;;  %v6409_v22 = vld [vmem:[%s9891_s12 + $0x28] sm:$0xff]  ;;  %s7723_s12 = sld [smem:[%s10052_s0 + %s8933_s8]]  }
 0xe84   :  { %v6095_v63 = vadd.f32 %v6094_v30, %v6093_v55 }
 0xe86   :  { %8875 = vtanh.f32 %v6095_v63 }
 0xe87   :  { %8877 = vtanh.f32 %v6248_v46 }
 0xe88   :  { %8879 = vtanh.f32 %v6400_v11 }
 0xe8c   :  { %v8874_v51 = vpop.eup %8873 }
 0xe93   :  { %v8876_v19 = vpop.eup %8875 }
 0xe94   :  { %v6097_v23 = vmul.f32 %v8876_v19, %v8874_v51  ;;  %v9926_v61 = vpop.eup %8877  ;;  %v7735_v19 = vld [vmem:[%s7708_s18] ss:$0 sm:$0xff] }
 0xe95   :  { %v9934_v28 = vpop.eup %8879 }
 0xe96   :  { %8593 = vmatmul.mubr.msk.f32.vlgmr.msra.gmra.mxu1 %vm3589_vm10, %v6097_v23  ;;  %v10082_v23 = vld [vmem:[#allocation5_spill] sm:$0xff] }
 0xe97   :  { %8601 = vmatpush3.msra.mxu1 %v6407_v1  ;;  %8602 = vmatprep.mubr.msk.f32.mxu1 %vm8893_vm0, %v10065_v48  ;;  %v389_v1 = vadd.f32 %v7735_v19, %v10082_v23 }
 0xe98   :  { %8610 = vmatprep.subr.mxu1 %v10065_v48 }
 0xe9a   :  { %8603 = vmatmul.mubr.msk.f32.vlgmr.msra.gmra.mxu1 %vm621_vm9, %v9926_v61 }
 0xe9b   :  { %8611 = vmatpush3.msra.mxu1 %v6409_v22  ;;  %8612 = vmatprep.mubr.msk.f32.mxu1 %vm8893_vm0, %v10065_v48 }
 0xe9c   :  { %8620 = vmatprep.subr.mxu1 %v10065_v48 }
 0xe9e   :  { %8613 = vmatmul.mubr.msk.f32.vlgmr.msra.gmra.mxu1 %vm621_vm9, %v9934_v28 }
 0xe9f   :  { %8622 = vmatprep.mubr.msk.f32.mxu1 %vm8893_vm0, %v10065_v48  ;;  %8621 = vmatpush3.msra.mxu1 %v6792_v39 }
 0xea0   :  { %8630 = vmatprep.subr.mxu1 %v10065_v48 }
 0xf38   :  { %v6559_v47 = vpop.f32.mrf.mxu0 }
 0xf3a   :  { %v8599_v53 = vpop.f32.mrf.mxu0 }
 0xf3c   :  { %v6707_v8 = vpop.f32.mrf.mxu0 }
 0xf3e   :  { %v8609_v42 = vpop.f32.mrf.mxu0 }
 0xf56   :  { %v6486_v17 = vpop.f32.mrf.mxu1 }
 0xf57   :  { %v6487_v20 = vadd.f32 %v7854_v37, %v6486_v17 }
 0xf58   :  { %v8594_v10 = vpop.f32.mrf.mxu1 }
 0xf59   :  { %v6563_v43 = vadd.f32 %v6559_v47, %v6487_v20 }
 0xf5a   :  { %v6633_v45 = vpop.f32.mrf.mxu1 }
 0xf5b   :  { %v6637_v16 = vadd.f32 %v6633_v45, %v6563_v43 }
 0xf5c   :  { %v8604_v25 = vpop.f32.mrf.mxu1 }
 0xf5d   :  { %v6711_v27 = vadd.f32 %v6707_v8, %v6637_v16  ;;  %v419_v16 = vlaneseq }
 0xf5e   :  { %v6781_v12 = vpop.f32.mrf.mxu1 }
 0xf5f   :  { %v6785_v38 = vadd.f32 %v6781_v12, %v6711_v27  ;;  %v420_v25 = vshrl.u32 %v419_v16, 7 }
 0xf60   :  { %v8614_v13 = vpop.f32.mrf.mxu1 }
 0xf61   :  { %v7860_v50 = vmul.f32 -1.442695, %v6785_v38  ;;  %v421_v27 = vsub.s32 0, %v420_v25  ;;  %v8890_v38 = vld [vmem:[%s8959_s14] sm:$0x7]  ;;  %s8934_s14 = smov 26  }
 0xf62   :  { %s7724_s18 = sld [smem:[%s10052_s0 + %s8934_s14]]  }
 0xf63   :  { %8881 = vpow2.f32 %v7860_v50  ;;  %v422_v13 = vrot.slane %v8890_v38, %v421_v27  ;;  %v7665_v50 = vld [vmem:[%s7704_s1] sm:$0x3] }
 0xf70   :  { %v8882_v40 = vpop.eup %8881 }
 0xf71   :  { %v6789_v14 = vadd.f32 1.0, %v8882_v40 }
 0xf73   :  { %8883 = vrcp.f32 %v6789_v14 }
 0xf80   :  { %v8884_v24 = vpop.eup %8883 }
 0xf81   :  { %7020 = vrot.lane.b32.xlu0 %v8884_v24, %s8921_s25  ;;  %6803 = vrot.lane.b32.xlu1 %v8884_v24, %s8903_s13  ;;  %s8923_s13 = smov 23   ;;  %s8930_s25 = smov 118  }
 0xf82   :  { %8623 = vmatmul.mubr.msk.f32.vlgmr.msra.gmra.mxu1 %vm621_vm9, %v8884_v24  ;;  %s7721_s29 = sld [smem:[%s10052_s0 + %s8923_s13]]  }
 0xf83   :  { %8631 = vmatpush3.msra.mxu1 %v6792_v39  ;;  %8632 = vmatprep.mubr.msk.f32.mxu1 %vm8893_vm0, %v10065_v48 }
 0xf84   :  { %8640 = vmatprep.subr.mxu1 %v10065_v48 }
 0xf85   :  { %7310 = vrot.lane.b32.xlu0 %v8884_v24, %s8922_s27  ;;  %7165 = vrot.lane.b32.xlu1 %v8884_v24, %s8905_s16  ;;  %s8931_s27 = smov 27  }
 0xf86   :  { %s7725_s28 = sld [smem:[%s10052_s0 + %s8931_s27]]  }
 0xf88   :  { %v7861_v33 = vld [vmem:[%s7721_s29] ss:$0 sm:$0xff] }
 0xf8c   :  { %v7568_v45 = vld [vmem:[%s7725_s28] sm:$0xf] }
 0xff3   :  { %v7021_v35 = vpop.permute.xlu0 %7020  ;;  %v6804_v5 = vpop.permute.xlu1 %6803 }
 0xff4   :  { %8618 = vmatmul.mubr.msk.f32.vlgmr.msra.gmra.mxu0 %vm621_vm9, %v6804_v5  ;;  %8633 = vmatmul.mubr.msk.f32.vlgmr.msra.gmra.mxu1 %vm621_vm9, %v7021_v35  ;;  %v10083_v35 = vld [vmem:[#allocation4_spill] sm:$0xff] }
 0xff5   :  { %8626 = vmatpush3.msra.mxu0 %v6794_v21  ;;  %8627 = vmatprep.mubr.msk.f32.mxu0 %vm8893_vm0, %v10065_v48 }
 0xff6   :  { %8641 = vmatpush3.msra.mxu1 %v6792_v39  ;;  %8642 = vmatprep.mubr.msk.f32.mxu1 %vm8893_vm0, %v10065_v48 }
 0xff7   :  { %v7166_v52 = vpop.permute.xlu1 %7165  ;;  %8635 = vmatprep.subr.mxu0 %v10065_v48  ;;  %8650 = vmatprep.subr.mxu1 %v10065_v48  ;;  %v7311_v18 = vpop.permute.xlu0 %7310 }
 0xff8   :  { %8628 = vmatmul.mubr.msk.f32.vlgmr.msra.gmra.mxu0 %vm621_vm9, %v9910_v49  ;;  %8643 = vmatmul.mubr.msk.f32.vlgmr.msra.gmra.mxu1 %vm621_vm9, %v7166_v52  ;;  %v7742_v52 = vld [vmem:[%s7712_s6] ss:$0 sm:$0xff] }
 0xff9   :  { %8636 = vmatpush3.msra.mxu0 %v6794_v21  ;;  %8637 = vmatprep.mubr.msk.f32.mxu0 %vm8893_vm0, %v10065_v48 }
 0xffa   :  { %8651 = vmatpush3.msra.mxu1 %v6792_v39  ;;  %8652 = vmatprep.mubr.msk.f32.mxu1 %vm8893_vm0, %v10065_v48 }
 0xffb   :  { %8645 = vmatprep.subr.mxu0 %v10065_v48  ;;  %8660 = vmatprep.subr.mxu1 %v10065_v48 }
 0xffc   :  { %8638 = vmatmul.mubr.msk.f32.vlgmr.msra.gmra.mxu0 %vm621_vm9, %v9926_v61  ;;  %8653 = vmatmul.mubr.msk.f32.vlgmr.msra.gmra.mxu1 %vm621_vm9, %v7311_v18  ;;  %v392_v61 = vmax.f32 %v389_v1, 0.0 }
 0xffd   :  { %8646 = vmatpush3.msra.mxu0 %v6794_v21  ;;  %8647 = vmatprep.mubr.msk.f32.mxu0 %vm8893_vm0, %v10065_v48 }
 0xffe   :  { %8655 = vmatprep.subr.mxu0 %v10065_v48  ;;  %8664 = vmatprep.mubr.msk.f32.mxu1 %vm8893_vm0, %v10065_v48 }
 0xfff   :  { %8661 = vmatpush3.msk.msra.mxu1 %vm143_vm1, %v7474_v32 }
0x1000   :  { %8648 = vmatmul.mubr.msk.f32.vlgmr.msra.gmra.mxu0 %vm621_vm9, %v9917_v58  ;;  %8662 = vmatprep.subr.mxu1 %v10065_v48 }
0x1001   :  { %8656 = vmatpush3.msra.mxu0 %v6794_v21  ;;  %8657 = vmatprep.mubr.msk.f32.mxu0 %vm8893_vm0, %v10065_v48 }
0x1002   :  { %8667 = vmatprep.subr.mxu0 %v10065_v48  ;;  %8663 = vmatpush3.msra.mxu1 %v7473_v26 }
0x1004   :  { %8658 = vmatmul.mubr.msk.f32.vlgmr.msra.gmra.mxu0 %vm621_vm9, %v9934_v28 }
0x1005   :  { %8669 = vmatprep.mubr.msk.f32.mxu0 %vm8893_vm0, %v10065_v48  ;;  %v68_v48 = vstv %s7710_s26  ;;  %8668 = vmatpush3.msk.msra.mxu0 %vm143_vm1, %v7568_v45  ;;  %vm7670_vm0 = vcmask 9216   ;;  %vm7661_vm1 = vcmask 74752  }
0x1006   :  { %69 = vst [vmem:[#allocation2] sm:$0x1] %v68_v48 }
0x100d   :  { %v7739_v17 = vld [vmem:[#allocation2] ss:$0 sm:$0xff] }
0x1042   :  { %v6945_v4 = vpop.f32.mrf.mxu1 }
0x1044   :  { %v8624_v0 = vpop.f32.mrf.mxu1 }
0x10b4   :  { %v6873_v2 = vpop.f32.mrf.mxu0  ;;  %v7090_v59 = vpop.f32.mrf.mxu1 }
0x10b5   :  { %v6874_v62 = vadd.f32 %v7861_v33, %v6873_v2  ;;  %v7874_v2 = vld [vmem:[%s7724_s18] ss:$0 sm:$0xff] }
0x10b6   :  { %v8619_v36 = vpop.f32.mrf.mxu0  ;;  %v8634_v3 = vpop.f32.mrf.mxu1 }
0x10b7   :  { %v6946_v31 = vadd.f32 %v6945_v4, %v6874_v62  ;;  %v7091_v7 = vadd.f32 %v7090_v59, %v6874_v62  ;;  %v7871_v4 = vld [vmem:[%s7723_s12] ss:$0 sm:$0xff] }
0x10b8   :  { %v7015_v60 = vpop.f32.mrf.mxu0  ;;  %v7235_v34 = vpop.f32.mrf.mxu1 }
0x10b9   :  { %v7019_v44 = vadd.f32 %v7015_v60, %v6946_v31  ;;  %v7236_v29 = vadd.f32 %v7235_v34, %v6874_v62 }
0x10ba   :  { %v8629_v9 = vpop.f32.mrf.mxu0  ;;  %v8644_v41 = vpop.f32.mrf.mxu1 }
0x10bc   :  { %v7160_v49 = vpop.f32.mrf.mxu0  ;;  %v7380_v58 = vpop.f32.mrf.mxu1 }
0x10bd   :  { %v7164_v57 = vadd.f32 %v7160_v49, %v7091_v7  ;;  %v7381_v63 = vadd.f32 %v7380_v58, %v6874_v62 }
0x10be   :  { %v8639_v56 = vpop.f32.mrf.mxu0  ;;  %v8654_v6 = vpop.f32.mrf.mxu1 }
0x10bf   :  { %7456 = vrot.lane.b32.xlu1 %v7164_v57, %s8894_s7  ;;  %s8928_s7 = smov 11  }
0x10c0   :  { %v7305_v30 = vpop.f32.mrf.mxu0  ;;  %s7709_s21 = sld [smem:[%s10052_s0 + %s8928_s7]]   ;;  %s8935_s7 = smov 30  }
0x10c1   :  { %v7309_v54 = vadd.f32 %v7305_v30, %v7236_v29 }
0x10c2   :  { %v8649_v55 = vpop.f32.mrf.mxu0 }
0x10c3   :  { %7460 = vrot.lane.b32.xlu0 %v7309_v54, %s8926_s10 }
0x10c4   :  { %v7450_v46 = vpop.f32.mrf.mxu0 }
0x10c5   :  { %v7454_v11 = vadd.f32 %v7450_v46, %v7381_v63 }
0x10c6   :  { %v8659_v51 = vpop.f32.mrf.mxu0  ;;  %v7738_v22 = vld [vmem:[%s7709_s21] ss:$0 sm:$0xff]  ;;  %s7728_s21 = sld [smem:[%s10052_s0 + %s8935_s7]]  }
0x10c7   :  { %7464 = vrot.lane.b32.xlu1 %v7454_v11, %s8902_s9  ;;  %v400_v28 = vmul.f32 %v7738_v22, %v392_v61  ;;  %s8929_s9 = smov 29  }
0x10c8   :  { %s7727_s24 = sld [smem:[%s10052_s0 + %s8929_s9]]   ;;  %s8936_s9 = smov 28  }
0x10c9   :  { %v402_v39 = vsel %vm401_vm11, %v400_v28, 0.0 }
0x10cc   :  { %v70_v3 = vstv %s7728_s21 }
0x10cd   :  { %71 = vst [vmem:[#allocation3] sm:$0x1] %v70_v3 }
0x10ce   :  { %v7878_v43 = vld [vmem:[%s7727_s24] ss:$0 sm:$0xff]  ;;  %s7726_s24 = sld [smem:[%s10052_s0 + %s8936_s9]]  }
0x10d4   :  { %v7875_v31 = vld [vmem:[%s7726_s24] ss:$0 sm:$0xff]  ;;  %v7879_v7 = vld [vmem:[#allocation3] ss:$0 sm:$0xff] }
0x10e2   :  { %403 = vadd.xlane.f32.xlu0 %v402_v39 }
0x1131   :  { %v7457_v15 = vpop.permute.xlu1 %7456 }
0x1132   :  { %v7468_v53 = vsel %vm7467_vm12, %v7019_v44, %v7457_v15 }
0x1135   :  { %v7461_v47 = vpop.permute.xlu0 %7460 }
0x1136   :  { %v7470_v8 = vsel %vm7469_vm13, %v7468_v53, %v7461_v47 }
0x1139   :  { %v7465_v42 = vpop.permute.xlu1 %7464 }
0x113a   :  { %v7472_v37 = vsel %vm7471_vm14, %v7470_v8, %v7465_v42 }
0x113b   :  { %8665 = vmatmul.mubr.msk.f32.vlgmr.msra.gmra.mxu1 %vm7483_vm15, %v7472_v37 }
0x116b   :  { %v404_v20 = vpop.xlane.xlu0 %403 }
0x116c   :  { %v412_v10 = vadd.f32 %v7739_v17, %v404_v20 }
0x116e   :  { %416 = vperm.xlu1 %8727, %v412_v10  }
0x1172   :  { %7666 = vrot.lane.b32.xlu1 %v7878_v43, %s8930_s25 }
0x11e9   :  { %v417_v12 = vpop.permute.xlu1 %416 }
0x11ea   :  { %v423_v14 = vmul.f32 %v422_v13, %v417_v12 }
0x11ec   :  { %v503_v5 = vadd.f32 %v10083_v35, %v423_v14 }
0x11ed   :  { %v7667_v40 = vpop.permute.xlu1 %7666 }
0x11ee   :  { %v7669_v24 = vmul.f32 %v7667_v40, %v7665_v50  ;;  %v511_v18 = vadd.f32 %v7742_v52, %v503_v5 }
0x11f0   :  { %v7671_v21 = vsel %vm7670_vm0, %v7669_v24, 0.0  ;;  %v7482_v0 = vmul.f32 %v7871_v4, %v511_v18 }
0x11f1   :  { %7672 = vadd.xlane.f32.xlu0 %v7671_v21 }
0x11fb   :  { %v7556_v33 = vpop.f32.mrf.mxu1 }
0x11fc   :  { %v7557_v59 = vadd.f32 %v7556_v33, %v7482_v0 }
0x11fd   :  { %v8666_v62 = vpop.f32.mrf.mxu1 }
0x11fe   :  { %v7567_v36 = vadd.f32 %v7874_v2, %v7557_v59 }
0x1200   :  { %8670 = vmatmul.mubr.msk.f32.vlgmr.msra.gmra.mxu0 %vm139_vm2, %v7567_v36  ;;  %vm7689_vm2 = vcmask 7168  }
0x1207   :  { %7683 = vrot.lane.b32.xlu0 %v412_v10, %s8906_s17  ;;  %s8937_s17 = smov 31  }
0x1208   :  { %s7729_s13 = sld [smem:[%s10052_s0 + %s8937_s17]]  }
0x127a   :  { %v7673_v26 = vpop.xlane.xlu0 %7672 }
0x127e   :  { %v7684_v56 = vpop.permute.xlu0 %7683 }
0x12c0   :  { %v7648_v60 = vpop.f32.mrf.mxu0 }
0x12c1   :  { %v7649_v34 = vadd.f32 %v7875_v31, %v7648_v60 }
0x12c2   :  { %v8671_v32 = vpop.f32.mrf.mxu0 }
0x12c3   :  { %v7652_v44 = vmax.f32 %v7649_v34, 0.0 }
0x12c5   :  { %v7660_v9 = vmul.f32 %v7878_v43, %v7652_v44 }
0x12c7   :  { %v7662_v41 = vsel %vm7661_vm1, %v7660_v9, 0.0 }
0x12c8   :  { %7663 = vadd.xlane.f32.xlu1 %v7662_v41 }
0x12d9   :  { %7686 = vrot.lane.b32.xlu1 %v7472_v37, %s8917_s4 }
0x1351   :  { %v7664_v49 = vpop.xlane.xlu1 %7663 }
0x1352   :  { %v7674_v58 = vadd.f32 %v7673_v26, %v7664_v49 }
0x1354   :  { %v7682_v57 = vadd.f32 %v7879_v7, %v7674_v58 }
0x1355   :  { %v7687_v6 = vpop.permute.xlu1 %7686 }
0x1356   :  { %v7690_v29 = vsel %vm7689_vm2, %v7682_v57, %v7684_v56 }
0x1357   :  { %v7691_v30 = vsel %vm427_vm4, %v7690_v29, %v7687_v6 }
0x1358   :  { %v7693_v54 = vsel %vm7692_vm3, %v7691_v30, 0.0 }
0x1359   :  { %7694 = vst [vmem:[%s7729_s13] sm:$0x3] %v7693_v54 }

</bundles_post_ra>
